<compile_context>
chip_gen: v6e
topology: v6e:2x2x1
jax: 0.10.0
libtpu: 0.0.40
codegen_flags: <defaults>
</compile_context>

<pallas_src>
import jax
import jax.numpy as jnp
from jax import lax
from jax.experimental import pallas as pl
from jax.experimental.pallas import tpu as pltpu

EMBEDDING_DIM_LSTM = 32
HIDDEN_DIM = 32


def sentiment_lstm_kernel(ids_ref, len_ref, tbl0_ref, b0_ref, w0_ref, w1_ref,
                          b1_ref, wfc_ref, bfc_ref, out_ref, gx0_ref):
    # ids_ref : [T*B, 1] i32   time-major token ids
    # len_ref : [B, 1]  i32    sequence lengths
    # tbl0_ref: [Vp, 4H]       embedding table pre-projected by W_ih_l0
    # b0_ref  : [1, 4H] f32    b_ih_l0 + b_hh_l0
    # w0_ref  : [4, H, H]      per-gate W_hh_l0^T            (gate order i,f,g,o)
    # w1_ref  : [4, 2H, H]     per-gate [W_ih_l1^T ; W_hh_l1^T]
    # b1_ref  : [4, 1, H] f32  per-gate b_ih_l1 + b_hh_l1
    # wfc_ref : [1, H] f32,  bfc_ref: [1, 1] f32
    # gx0_ref : [T*B, 4H] f32 scratch -- hoisted layer-0 input pre-activations
    TB, H4 = gx0_ref.shape
    B = len_ref.shape[0]
    T = TB // B
    H = H4 // 4
    Vp = tbl0_ref.shape[0]
    mxu_dtype = tbl0_ref.dtype

    # ---- (2) Embedding + layer-0 input projection, hoisted over all T ----
    # one-hot(ids) @ tbl0  ==  Embedding(ids) @ W_ih_l0^T ; b0 folded in.
    iota_v = lax.broadcasted_iota(jnp.int32, (TB, Vp), 1)
    onehot = jnp.where(ids_ref[...] == iota_v, 1.0, 0.0).astype(mxu_dtype)
    gx0_ref[...] = (jnp.dot(onehot, tbl0_ref[...],
                            preferred_element_type=jnp.float32)
                    + b0_ref[...])

    lens = len_ref[...]                                        # [B, 1] i32
    # (5) loop-invariant layer-1 bias broadcasts, hoisted out of the recurrence.
    b1b = [jnp.broadcast_to(b1_ref[k], (B, H)) for k in range(4)]
    zeros = jnp.zeros((B, H), jnp.float32)

    def lstm_cell(pre, c):
        # PyTorch gate order: i, f, g, o -- every operand lane-aligned (no XLU
        # rotates on the recurrent chain); elementwise math stays f32.
        i = jax.nn.sigmoid(pre[0])
        f = jax.nn.sigmoid(pre[1])
        g = jnp.tanh(pre[2])
        o = jax.nn.sigmoid(pre[3])
        nc = f * c + i * g
        return o * jnp.tanh(nc), nc

    def step(t, carry):
        h0, c0, h1, c1, acc = carry

        # Hoisted input pre-activations for this step: depend only on t, so
        # the slice (and any relayout of it) stays off the critical path.
        row = pl.multiple_of(t * B, B)
        gx0_t = gx0_ref[pl.ds(row, B), :]                      # [B, 4H]

        # ---- layer 0: per-gate hidden dots (3)(4) ----
        h0m = h0.astype(mxu_dtype)
        pre0 = [gx0_t[:, k * H:(k + 1) * H]
                + jnp.dot(h0m, w0_ref[k], preferred_element_type=jnp.float32)
                for k in range(4)]
        nh0, nc0 = lstm_cell(pre0, c0)

        # Inter-layer Dropout(0.5) is identity in eval mode.

        # ---- layer 1: fused [x | h] per-gate dots; bias broadcast hoisted ----
        x1 = jnp.concatenate([nh0, h1], axis=-1).astype(mxu_dtype)  # [B, 2H]
        pre1 = [jnp.dot(x1, w1_ref[k], preferred_element_type=jnp.float32)
                + b1b[k]
                for k in range(4)]
        nh1, nc1 = lstm_cell(pre1, c1)

        # (5) packed-sequence semantics: one mask broadcast, five selects.
        mask = jnp.broadcast_to(lens > t, (B, H))
        h0 = jnp.where(mask, nh0, h0)
        c0 = jnp.where(mask, nc0, c0)
        h1 = jnp.where(mask, nh1, h1)
        c1 = jnp.where(mask, nc1, c1)
        acc = acc + jnp.where(mask, nh1, zeros)                # output.sum(dim=1)
        return h0, c0, h1, c1, acc

    # (6) unroll capped to bound vreg pressure / code size at larger T.
    _, _, _, _, acc = lax.fori_loop(0, T, step, (zeros,) * 5, unroll=min(T, 8))

    # fc epilogue: VPU multiply + lane reduce (no N=1 MXU matmul).
    # TODO(synk): emit a lane-dense (1, B) output at production batch sizes.
    out_ref[...] = (jnp.sum(acc * wfc_ref[...], axis=-1, keepdims=True)
                    + bfc_ref[...])


def prepare_params(params, mxu_dtype=jnp.float32):
    """One-time weight packing; call once and reuse the result every forward.

    Pass mxu_dtype=jnp.bfloat16 on v6e/v7x for full-rate bf16 MXU operands
    (all elementwise / accumulation math inside the kernel stays f32).
    """
    H4, _ = params["w_ih_l0"].shape
    H = H4 // 4
    V = params["embedding"].shape[0]
    Vp = ((V + 7) // 8) * 8                            # sublane-align the table

    # Eval-mode dropout is identity, so Embedding -> layer-0 input projection
    # collapses into a single pre-projected table: tbl0[v] = W_ih_l0 @ E[v].
    tbl0 = params["embedding"].astype(jnp.float32) @ params["w_ih_l0"].T
    tbl0 = jnp.zeros((Vp, H4), jnp.float32).at[:V].set(tbl0)

    per_gate = lambda w: jnp.stack([w[k * H:(k + 1) * H].T for k in range(4)])
    w0 = per_gate(params["w_hh_l0"])                                   # [4,H,H]
    w1 = jnp.concatenate([per_gate(params["w_ih_l1"]),
                          per_gate(params["w_hh_l1"])], axis=1)        # [4,2H,H]

    return {
        "tbl0": tbl0.astype(mxu_dtype),
        "b0": (params["b_ih_l0"] + params["b_hh_l0"])
              .reshape(1, H4).astype(jnp.float32),
        "w0": w0.astype(mxu_dtype),
        "w1": w1.astype(mxu_dtype),
        "b1": (params["b_ih_l1"] + params["b_hh_l1"])
              .reshape(4, 1, H).astype(jnp.float32),
        "wfc": params["w_fc"].reshape(1, H).astype(jnp.float32),
        "bfc": params["b_fc"].reshape(1, 1).astype(jnp.float32),
    }


def sentiment_lstm_forward(x_ids, lengths, prepped):
    """Per-call work is the pallas_call plus a tiny int32 id reorder only."""
    B, T = x_ids.shape
    H = prepped["wfc"].shape[1]
    H4 = 4 * H

    # Time-major ids (T*B int32s = 256 B here); all float activations are
    # produced inside the kernel, so no [B,T,E] HBM round-trips remain.
    ids_tm = jnp.transpose(x_ids.astype(jnp.int32)).reshape(T * B, 1)
    lens = lengths.astype(jnp.int32).reshape(B, 1)

    out = pl.pallas_call(
        sentiment_lstm_kernel,
        out_shape=jax.ShapeDtypeStruct((B, 1), jnp.float32),
        in_specs=[pl.BlockSpec(memory_space=pltpu.MemorySpace.VMEM)] * 9,
        out_specs=pl.BlockSpec(memory_space=pltpu.MemorySpace.VMEM),
        # gx0 scratch: T*B x 4H f32 (32 KiB at these shapes).
        # TODO(synk): at production T*B store gx0 in bf16 and/or tile the time
        # axis (pltpu.emit_pipeline) so it also fits v7x's 64 MiB VMEM.
        scratch_shapes=[pltpu.VMEM((T * B, H4), jnp.float32)],
        compiler_params=pltpu.CompilerParams(
            vmem_limit_bytes=32 * 1024 * 1024),
    )(ids_tm, lens, prepped["tbl0"], prepped["b0"], prepped["w0"],
      prepped["w1"], prepped["b1"], prepped["wfc"], prepped["bfc"])
    return out[:, 0]                                             # squeeze(-1)


def ref_forward(x_ids, lengths, params):
    """Pure-JAX reference with identical (eval-mode) semantics."""
    H = HIDDEN_DIM
    emb = jnp.take(params["embedding"], x_ids, axis=0)
    B, T, _ = emb.shape

    def cell(x, h, c, wih, whh, bih, bhh):
        gates = x @ wih.T + bih + h @ whh.T + bhh
        i = jax.nn.sigmoid(gates[:, :H]); f = jax.nn.sigmoid(gates[:, H:2 * H])
        g = jnp.tanh(gates[:, 2 * H:3 * H]); o = jax.nn.sigmoid(gates[:, 3 * H:])
        c = f * c + i * g
        return o * jnp.tanh(c), c

    h0 = c0 = h1 = c1 = jnp.zeros((B, H), jnp.float32)
    acc = jnp.zeros((B, H), jnp.float32)
    for t in range(T):
        valid = (lengths.reshape(B, 1) > t).astype(jnp.float32)
        nh0, nc0 = cell(emb[:, t], h0, c0, params["w_ih_l0"], params["w_hh_l0"],
                        params["b_ih_l0"], params["b_hh_l0"])
        nh1, nc1 = cell(nh0, h1, c1, params["w_ih_l1"], params["w_hh_l1"],
                        params["b_ih_l1"], params["b_hh_l1"])
        h0 = valid * nh0 + (1 - valid) * h0; c0 = valid * nc0 + (1 - valid) * c0
        h1 = valid * nh1 + (1 - valid) * h1; c1 = valid * nc1 + (1 - valid) * c1
        acc = acc + valid * nh1
    y = acc @ params["w_fc"].T + params["b_fc"]
    return y[:, 0]


def make_params(key, num_embeddings, E, H):
    ks = jax.random.split(key, 12)
    k = 1.0 / jnp.sqrt(H)
    u = lambda kk, shape: jax.random.uniform(kk, shape, jnp.float32, -k, k)
    return {
        "embedding": jax.random.normal(ks[0], (num_embeddings, E), jnp.float32),
        "w_ih_l0": u(ks[1], (4 * H, E)),
        "w_hh_l0": u(ks[2], (4 * H, H)),
        "b_ih_l0": u(ks[3], (4 * H,)),
        "b_hh_l0": u(ks[4], (4 * H,)),
        "w_ih_l1": u(ks[5], (4 * H, H)),
        "w_hh_l1": u(ks[6], (4 * H, H)),
        "b_ih_l1": u(ks[7], (4 * H,)),
        "b_hh_l1": u(ks[8], (4 * H,)),
        "w_fc": u(ks[9], (1, H)),
        "b_fc": u(ks[10], (1,)),
    }


if __name__ == "__main__":
    key = jax.random.PRNGKey(0)
    k_par, k_x, k_l = jax.random.split(key, 3)

    NUM_EMBEDDINGS = 50
    B, T = 8, 8
    E, H = EMBEDDING_DIM_LSTM, HIDDEN_DIM

    params = make_params(k_par, NUM_EMBEDDINGS, E, H)
    # One-time packing (per review: not part of the per-call forward path).
    # On v6e/v7x pass mxu_dtype=jnp.bfloat16 for full-rate bf16 MXU operands.
    prepped = prepare_params(params, mxu_dtype=jnp.float32)

    x_ids = jax.random.randint(k_x, (B, T), 0, NUM_EMBEDDINGS, dtype=jnp.int32)
    lengths = jax.random.randint(k_l, (B,), 1, T + 1, dtype=jnp.int32)

    y = jax.block_until_ready(sentiment_lstm_forward(x_ids, lengths, prepped))
    y_ref = jax.block_until_ready(ref_forward(x_ids, lengths, params))

    assert y.shape == (B,)
    assert jnp.allclose(y, y_ref, rtol=1e-3, atol=1e-3), (y, y_ref)
    print("KERNEL_OK")
</pallas_src>

<mosaic_0001>
module attributes {stable_mosaic.version = 11 : i64} {
  func.func @sentiment_lstm_kernel(%arg0: memref<64x1xi32, #tpu.memory_space<vmem>>, %arg1: memref<8x1xi32, #tpu.memory_space<vmem>>, %arg2: memref<56x128xf32, #tpu.memory_space<vmem>>, %arg3: memref<1x128xf32, #tpu.memory_space<vmem>>, %arg4: memref<4x32x32xf32, #tpu.memory_space<vmem>>, %arg5: memref<4x64x32xf32, #tpu.memory_space<vmem>>, %arg6: memref<4x1x32xf32, #tpu.memory_space<vmem>>, %arg7: memref<1x32xf32, #tpu.memory_space<vmem>>, %arg8: memref<1x1xf32, #tpu.memory_space<vmem>>, %arg9: memref<8x1xf32, #tpu.memory_space<vmem>>, %arg10: memref<64x128xf32, #tpu.memory_space<vmem>>) attributes {dimension_semantics = [], scalar_prefetch = 0 : i64, scratch_operands = 1 : i64, tpu.core_type = #tpu.core_type<tc>} {
    %0 = tpu.iota {dimensions = array<i32: 1>} : vector<64x56xi32>
    %c0 = arith.constant 0 : index
    %c0_0 = arith.constant 0 : index
    %1 = vector.load %arg0[%c0, %c0_0] : memref<64x1xi32, #tpu.memory_space<vmem>>, vector<64x1xi32>
    %2 = vector.broadcast %1 : vector<64x1xi32> to vector<64x56xi32>
    %3 = arith.cmpi eq, %2, %0 : vector<64x56xi32>
    %cst = arith.constant 1.000000e+00 : f32
    %cst_1 = arith.constant 0.000000e+00 : f32
    %4 = vector.broadcast %cst : f32 to vector<64x56xf32>
    %5 = vector.broadcast %cst_1 : f32 to vector<64x56xf32>
    %6 = arith.select %3, %4, %5 : vector<64x56xi1>, vector<64x56xf32>
    %c0_2 = arith.constant 0 : index
    %c0_3 = arith.constant 0 : index
    %7 = vector.load %arg2[%c0_2, %c0_3] : memref<56x128xf32, #tpu.memory_space<vmem>>, vector<56x128xf32>
    %cst_4 = arith.constant dense<0.000000e+00> : vector<64x128xf32>
    %8 = tpu.matmul %6, %7, %cst_4 {dimension_numbers = #tpu.dot_dimension_numbers<[1], [0], [0], [1], [0, 0, 1, 1], [], []>} : vector<64x56xf32>, vector<56x128xf32>, vector<64x128xf32> -> vector<64x128xf32>
    %c0_5 = arith.constant 0 : index
    %c0_6 = arith.constant 0 : index
    %9 = vector.load %arg3[%c0_5, %c0_6] : memref<1x128xf32, #tpu.memory_space<vmem>>, vector<1x128xf32>
    %10 = vector.broadcast %9 : vector<1x128xf32> to vector<64x128xf32>
    %11 = arith.addf %8, %10 : vector<64x128xf32>
    %c0_7 = arith.constant 0 : index
    %c0_8 = arith.constant 0 : index
    %12 = vector.load %arg10[%c0_7, %c0_8] : memref<64x128xf32, #tpu.memory_space<vmem>>, vector<64x128xf32>
    tpu.vector_store %arg10[%c0_7, %c0_8], %11 {strides = array<i32>} : memref<64x128xf32, #tpu.memory_space<vmem>>, vector<64x128xf32>,
    %c0_9 = arith.constant 0 : index
    %c0_10 = arith.constant 0 : index
    %13 = vector.load %arg1[%c0_9, %c0_10] : memref<8x1xi32, #tpu.memory_space<vmem>>, vector<8x1xi32>
    %c0_11 = arith.constant 0 : index
    %c0_12 = arith.constant 0 : index
    %c0_13 = arith.constant 0 : index
    %14 = vector.load %arg6[%c0_11, %c0_12, %c0_13] : memref<4x1x32xf32, #tpu.memory_space<vmem>>, vector<1x1x32xf32>
    %15 = vector.shape_cast %14 : vector<1x1x32xf32> to vector<1x32xf32>
    %16 = vector.shape_cast %15 : vector<1x32xf32> to vector<1x32xf32>
    %17 = vector.broadcast %16 : vector<1x32xf32> to vector<8x32xf32>
    %c1 = arith.constant 1 : index
    %c0_14 = arith.constant 0 : index
    %c0_15 = arith.constant 0 : index
    %18 = vector.load %arg6[%c1, %c0_14, %c0_15] : memref<4x1x32xf32, #tpu.memory_space<vmem>>, vector<1x1x32xf32>
    %19 = vector.shape_cast %18 : vector<1x1x32xf32> to vector<1x32xf32>
    %20 = vector.shape_cast %19 : vector<1x32xf32> to vector<1x32xf32>
    %21 = vector.broadcast %20 : vector<1x32xf32> to vector<8x32xf32>
    %c2 = arith.constant 2 : index
    %c0_16 = arith.constant 0 : index
    %c0_17 = arith.constant 0 : index
    %22 = vector.load %arg6[%c2, %c0_16, %c0_17] : memref<4x1x32xf32, #tpu.memory_space<vmem>>, vector<1x1x32xf32>
    %23 = vector.shape_cast %22 : vector<1x1x32xf32> to vector<1x32xf32>
    %24 = vector.shape_cast %23 : vector<1x32xf32> to vector<1x32xf32>
    %25 = vector.broadcast %24 : vector<1x32xf32> to vector<8x32xf32>
    %c3 = arith.constant 3 : index
    %c0_18 = arith.constant 0 : index
    %c0_19 = arith.constant 0 : index
    %26 = vector.load %arg6[%c3, %c0_18, %c0_19] : memref<4x1x32xf32, #tpu.memory_space<vmem>>, vector<1x1x32xf32>
    %27 = vector.shape_cast %26 : vector<1x1x32xf32> to vector<1x32xf32>
    %28 = vector.shape_cast %27 : vector<1x32xf32> to vector<1x32xf32>
    %29 = vector.broadcast %28 : vector<1x32xf32> to vector<8x32xf32>
    %cst_20 = arith.constant 0.000000e+00 : f32
    %30 = vector.broadcast %cst_20 : f32 to vector<8x32xf32>
    %c0_i32 = arith.constant 0 : i32
    %c8_i32 = arith.constant 8 : i32
    %31 = arith.muli %c0_i32, %c8_i32 : i32
    %32 = tpu.assume_multiple %31, 8 : i32
    %33 = arith.index_cast %32 : i32 to index
    %c0_21 = arith.constant 0 : index
    %34 = vector.load %arg10[%33, %c0_21] : memref<64x128xf32, #tpu.memory_space<vmem>>, vector<8x128xf32>
    %35 = vector.extract_strided_slice %34 {offsets = [0, 0], sizes = [8, 32], strides = [1, 1]} : vector<8x128xf32> to vector<8x32xf32>
    %c0_22 = arith.constant 0 : index
    %c0_23 = arith.constant 0 : index
    %c0_24 = arith.constant 0 : index
    %36 = vector.load %arg4[%c0_22, %c0_23, %c0_24] : memref<4x32x32xf32, #tpu.memory_space<vmem>>, vector<1x32x32xf32>
    %37 = vector.shape_cast %36 : vector<1x32x32xf32> to vector<32x32xf32>
    %cst_25 = arith.constant dense<0.000000e+00> : vector<8x32xf32>
    %38 = tpu.matmul %30, %37, %cst_25 {dimension_numbers = #tpu.dot_dimension_numbers<[1], [0], [0], [1], [0, 0, 1, 1], [], []>} : vector<8x32xf32>, vector<32x32xf32>, vector<8x32xf32> -> vector<8x32xf32>
    %39 = arith.addf %35, %38 : vector<8x32xf32>
    %40 = vector.extract_strided_slice %34 {offsets = [0, 32], sizes = [8, 32], strides = [1, 1]} : vector<8x128xf32> to vector<8x32xf32>
    %c1_26 = arith.constant 1 : index
    %c0_27 = arith.constant 0 : index
    %c0_28 = arith.constant 0 : index
    %41 = vector.load %arg4[%c1_26, %c0_27, %c0_28] : memref<4x32x32xf32, #tpu.memory_space<vmem>>, vector<1x32x32xf32>
    %42 = vector.shape_cast %41 : vector<1x32x32xf32> to vector<32x32xf32>
    %cst_29 = arith.constant dense<0.000000e+00> : vector<8x32xf32>
    %43 = tpu.matmul %30, %42, %cst_29 {dimension_numbers = #tpu.dot_dimension_numbers<[1], [0], [0], [1], [0, 0, 1, 1], [], []>} : vector<8x32xf32>, vector<32x32xf32>, vector<8x32xf32> -> vector<8x32xf32>
    %44 = arith.addf %40, %43 : vector<8x32xf32>
    %45 = vector.extract_strided_slice %34 {offsets = [0, 64], sizes = [8, 32], strides = [1, 1]} : vector<8x128xf32> to vector<8x32xf32>
    %c2_30 = arith.constant 2 : index
    %c0_31 = arith.constant 0 : index
    %c0_32 = arith.constant 0 : index
    %46 = vector.load %arg4[%c2_30, %c0_31, %c0_32] : memref<4x32x32xf32, #tpu.memory_space<vmem>>, vector<1x32x32xf32>
    %47 = vector.shape_cast %46 : vector<1x32x32xf32> to vector<32x32xf32>
    %cst_33 = arith.constant dense<0.000000e+00> : vector<8x32xf32>
    %48 = tpu.matmul %30, %47, %cst_33 {dimension_numbers = #tpu.dot_dimension_numbers<[1], [0], [0], [1], [0, 0, 1, 1], [], []>} : vector<8x32xf32>, vector<32x32xf32>, vector<8x32xf32> -> vector<8x32xf32>
    %49 = arith.addf %45, %48 : vector<8x32xf32>
    %50 = vector.extract_strided_slice %34 {offsets = [0, 96], sizes = [8, 32], strides = [1, 1]} : vector<8x128xf32> to vector<8x32xf32>
    %c3_34 = arith.constant 3 : index
    %c0_35 = arith.constant 0 : index
    %c0_36 = arith.constant 0 : index
    %51 = vector.load %arg4[%c3_34, %c0_35, %c0_36] : memref<4x32x32xf32, #tpu.memory_space<vmem>>, vector<1x32x32xf32>
    %52 = vector.shape_cast %51 : vector<1x32x32xf32> to vector<32x32xf32>
    %cst_37 = arith.constant dense<0.000000e+00> : vector<8x32xf32>
    %53 = tpu.matmul %30, %52, %cst_37 {dimension_numbers = #tpu.dot_dimension_numbers<[1], [0], [0], [1], [0, 0, 1, 1], [], []>} : vector<8x32xf32>, vector<32x32xf32>, vector<8x32xf32> -> vector<8x32xf32>
    %54 = arith.addf %50, %53 : vector<8x32xf32>
    %55 = arith.negf %39 : vector<8x32xf32>
    %56 = math.exp %55 : vector<8x32xf32>
    %cst_38 = arith.constant 1.000000e+00 : f32
    %57 = vector.broadcast %cst_38 : f32 to vector<8x32xf32>
    %58 = arith.addf %57, %56 : vector<8x32xf32>
    %59 = arith.divf %57, %58 : vector<8x32xf32>
    %60 = arith.negf %44 : vector<8x32xf32>
    %61 = math.exp %60 : vector<8x32xf32>
    %cst_39 = arith.constant 1.000000e+00 : f32
    %62 = vector.broadcast %cst_39 : f32 to vector<8x32xf32>
    %63 = arith.addf %62, %61 : vector<8x32xf32>
    %64 = arith.divf %62, %63 : vector<8x32xf32>
    %65 = math.tanh %49 : vector<8x32xf32>
    %66 = arith.negf %54 : vector<8x32xf32>
    %67 = math.exp %66 : vector<8x32xf32>
    %cst_40 = arith.constant 1.000000e+00 : f32
    %68 = vector.broadcast %cst_40 : f32 to vector<8x32xf32>
    %69 = arith.addf %68, %67 : vector<8x32xf32>
    %70 = arith.divf %68, %69 : vector<8x32xf32>
    %71 = arith.mulf %64, %30 : vector<8x32xf32>
    %72 = arith.mulf %59, %65 : vector<8x32xf32>
    %73 = arith.addf %71, %72 : vector<8x32xf32>
    %74 = math.tanh %73 : vector<8x32xf32>
    %75 = arith.mulf %70, %74 : vector<8x32xf32>
    %76 = tpu.concatenate %75, %30 in 1 : vector<8x32xf32>, vector<8x32xf32> -> vector<8x64xf32>
    %c0_41 = arith.constant 0 : index
    %c0_42 = arith.constant 0 : index
    %c0_43 = arith.constant 0 : index
    %77 = vector.load %arg5[%c0_41, %c0_42, %c0_43] : memref<4x64x32xf32, #tpu.memory_space<vmem>>, vector<1x64x32xf32>
    %78 = vector.shape_cast %77 : vector<1x64x32xf32> to vector<64x32xf32>
    %cst_44 = arith.constant dense<0.000000e+00> : vector<8x32xf32>
    %79 = tpu.matmul %76, %78, %cst_44 {dimension_numbers = #tpu.dot_dimension_numbers<[1], [0], [0], [1], [0, 0, 1, 1], [], []>} : vector<8x64xf32>, vector<64x32xf32>, vector<8x32xf32> -> vector<8x32xf32>
    %80 = arith.addf %79, %17 : vector<8x32xf32>
    %c1_45 = arith.constant 1 : index
    %c0_46 = arith.constant 0 : index
    %c0_47 = arith.constant 0 : index
    %81 = vector.load %arg5[%c1_45, %c0_46, %c0_47] : memref<4x64x32xf32, #tpu.memory_space<vmem>>, vector<1x64x32xf32>
    %82 = vector.shape_cast %81 : vector<1x64x32xf32> to vector<64x32xf32>
    %cst_48 = arith.constant dense<0.000000e+00> : vector<8x32xf32>
    %83 = tpu.matmul %76, %82, %cst_48 {dimension_numbers = #tpu.dot_dimension_numbers<[1], [0], [0], [1], [0, 0, 1, 1], [], []>} : vector<8x64xf32>, vector<64x32xf32>, vector<8x32xf32> -> vector<8x32xf32>
    %84 = arith.addf %83, %21 : vector<8x32xf32>
    %c2_49 = arith.constant 2 : index
    %c0_50 = arith.constant 0 : index
    %c0_51 = arith.constant 0 : index
    %85 = vector.load %arg5[%c2_49, %c0_50, %c0_51] : memref<4x64x32xf32, #tpu.memory_space<vmem>>, vector<1x64x32xf32>
    %86 = vector.shape_cast %85 : vector<1x64x32xf32> to vector<64x32xf32>
    %cst_52 = arith.constant dense<0.000000e+00> : vector<8x32xf32>
    %87 = tpu.matmul %76, %86, %cst_52 {dimension_numbers = #tpu.dot_dimension_numbers<[1], [0], [0], [1], [0, 0, 1, 1], [], []>} : vector<8x64xf32>, vector<64x32xf32>, vector<8x32xf32> -> vector<8x32xf32>
    %88 = arith.addf %87, %25 : vector<8x32xf32>
    %c3_53 = arith.constant 3 : index
    %c0_54 = arith.constant 0 : index
    %c0_55 = arith.constant 0 : index
    %89 = vector.load %arg5[%c3_53, %c0_54, %c0_55] : memref<4x64x32xf32, #tpu.memory_space<vmem>>, vector<1x64x32xf32>
    %90 = vector.shape_cast %89 : vector<1x64x32xf32> to vector<64x32xf32>
    %cst_56 = arith.constant dense<0.000000e+00> : vector<8x32xf32>
    %91 = tpu.matmul %76, %90, %cst_56 {dimension_numbers = #tpu.dot_dimension_numbers<[1], [0], [0], [1], [0, 0, 1, 1], [], []>} : vector<8x64xf32>, vector<64x32xf32>, vector<8x32xf32> -> vector<8x32xf32>
    %92 = arith.addf %91, %29 : vector<8x32xf32>
    %93 = arith.negf %80 : vector<8x32xf32>
    %94 = math.exp %93 : vector<8x32xf32>
    %cst_57 = arith.constant 1.000000e+00 : f32
    %95 = vector.broadcast %cst_57 : f32 to vector<8x32xf32>
    %96 = arith.addf %95, %94 : vector<8x32xf32>
    %97 = arith.divf %95, %96 : vector<8x32xf32>
    %98 = arith.negf %84 : vector<8x32xf32>
    %99 = math.exp %98 : vector<8x32xf32>
    %cst_58 = arith.constant 1.000000e+00 : f32
    %100 = vector.broadcast %cst_58 : f32 to vector<8x32xf32>
    %101 = arith.addf %100, %99 : vector<8x32xf32>
    %102 = arith.divf %100, %101 : vector<8x32xf32>
    %103 = math.tanh %88 : vector<8x32xf32>
    %104 = arith.negf %92 : vector<8x32xf32>
    %105 = math.exp %104 : vector<8x32xf32>
    %cst_59 = arith.constant 1.000000e+00 : f32
    %106 = vector.broadcast %cst_59 : f32 to vector<8x32xf32>
    %107 = arith.addf %106, %105 : vector<8x32xf32>
    %108 = arith.divf %106, %107 : vector<8x32xf32>
    %109 = arith.mulf %102, %30 : vector<8x32xf32>
    %110 = arith.mulf %97, %103 : vector<8x32xf32>
    %111 = arith.addf %109, %110 : vector<8x32xf32>
    %112 = math.tanh %111 : vector<8x32xf32>
    %113 = arith.mulf %108, %112 : vector<8x32xf32>
    %114 = vector.broadcast %c0_i32 : i32 to vector<8x1xi32>
    %115 = arith.cmpi sgt, %13, %114 : vector<8x1xi32>
    %116 = vector.shape_cast %115 : vector<8x1xi1> to vector<8x1xi1>
    %117 = vector.broadcast %116 : vector<8x1xi1> to vector<8x32xi1>
    %118 = arith.select %117, %75, %30 : vector<8x32xi1>, vector<8x32xf32>
    %119 = arith.select %117, %73, %30 : vector<8x32xi1>, vector<8x32xf32>
    %120 = arith.select %117, %113, %30 : vector<8x32xi1>, vector<8x32xf32>
    %121 = arith.select %117, %111, %30 : vector<8x32xi1>, vector<8x32xf32>
    %122 = arith.select %117, %113, %30 : vector<8x32xi1>, vector<8x32xf32>
    %123 = arith.addf %30, %122 : vector<8x32xf32>
    %c1_i32 = arith.constant 1 : i32
    %c8_i32_60 = arith.constant 8 : i32
    %124 = arith.muli %c1_i32, %c8_i32_60 : i32
    %125 = tpu.assume_multiple %124, 8 : i32
    %126 = arith.index_cast %125 : i32 to index
    %c0_61 = arith.constant 0 : index
    %127 = vector.load %arg10[%126, %c0_61] : memref<64x128xf32, #tpu.memory_space<vmem>>, vector<8x128xf32>
    %128 = vector.extract_strided_slice %127 {offsets = [0, 0], sizes = [8, 32], strides = [1, 1]} : vector<8x128xf32> to vector<8x32xf32>
    %c0_62 = arith.constant 0 : index
    %c0_63 = arith.constant 0 : index
    %c0_64 = arith.constant 0 : index
    %129 = vector.load %arg4[%c0_62, %c0_63, %c0_64] : memref<4x32x32xf32, #tpu.memory_space<vmem>>, vector<1x32x32xf32>
    %130 = vector.shape_cast %129 : vector<1x32x32xf32> to vector<32x32xf32>
    %cst_65 = arith.constant dense<0.000000e+00> : vector<8x32xf32>
    %131 = tpu.matmul %118, %130, %cst_65 {dimension_numbers = #tpu.dot_dimension_numbers<[1], [0], [0], [1], [0, 0, 1, 1], [], []>} : vector<8x32xf32>, vector<32x32xf32>, vector<8x32xf32> -> vector<8x32xf32>
    %132 = arith.addf %128, %131 : vector<8x32xf32>
    %133 = vector.extract_strided_slice %127 {offsets = [0, 32], sizes = [8, 32], strides = [1, 1]} : vector<8x128xf32> to vector<8x32xf32>
    %c1_66 = arith.constant 1 : index
    %c0_67 = arith.constant 0 : index
    %c0_68 = arith.constant 0 : index
    %134 = vector.load %arg4[%c1_66, %c0_67, %c0_68] : memref<4x32x32xf32, #tpu.memory_space<vmem>>, vector<1x32x32xf32>
    %135 = vector.shape_cast %134 : vector<1x32x32xf32> to vector<32x32xf32>
    %cst_69 = arith.constant dense<0.000000e+00> : vector<8x32xf32>
    %136 = tpu.matmul %118, %135, %cst_69 {dimension_numbers = #tpu.dot_dimension_numbers<[1], [0], [0], [1], [0, 0, 1, 1], [], []>} : vector<8x32xf32>, vector<32x32xf32>, vector<8x32xf32> -> vector<8x32xf32>
    %137 = arith.addf %133, %136 : vector<8x32xf32>
    %138 = vector.extract_strided_slice %127 {offsets = [0, 64], sizes = [8, 32], strides = [1, 1]} : vector<8x128xf32> to vector<8x32xf32>
    %c2_70 = arith.constant 2 : index
    %c0_71 = arith.constant 0 : index
    %c0_72 = arith.constant 0 : index
    %139 = vector.load %arg4[%c2_70, %c0_71, %c0_72] : memref<4x32x32xf32, #tpu.memory_space<vmem>>, vector<1x32x32xf32>
    %140 = vector.shape_cast %139 : vector<1x32x32xf32> to vector<32x32xf32>
    %cst_73 = arith.constant dense<0.000000e+00> : vector<8x32xf32>
    %141 = tpu.matmul %118, %140, %cst_73 {dimension_numbers = #tpu.dot_dimension_numbers<[1], [0], [0], [1], [0, 0, 1, 1], [], []>} : vector<8x32xf32>, vector<32x32xf32>, vector<8x32xf32> -> vector<8x32xf32>
    %142 = arith.addf %138, %141 : vector<8x32xf32>
    %143 = vector.extract_strided_slice %127 {offsets = [0, 96], sizes = [8, 32], strides = [1, 1]} : vector<8x128xf32> to vector<8x32xf32>
    %c3_74 = arith.constant 3 : index
    %c0_75 = arith.constant 0 : index
    %c0_76 = arith.constant 0 : index
    %144 = vector.load %arg4[%c3_74, %c0_75, %c0_76] : memref<4x32x32xf32, #tpu.memory_space<vmem>>, vector<1x32x32xf32>
    %145 = vector.shape_cast %144 : vector<1x32x32xf32> to vector<32x32xf32>
    %cst_77 = arith.constant dense<0.000000e+00> : vector<8x32xf32>
    %146 = tpu.matmul %118, %145, %cst_77 {dimension_numbers = #tpu.dot_dimension_numbers<[1], [0], [0], [1], [0, 0, 1, 1], [], []>} : vector<8x32xf32>, vector<32x32xf32>, vector<8x32xf32> -> vector<8x32xf32>
    %147 = arith.addf %143, %146 : vector<8x32xf32>
    %148 = arith.negf %132 : vector<8x32xf32>
    %149 = math.exp %148 : vector<8x32xf32>
    %cst_78 = arith.constant 1.000000e+00 : f32
    %150 = vector.broadcast %cst_78 : f32 to vector<8x32xf32>
    %151 = arith.addf %150, %149 : vector<8x32xf32>
    %152 = arith.divf %150, %151 : vector<8x32xf32>
    %153 = arith.negf %137 : vector<8x32xf32>
    %154 = math.exp %153 : vector<8x32xf32>
    %cst_79 = arith.constant 1.000000e+00 : f32
    %155 = vector.broadcast %cst_79 : f32 to vector<8x32xf32>
    %156 = arith.addf %155, %154 : vector<8x32xf32>
    %157 = arith.divf %155, %156 : vector<8x32xf32>
    %158 = math.tanh %142 : vector<8x32xf32>
    %159 = arith.negf %147 : vector<8x32xf32>
    %160 = math.exp %159 : vector<8x32xf32>
    %cst_80 = arith.constant 1.000000e+00 : f32
    %161 = vector.broadcast %cst_80 : f32 to vector<8x32xf32>
    %162 = arith.addf %161, %160 : vector<8x32xf32>
    %163 = arith.divf %161, %162 : vector<8x32xf32>
    %164 = arith.mulf %157, %119 : vector<8x32xf32>
    %165 = arith.mulf %152, %158 : vector<8x32xf32>
    %166 = arith.addf %164, %165 : vector<8x32xf32>
    %167 = math.tanh %166 : vector<8x32xf32>
    %168 = arith.mulf %163, %167 : vector<8x32xf32>
    %169 = tpu.concatenate %168, %120 in 1 : vector<8x32xf32>, vector<8x32xf32> -> vector<8x64xf32>
    %c0_81 = arith.constant 0 : index
    %c0_82 = arith.constant 0 : index
    %c0_83 = arith.constant 0 : index
    %170 = vector.load %arg5[%c0_81, %c0_82, %c0_83] : memref<4x64x32xf32, #tpu.memory_space<vmem>>, vector<1x64x32xf32>
    %171 = vector.shape_cast %170 : vector<1x64x32xf32> to vector<64x32xf32>
    %cst_84 = arith.constant dense<0.000000e+00> : vector<8x32xf32>
    %172 = tpu.matmul %169, %171, %cst_84 {dimension_numbers = #tpu.dot_dimension_numbers<[1], [0], [0], [1], [0, 0, 1, 1], [], []>} : vector<8x64xf32>, vector<64x32xf32>, vector<8x32xf32> -> vector<8x32xf32>
    %173 = arith.addf %172, %17 : vector<8x32xf32>
    %c1_85 = arith.constant 1 : index
    %c0_86 = arith.constant 0 : index
    %c0_87 = arith.constant 0 : index
    %174 = vector.load %arg5[%c1_85, %c0_86, %c0_87] : memref<4x64x32xf32, #tpu.memory_space<vmem>>, vector<1x64x32xf32>
    %175 = vector.shape_cast %174 : vector<1x64x32xf32> to vector<64x32xf32>
    %cst_88 = arith.constant dense<0.000000e+00> : vector<8x32xf32>
    %176 = tpu.matmul %169, %175, %cst_88 {dimension_numbers = #tpu.dot_dimension_numbers<[1], [0], [0], [1], [0, 0, 1, 1], [], []>} : vector<8x64xf32>, vector<64x32xf32>, vector<8x32xf32> -> vector<8x32xf32>
    %177 = arith.addf %176, %21 : vector<8x32xf32>
    %c2_89 = arith.constant 2 : index
    %c0_90 = arith.constant 0 : index
    %c0_91 = arith.constant 0 : index
    %178 = vector.load %arg5[%c2_89, %c0_90, %c0_91] : memref<4x64x32xf32, #tpu.memory_space<vmem>>, vector<1x64x32xf32>
    %179 = vector.shape_cast %178 : vector<1x64x32xf32> to vector<64x32xf32>
    %cst_92 = arith.constant dense<0.000000e+00> : vector<8x32xf32>
    %180 = tpu.matmul %169, %179, %cst_92 {dimension_numbers = #tpu.dot_dimension_numbers<[1], [0], [0], [1], [0, 0, 1, 1], [], []>} : vector<8x64xf32>, vector<64x32xf32>, vector<8x32xf32> -> vector<8x32xf32>
    %181 = arith.addf %180, %25 : vector<8x32xf32>
    %c3_93 = arith.constant 3 : index
    %c0_94 = arith.constant 0 : index
    %c0_95 = arith.constant 0 : index
    %182 = vector.load %arg5[%c3_93, %c0_94, %c0_95] : memref<4x64x32xf32, #tpu.memory_space<vmem>>, vector<1x64x32xf32>
    %183 = vector.shape_cast %182 : vector<1x64x32xf32> to vector<64x32xf32>
    %cst_96 = arith.constant dense<0.000000e+00> : vector<8x32xf32>
    %184 = tpu.matmul %169, %183, %cst_96 {dimension_numbers = #tpu.dot_dimension_numbers<[1], [0], [0], [1], [0, 0, 1, 1], [], []>} : vector<8x64xf32>, vector<64x32xf32>, vector<8x32xf32> -> vector<8x32xf32>
    %185 = arith.addf %184, %29 : vector<8x32xf32>
    %186 = arith.negf %173 : vector<8x32xf32>
    %187 = math.exp %186 : vector<8x32xf32>
    %cst_97 = arith.constant 1.000000e+00 : f32
    %188 = vector.broadcast %cst_97 : f32 to vector<8x32xf32>
    %189 = arith.addf %188, %187 : vector<8x32xf32>
    %190 = arith.divf %188, %189 : vector<8x32xf32>
    %191 = arith.negf %177 : vector<8x32xf32>
    %192 = math.exp %191 : vector<8x32xf32>
    %cst_98 = arith.constant 1.000000e+00 : f32
    %193 = vector.broadcast %cst_98 : f32 to vector<8x32xf32>
    %194 = arith.addf %193, %192 : vector<8x32xf32>
    %195 = arith.divf %193, %194 : vector<8x32xf32>
    %196 = math.tanh %181 : vector<8x32xf32>
    %197 = arith.negf %185 : vector<8x32xf32>
    %198 = math.exp %197 : vector<8x32xf32>
    %cst_99 = arith.constant 1.000000e+00 : f32
    %199 = vector.broadcast %cst_99 : f32 to vector<8x32xf32>
    %200 = arith.addf %199, %198 : vector<8x32xf32>
    %201 = arith.divf %199, %200 : vector<8x32xf32>
    %202 = arith.mulf %195, %121 : vector<8x32xf32>
    %203 = arith.mulf %190, %196 : vector<8x32xf32>
    %204 = arith.addf %202, %203 : vector<8x32xf32>
    %205 = math.tanh %204 : vector<8x32xf32>
    %206 = arith.mulf %201, %205 : vector<8x32xf32>
    %207 = vector.broadcast %c1_i32 : i32 to vector<8x1xi32>
    %208 = arith.cmpi sgt, %13, %207 : vector<8x1xi32>
    %209 = vector.shape_cast %208 : vector<8x1xi1> to vector<8x1xi1>
    %210 = vector.broadcast %209 : vector<8x1xi1> to vector<8x32xi1>
    %211 = arith.select %210, %168, %118 : vector<8x32xi1>, vector<8x32xf32>
    %212 = arith.select %210, %166, %119 : vector<8x32xi1>, vector<8x32xf32>
    %213 = arith.select %210, %206, %120 : vector<8x32xi1>, vector<8x32xf32>
    %214 = arith.select %210, %204, %121 : vector<8x32xi1>, vector<8x32xf32>
    %215 = arith.select %210, %206, %30 : vector<8x32xi1>, vector<8x32xf32>
    %216 = arith.addf %123, %215 : vector<8x32xf32>
    %c2_i32 = arith.constant 2 : i32
    %c8_i32_100 = arith.constant 8 : i32
    %217 = arith.muli %c2_i32, %c8_i32_100 : i32
    %218 = tpu.assume_multiple %217, 8 : i32
    %219 = arith.index_cast %218 : i32 to index
    %c0_101 = arith.constant 0 : index
    %220 = vector.load %arg10[%219, %c0_101] : memref<64x128xf32, #tpu.memory_space<vmem>>, vector<8x128xf32>
    %221 = vector.extract_strided_slice %220 {offsets = [0, 0], sizes = [8, 32], strides = [1, 1]} : vector<8x128xf32> to vector<8x32xf32>
    %c0_102 = arith.constant 0 : index
    %c0_103 = arith.constant 0 : index
    %c0_104 = arith.constant 0 : index
    %222 = vector.load %arg4[%c0_102, %c0_103, %c0_104] : memref<4x32x32xf32, #tpu.memory_space<vmem>>, vector<1x32x32xf32>
    %223 = vector.shape_cast %222 : vector<1x32x32xf32> to vector<32x32xf32>
    %cst_105 = arith.constant dense<0.000000e+00> : vector<8x32xf32>
    %224 = tpu.matmul %211, %223, %cst_105 {dimension_numbers = #tpu.dot_dimension_numbers<[1], [0], [0], [1], [0, 0, 1, 1], [], []>} : vector<8x32xf32>, vector<32x32xf32>, vector<8x32xf32> -> vector<8x32xf32>
    %225 = arith.addf %221, %224 : vector<8x32xf32>
    %226 = vector.extract_strided_slice %220 {offsets = [0, 32], sizes = [8, 32], strides = [1, 1]} : vector<8x128xf32> to vector<8x32xf32>
    %c1_106 = arith.constant 1 : index
    %c0_107 = arith.constant 0 : index
    %c0_108 = arith.constant 0 : index
    %227 = vector.load %arg4[%c1_106, %c0_107, %c0_108] : memref<4x32x32xf32, #tpu.memory_space<vmem>>, vector<1x32x32xf32>
    %228 = vector.shape_cast %227 : vector<1x32x32xf32> to vector<32x32xf32>
    %cst_109 = arith.constant dense<0.000000e+00> : vector<8x32xf32>
    %229 = tpu.matmul %211, %228, %cst_109 {dimension_numbers = #tpu.dot_dimension_numbers<[1], [0], [0], [1], [0, 0, 1, 1], [], []>} : vector<8x32xf32>, vector<32x32xf32>, vector<8x32xf32> -> vector<8x32xf32>
    %230 = arith.addf %226, %229 : vector<8x32xf32>
    %231 = vector.extract_strided_slice %220 {offsets = [0, 64], sizes = [8, 32], strides = [1, 1]} : vector<8x128xf32> to vector<8x32xf32>
    %c2_110 = arith.constant 2 : index
    %c0_111 = arith.constant 0 : index
    %c0_112 = arith.constant 0 : index
    %232 = vector.load %arg4[%c2_110, %c0_111, %c0_112] : memref<4x32x32xf32, #tpu.memory_space<vmem>>, vector<1x32x32xf32>
    %233 = vector.shape_cast %232 : vector<1x32x32xf32> to vector<32x32xf32>
    %cst_113 = arith.constant dense<0.000000e+00> : vector<8x32xf32>
    %234 = tpu.matmul %211, %233, %cst_113 {dimension_numbers = #tpu.dot_dimension_numbers<[1], [0], [0], [1], [0, 0, 1, 1], [], []>} : vector<8x32xf32>, vector<32x32xf32>, vector<8x32xf32> -> vector<8x32xf32>
    %235 = arith.addf %231, %234 : vector<8x32xf32>
    %236 = vector.extract_strided_slice %220 {offsets = [0, 96], sizes = [8, 32], strides = [1, 1]} : vector<8x128xf32> to vector<8x32xf32>
    %c3_114 = arith.constant 3 : index
    %c0_115 = arith.constant 0 : index
    %c0_116 = arith.constant 0 : index
    %237 = vector.load %arg4[%c3_114, %c0_115, %c0_116] : memref<4x32x32xf32, #tpu.memory_space<vmem>>, vector<1x32x32xf32>
    %238 = vector.shape_cast %237 : vector<1x32x32xf32> to vector<32x32xf32>
    %cst_117 = arith.constant dense<0.000000e+00> : vector<8x32xf32>
    %239 = tpu.matmul %211, %238, %cst_117 {dimension_numbers = #tpu.dot_dimension_numbers<[1], [0], [0], [1], [0, 0, 1, 1], [], []>} : vector<8x32xf32>, vector<32x32xf32>, vector<8x32xf32> -> vector<8x32xf32>
    %240 = arith.addf %236, %239 : vector<8x32xf32>
    %241 = arith.negf %225 : vector<8x32xf32>
    %242 = math.exp %241 : vector<8x32xf32>
    %cst_118 = arith.constant 1.000000e+00 : f32
    %243 = vector.broadcast %cst_118 : f32 to vector<8x32xf32>
    %244 = arith.addf %243, %242 : vector<8x32xf32>
    %245 = arith.divf %243, %244 : vector<8x32xf32>
    %246 = arith.negf %230 : vector<8x32xf32>
    %247 = math.exp %246 : vector<8x32xf32>
    %cst_119 = arith.constant 1.000000e+00 : f32
    %248 = vector.broadcast %cst_119 : f32 to vector<8x32xf32>
    %249 = arith.addf %248, %247 : vector<8x32xf32>
    %250 = arith.divf %248, %249 : vector<8x32xf32>
    %251 = math.tanh %235 : vector<8x32xf32>
    %252 = arith.negf %240 : vector<8x32xf32>
    %253 = math.exp %252 : vector<8x32xf32>
    %cst_120 = arith.constant 1.000000e+00 : f32
    %254 = vector.broadcast %cst_120 : f32 to vector<8x32xf32>
    %255 = arith.addf %254, %253 : vector<8x32xf32>
    %256 = arith.divf %254, %255 : vector<8x32xf32>
    %257 = arith.mulf %250, %212 : vector<8x32xf32>
    %258 = arith.mulf %245, %251 : vector<8x32xf32>
    %259 = arith.addf %257, %258 : vector<8x32xf32>
    %260 = math.tanh %259 : vector<8x32xf32>
    %261 = arith.mulf %256, %260 : vector<8x32xf32>
    %262 = tpu.concatenate %261, %213 in 1 : vector<8x32xf32>, vector<8x32xf32> -> vector<8x64xf32>
    %c0_121 = arith.constant 0 : index
    %c0_122 = arith.constant 0 : index
    %c0_123 = arith.constant 0 : index
    %263 = vector.load %arg5[%c0_121, %c0_122, %c0_123] : memref<4x64x32xf32, #tpu.memory_space<vmem>>, vector<1x64x32xf32>
    %264 = vector.shape_cast %263 : vector<1x64x32xf32> to vector<64x32xf32>
    %cst_124 = arith.constant dense<0.000000e+00> : vector<8x32xf32>
    %265 = tpu.matmul %262, %264, %cst_124 {dimension_numbers = #tpu.dot_dimension_numbers<[1], [0], [0], [1], [0, 0, 1, 1], [], []>} : vector<8x64xf32>, vector<64x32xf32>, vector<8x32xf32> -> vector<8x32xf32>
    %266 = arith.addf %265, %17 : vector<8x32xf32>
    %c1_125 = arith.constant 1 : index
    %c0_126 = arith.constant 0 : index
    %c0_127 = arith.constant 0 : index
    %267 = vector.load %arg5[%c1_125, %c0_126, %c0_127] : memref<4x64x32xf32, #tpu.memory_space<vmem>>, vector<1x64x32xf32>
    %268 = vector.shape_cast %267 : vector<1x64x32xf32> to vector<64x32xf32>
    %cst_128 = arith.constant dense<0.000000e+00> : vector<8x32xf32>
    %269 = tpu.matmul %262, %268, %cst_128 {dimension_numbers = #tpu.dot_dimension_numbers<[1], [0], [0], [1], [0, 0, 1, 1], [], []>} : vector<8x64xf32>, vector<64x32xf32>, vector<8x32xf32> -> vector<8x32xf32>
    %270 = arith.addf %269, %21 : vector<8x32xf32>
    %c2_129 = arith.constant 2 : index
    %c0_130 = arith.constant 0 : index
    %c0_131 = arith.constant 0 : index
    %271 = vector.load %arg5[%c2_129, %c0_130, %c0_131] : memref<4x64x32xf32, #tpu.memory_space<vmem>>, vector<1x64x32xf32>
    %272 = vector.shape_cast %271 : vector<1x64x32xf32> to vector<64x32xf32>
    %cst_132 = arith.constant dense<0.000000e+00> : vector<8x32xf32>
    %273 = tpu.matmul %262, %272, %cst_132 {dimension_numbers = #tpu.dot_dimension_numbers<[1], [0], [0], [1], [0, 0, 1, 1], [], []>} : vector<8x64xf32>, vector<64x32xf32>, vector<8x32xf32> -> vector<8x32xf32>
    %274 = arith.addf %273, %25 : vector<8x32xf32>
    %c3_133 = arith.constant 3 : index
    %c0_134 = arith.constant 0 : index
    %c0_135 = arith.constant 0 : index
    %275 = vector.load %arg5[%c3_133, %c0_134, %c0_135] : memref<4x64x32xf32, #tpu.memory_space<vmem>>, vector<1x64x32xf32>
    %276 = vector.shape_cast %275 : vector<1x64x32xf32> to vector<64x32xf32>
    %cst_136 = arith.constant dense<0.000000e+00> : vector<8x32xf32>
    %277 = tpu.matmul %262, %276, %cst_136 {dimension_numbers = #tpu.dot_dimension_numbers<[1], [0], [0], [1], [0, 0, 1, 1], [], []>} : vector<8x64xf32>, vector<64x32xf32>, vector<8x32xf32> -> vector<8x32xf32>
    %278 = arith.addf %277, %29 : vector<8x32xf32>
    %279 = arith.negf %266 : vector<8x32xf32>
    %280 = math.exp %279 : vector<8x32xf32>
    %cst_137 = arith.constant 1.000000e+00 : f32
    %281 = vector.broadcast %cst_137 : f32 to vector<8x32xf32>
    %282 = arith.addf %281, %280 : vector<8x32xf32>
    %283 = arith.divf %281, %282 : vector<8x32xf32>
    %284 = arith.negf %270 : vector<8x32xf32>
    %285 = math.exp %284 : vector<8x32xf32>
    %cst_138 = arith.constant 1.000000e+00 : f32
    %286 = vector.broadcast %cst_138 : f32 to vector<8x32xf32>
    %287 = arith.addf %286, %285 : vector<8x32xf32>
    %288 = arith.divf %286, %287 : vector<8x32xf32>
    %289 = math.tanh %274 : vector<8x32xf32>
    %290 = arith.negf %278 : vector<8x32xf32>
    %291 = math.exp %290 : vector<8x32xf32>
    %cst_139 = arith.constant 1.000000e+00 : f32
    %292 = vector.broadcast %cst_139 : f32 to vector<8x32xf32>
    %293 = arith.addf %292, %291 : vector<8x32xf32>
    %294 = arith.divf %292, %293 : vector<8x32xf32>
    %295 = arith.mulf %288, %214 : vector<8x32xf32>
    %296 = arith.mulf %283, %289 : vector<8x32xf32>
    %297 = arith.addf %295, %296 : vector<8x32xf32>
    %298 = math.tanh %297 : vector<8x32xf32>
    %299 = arith.mulf %294, %298 : vector<8x32xf32>
    %300 = vector.broadcast %c2_i32 : i32 to vector<8x1xi32>
    %301 = arith.cmpi sgt, %13, %300 : vector<8x1xi32>
    %302 = vector.shape_cast %301 : vector<8x1xi1> to vector<8x1xi1>
    %303 = vector.broadcast %302 : vector<8x1xi1> to vector<8x32xi1>
    %304 = arith.select %303, %261, %211 : vector<8x32xi1>, vector<8x32xf32>
    %305 = arith.select %303, %259, %212 : vector<8x32xi1>, vector<8x32xf32>
    %306 = arith.select %303, %299, %213 : vector<8x32xi1>, vector<8x32xf32>
    %307 = arith.select %303, %297, %214 : vector<8x32xi1>, vector<8x32xf32>
    %308 = arith.select %303, %299, %30 : vector<8x32xi1>, vector<8x32xf32>
    %309 = arith.addf %216, %308 : vector<8x32xf32>
    %c3_i32 = arith.constant 3 : i32
    %c8_i32_140 = arith.constant 8 : i32
    %310 = arith.muli %c3_i32, %c8_i32_140 : i32
    %311 = tpu.assume_multiple %310, 8 : i32
    %312 = arith.index_cast %311 : i32 to index
    %c0_141 = arith.constant 0 : index
    %313 = vector.load %arg10[%312, %c0_141] : memref<64x128xf32, #tpu.memory_space<vmem>>, vector<8x128xf32>
    %314 = vector.extract_strided_slice %313 {offsets = [0, 0], sizes = [8, 32], strides = [1, 1]} : vector<8x128xf32> to vector<8x32xf32>
    %c0_142 = arith.constant 0 : index
    %c0_143 = arith.constant 0 : index
    %c0_144 = arith.constant 0 : index
    %315 = vector.load %arg4[%c0_142, %c0_143, %c0_144] : memref<4x32x32xf32, #tpu.memory_space<vmem>>, vector<1x32x32xf32>
    %316 = vector.shape_cast %315 : vector<1x32x32xf32> to vector<32x32xf32>
    %cst_145 = arith.constant dense<0.000000e+00> : vector<8x32xf32>
    %317 = tpu.matmul %304, %316, %cst_145 {dimension_numbers = #tpu.dot_dimension_numbers<[1], [0], [0], [1], [0, 0, 1, 1], [], []>} : vector<8x32xf32>, vector<32x32xf32>, vector<8x32xf32> -> vector<8x32xf32>
    %318 = arith.addf %314, %317 : vector<8x32xf32>
    %319 = vector.extract_strided_slice %313 {offsets = [0, 32], sizes = [8, 32], strides = [1, 1]} : vector<8x128xf32> to vector<8x32xf32>
    %c1_146 = arith.constant 1 : index
    %c0_147 = arith.constant 0 : index
    %c0_148 = arith.constant 0 : index
    %320 = vector.load %arg4[%c1_146, %c0_147, %c0_148] : memref<4x32x32xf32, #tpu.memory_space<vmem>>, vector<1x32x32xf32>
    %321 = vector.shape_cast %320 : vector<1x32x32xf32> to vector<32x32xf32>
    %cst_149 = arith.constant dense<0.000000e+00> : vector<8x32xf32>
    %322 = tpu.matmul %304, %321, %cst_149 {dimension_numbers = #tpu.dot_dimension_numbers<[1], [0], [0], [1], [0, 0, 1, 1], [], []>} : vector<8x32xf32>, vector<32x32xf32>, vector<8x32xf32> -> vector<8x32xf32>
    %323 = arith.addf %319, %322 : vector<8x32xf32>
    %324 = vector.extract_strided_slice %313 {offsets = [0, 64], sizes = [8, 32], strides = [1, 1]} : vector<8x128xf32> to vector<8x32xf32>
    %c2_150 = arith.constant 2 : index
    %c0_151 = arith.constant 0 : index
    %c0_152 = arith.constant 0 : index
    %325 = vector.load %arg4[%c2_150, %c0_151, %c0_152] : memref<4x32x32xf32, #tpu.memory_space<vmem>>, vector<1x32x32xf32>
    %326 = vector.shape_cast %325 : vector<1x32x32xf32> to vector<32x32xf32>
    %cst_153 = arith.constant dense<0.000000e+00> : vector<8x32xf32>
    %327 = tpu.matmul %304, %326, %cst_153 {dimension_numbers = #tpu.dot_dimension_numbers<[1], [0], [0], [1], [0, 0, 1, 1], [], []>} : vector<8x32xf32>, vector<32x32xf32>, vector<8x32xf32> -> vector<8x32xf32>
    %328 = arith.addf %324, %327 : vector<8x32xf32>
    %329 = vector.extract_strided_slice %313 {offsets = [0, 96], sizes = [8, 32], strides = [1, 1]} : vector<8x128xf32> to vector<8x32xf32>
    %c3_154 = arith.constant 3 : index
    %c0_155 = arith.constant 0 : index
    %c0_156 = arith.constant 0 : index
    %330 = vector.load %arg4[%c3_154, %c0_155, %c0_156] : memref<4x32x32xf32, #tpu.memory_space<vmem>>, vector<1x32x32xf32>
    %331 = vector.shape_cast %330 : vector<1x32x32xf32> to vector<32x32xf32>
    %cst_157 = arith.constant dense<0.000000e+00> : vector<8x32xf32>
    %332 = tpu.matmul %304, %331, %cst_157 {dimension_numbers = #tpu.dot_dimension_numbers<[1], [0], [0], [1], [0, 0, 1, 1], [], []>} : vector<8x32xf32>, vector<32x32xf32>, vector<8x32xf32> -> vector<8x32xf32>
    %333 = arith.addf %329, %332 : vector<8x32xf32>
    %334 = arith.negf %318 : vector<8x32xf32>
    %335 = math.exp %334 : vector<8x32xf32>
    %cst_158 = arith.constant 1.000000e+00 : f32
    %336 = vector.broadcast %cst_158 : f32 to vector<8x32xf32>
    %337 = arith.addf %336, %335 : vector<8x32xf32>
    %338 = arith.divf %336, %337 : vector<8x32xf32>
    %339 = arith.negf %323 : vector<8x32xf32>
    %340 = math.exp %339 : vector<8x32xf32>
    %cst_159 = arith.constant 1.000000e+00 : f32
    %341 = vector.broadcast %cst_159 : f32 to vector<8x32xf32>
    %342 = arith.addf %341, %340 : vector<8x32xf32>
    %343 = arith.divf %341, %342 : vector<8x32xf32>
    %344 = math.tanh %328 : vector<8x32xf32>
    %345 = arith.negf %333 : vector<8x32xf32>
    %346 = math.exp %345 : vector<8x32xf32>
    %cst_160 = arith.constant 1.000000e+00 : f32
    %347 = vector.broadcast %cst_160 : f32 to vector<8x32xf32>
    %348 = arith.addf %347, %346 : vector<8x32xf32>
    %349 = arith.divf %347, %348 : vector<8x32xf32>
    %350 = arith.mulf %343, %305 : vector<8x32xf32>
    %351 = arith.mulf %338, %344 : vector<8x32xf32>
    %352 = arith.addf %350, %351 : vector<8x32xf32>
    %353 = math.tanh %352 : vector<8x32xf32>
    %354 = arith.mulf %349, %353 : vector<8x32xf32>
    %355 = tpu.concatenate %354, %306 in 1 : vector<8x32xf32>, vector<8x32xf32> -> vector<8x64xf32>
    %c0_161 = arith.constant 0 : index
    %c0_162 = arith.constant 0 : index
    %c0_163 = arith.constant 0 : index
    %356 = vector.load %arg5[%c0_161, %c0_162, %c0_163] : memref<4x64x32xf32, #tpu.memory_space<vmem>>, vector<1x64x32xf32>
    %357 = vector.shape_cast %356 : vector<1x64x32xf32> to vector<64x32xf32>
    %cst_164 = arith.constant dense<0.000000e+00> : vector<8x32xf32>
    %358 = tpu.matmul %355, %357, %cst_164 {dimension_numbers = #tpu.dot_dimension_numbers<[1], [0], [0], [1], [0, 0, 1, 1], [], []>} : vector<8x64xf32>, vector<64x32xf32>, vector<8x32xf32> -> vector<8x32xf32>
    %359 = arith.addf %358, %17 : vector<8x32xf32>
    %c1_165 = arith.constant 1 : index
    %c0_166 = arith.constant 0 : index
    %c0_167 = arith.constant 0 : index
    %360 = vector.load %arg5[%c1_165, %c0_166, %c0_167] : memref<4x64x32xf32, #tpu.memory_space<vmem>>, vector<1x64x32xf32>
    %361 = vector.shape_cast %360 : vector<1x64x32xf32> to vector<64x32xf32>
    %cst_168 = arith.constant dense<0.000000e+00> : vector<8x32xf32>
    %362 = tpu.matmul %355, %361, %cst_168 {dimension_numbers = #tpu.dot_dimension_numbers<[1], [0], [0], [1], [0, 0, 1, 1], [], []>} : vector<8x64xf32>, vector<64x32xf32>, vector<8x32xf32> -> vector<8x32xf32>
    %363 = arith.addf %362, %21 : vector<8x32xf32>
    %c2_169 = arith.constant 2 : index
    %c0_170 = arith.constant 0 : index
    %c0_171 = arith.constant 0 : index
    %364 = vector.load %arg5[%c2_169, %c0_170, %c0_171] : memref<4x64x32xf32, #tpu.memory_space<vmem>>, vector<1x64x32xf32>
    %365 = vector.shape_cast %364 : vector<1x64x32xf32> to vector<64x32xf32>
    %cst_172 = arith.constant dense<0.000000e+00> : vector<8x32xf32>
    %366 = tpu.matmul %355, %365, %cst_172 {dimension_numbers = #tpu.dot_dimension_numbers<[1], [0], [0], [1], [0, 0, 1, 1], [], []>} : vector<8x64xf32>, vector<64x32xf32>, vector<8x32xf32> -> vector<8x32xf32>
    %367 = arith.addf %366, %25 : vector<8x32xf32>
    %c3_173 = arith.constant 3 : index
    %c0_174 = arith.constant 0 : index
    %c0_175 = arith.constant 0 : index
    %368 = vector.load %arg5[%c3_173, %c0_174, %c0_175] : memref<4x64x32xf32, #tpu.memory_space<vmem>>, vector<1x64x32xf32>
    %369 = vector.shape_cast %368 : vector<1x64x32xf32> to vector<64x32xf32>
    %cst_176 = arith.constant dense<0.000000e+00> : vector<8x32xf32>
    %370 = tpu.matmul %355, %369, %cst_176 {dimension_numbers = #tpu.dot_dimension_numbers<[1], [0], [0], [1], [0, 0, 1, 1], [], []>} : vector<8x64xf32>, vector<64x32xf32>, vector<8x32xf32> -> vector<8x32xf32>
    %371 = arith.addf %370, %29 : vector<8x32xf32>
    %372 = arith.negf %359 : vector<8x32xf32>
    %373 = math.exp %372 : vector<8x32xf32>
    %cst_177 = arith.constant 1.000000e+00 : f32
    %374 = vector.broadcast %cst_177 : f32 to vector<8x32xf32>
    %375 = arith.addf %374, %373 : vector<8x32xf32>
    %376 = arith.divf %374, %375 : vector<8x32xf32>
    %377 = arith.negf %363 : vector<8x32xf32>
    %378 = math.exp %377 : vector<8x32xf32>
    %cst_178 = arith.constant 1.000000e+00 : f32
    %379 = vector.broadcast %cst_178 : f32 to vector<8x32xf32>
    %380 = arith.addf %379, %378 : vector<8x32xf32>
    %381 = arith.divf %379, %380 : vector<8x32xf32>
    %382 = math.tanh %367 : vector<8x32xf32>
    %383 = arith.negf %371 : vector<8x32xf32>
    %384 = math.exp %383 : vector<8x32xf32>
    %cst_179 = arith.constant 1.000000e+00 : f32
    %385 = vector.broadcast %cst_179 : f32 to vector<8x32xf32>
    %386 = arith.addf %385, %384 : vector<8x32xf32>
    %387 = arith.divf %385, %386 : vector<8x32xf32>
    %388 = arith.mulf %381, %307 : vector<8x32xf32>
    %389 = arith.mulf %376, %382 : vector<8x32xf32>
    %390 = arith.addf %388, %389 : vector<8x32xf32>
    %391 = math.tanh %390 : vector<8x32xf32>
    %392 = arith.mulf %387, %391 : vector<8x32xf32>
    %393 = vector.broadcast %c3_i32 : i32 to vector<8x1xi32>
    %394 = arith.cmpi sgt, %13, %393 : vector<8x1xi32>
    %395 = vector.shape_cast %394 : vector<8x1xi1> to vector<8x1xi1>
    %396 = vector.broadcast %395 : vector<8x1xi1> to vector<8x32xi1>
    %397 = arith.select %396, %354, %304 : vector<8x32xi1>, vector<8x32xf32>
    %398 = arith.select %396, %352, %305 : vector<8x32xi1>, vector<8x32xf32>
    %399 = arith.select %396, %392, %306 : vector<8x32xi1>, vector<8x32xf32>
    %400 = arith.select %396, %390, %307 : vector<8x32xi1>, vector<8x32xf32>
    %401 = arith.select %396, %392, %30 : vector<8x32xi1>, vector<8x32xf32>
    %402 = arith.addf %309, %401 : vector<8x32xf32>
    %c4_i32 = arith.constant 4 : i32
    %c8_i32_180 = arith.constant 8 : i32
    %403 = arith.muli %c4_i32, %c8_i32_180 : i32
    %404 = tpu.assume_multiple %403, 8 : i32
    %405 = arith.index_cast %404 : i32 to index
    %c0_181 = arith.constant 0 : index
    %406 = vector.load %arg10[%405, %c0_181] : memref<64x128xf32, #tpu.memory_space<vmem>>, vector<8x128xf32>
    %407 = vector.extract_strided_slice %406 {offsets = [0, 0], sizes = [8, 32], strides = [1, 1]} : vector<8x128xf32> to vector<8x32xf32>
    %c0_182 = arith.constant 0 : index
    %c0_183 = arith.constant 0 : index
    %c0_184 = arith.constant 0 : index
    %408 = vector.load %arg4[%c0_182, %c0_183, %c0_184] : memref<4x32x32xf32, #tpu.memory_space<vmem>>, vector<1x32x32xf32>
    %409 = vector.shape_cast %408 : vector<1x32x32xf32> to vector<32x32xf32>
    %cst_185 = arith.constant dense<0.000000e+00> : vector<8x32xf32>
    %410 = tpu.matmul %397, %409, %cst_185 {dimension_numbers = #tpu.dot_dimension_numbers<[1], [0], [0], [1], [0, 0, 1, 1], [], []>} : vector<8x32xf32>, vector<32x32xf32>, vector<8x32xf32> -> vector<8x32xf32>
    %411 = arith.addf %407, %410 : vector<8x32xf32>
    %412 = vector.extract_strided_slice %406 {offsets = [0, 32], sizes = [8, 32], strides = [1, 1]} : vector<8x128xf32> to vector<8x32xf32>
    %c1_186 = arith.constant 1 : index
    %c0_187 = arith.constant 0 : index
    %c0_188 = arith.constant 0 : index
    %413 = vector.load %arg4[%c1_186, %c0_187, %c0_188] : memref<4x32x32xf32, #tpu.memory_space<vmem>>, vector<1x32x32xf32>
    %414 = vector.shape_cast %413 : vector<1x32x32xf32> to vector<32x32xf32>
    %cst_189 = arith.constant dense<0.000000e+00> : vector<8x32xf32>
    %415 = tpu.matmul %397, %414, %cst_189 {dimension_numbers = #tpu.dot_dimension_numbers<[1], [0], [0], [1], [0, 0, 1, 1], [], []>} : vector<8x32xf32>, vector<32x32xf32>, vector<8x32xf32> -> vector<8x32xf32>
    %416 = arith.addf %412, %415 : vector<8x32xf32>
    %417 = vector.extract_strided_slice %406 {offsets = [0, 64], sizes = [8, 32], strides = [1, 1]} : vector<8x128xf32> to vector<8x32xf32>
    %c2_190 = arith.constant 2 : index
    %c0_191 = arith.constant 0 : index
    %c0_192 = arith.constant 0 : index
    %418 = vector.load %arg4[%c2_190, %c0_191, %c0_192] : memref<4x32x32xf32, #tpu.memory_space<vmem>>, vector<1x32x32xf32>
    %419 = vector.shape_cast %418 : vector<1x32x32xf32> to vector<32x32xf32>
    %cst_193 = arith.constant dense<0.000000e+00> : vector<8x32xf32>
    %420 = tpu.matmul %397, %419, %cst_193 {dimension_numbers = #tpu.dot_dimension_numbers<[1], [0], [0], [1], [0, 0, 1, 1], [], []>} : vector<8x32xf32>, vector<32x32xf32>, vector<8x32xf32> -> vector<8x32xf32>
    %421 = arith.addf %417, %420 : vector<8x32xf32>
    %422 = vector.extract_strided_slice %406 {offsets = [0, 96], sizes = [8, 32], strides = [1, 1]} : vector<8x128xf32> to vector<8x32xf32>
    %c3_194 = arith.constant 3 : index
    %c0_195 = arith.constant 0 : index
    %c0_196 = arith.constant 0 : index
    %423 = vector.load %arg4[%c3_194, %c0_195, %c0_196] : memref<4x32x32xf32, #tpu.memory_space<vmem>>, vector<1x32x32xf32>
    %424 = vector.shape_cast %423 : vector<1x32x32xf32> to vector<32x32xf32>
    %cst_197 = arith.constant dense<0.000000e+00> : vector<8x32xf32>
    %425 = tpu.matmul %397, %424, %cst_197 {dimension_numbers = #tpu.dot_dimension_numbers<[1], [0], [0], [1], [0, 0, 1, 1], [], []>} : vector<8x32xf32>, vector<32x32xf32>, vector<8x32xf32> -> vector<8x32xf32>
    %426 = arith.addf %422, %425 : vector<8x32xf32>
    %427 = arith.negf %411 : vector<8x32xf32>
    %428 = math.exp %427 : vector<8x32xf32>
    %cst_198 = arith.constant 1.000000e+00 : f32
    %429 = vector.broadcast %cst_198 : f32 to vector<8x32xf32>
    %430 = arith.addf %429, %428 : vector<8x32xf32>
    %431 = arith.divf %429, %430 : vector<8x32xf32>
    %432 = arith.negf %416 : vector<8x32xf32>
    %433 = math.exp %432 : vector<8x32xf32>
    %cst_199 = arith.constant 1.000000e+00 : f32
    %434 = vector.broadcast %cst_199 : f32 to vector<8x32xf32>
    %435 = arith.addf %434, %433 : vector<8x32xf32>
    %436 = arith.divf %434, %435 : vector<8x32xf32>
    %437 = math.tanh %421 : vector<8x32xf32>
    %438 = arith.negf %426 : vector<8x32xf32>
    %439 = math.exp %438 : vector<8x32xf32>
    %cst_200 = arith.constant 1.000000e+00 : f32
    %440 = vector.broadcast %cst_200 : f32 to vector<8x32xf32>
    %441 = arith.addf %440, %439 : vector<8x32xf32>
    %442 = arith.divf %440, %441 : vector<8x32xf32>
    %443 = arith.mulf %436, %398 : vector<8x32xf32>
    %444 = arith.mulf %431, %437 : vector<8x32xf32>
    %445 = arith.addf %443, %444 : vector<8x32xf32>
    %446 = math.tanh %445 : vector<8x32xf32>
    %447 = arith.mulf %442, %446 : vector<8x32xf32>
    %448 = tpu.concatenate %447, %399 in 1 : vector<8x32xf32>, vector<8x32xf32> -> vector<8x64xf32>
    %c0_201 = arith.constant 0 : index
    %c0_202 = arith.constant 0 : index
    %c0_203 = arith.constant 0 : index
    %449 = vector.load %arg5[%c0_201, %c0_202, %c0_203] : memref<4x64x32xf32, #tpu.memory_space<vmem>>, vector<1x64x32xf32>
    %450 = vector.shape_cast %449 : vector<1x64x32xf32> to vector<64x32xf32>
    %cst_204 = arith.constant dense<0.000000e+00> : vector<8x32xf32>
    %451 = tpu.matmul %448, %450, %cst_204 {dimension_numbers = #tpu.dot_dimension_numbers<[1], [0], [0], [1], [0, 0, 1, 1], [], []>} : vector<8x64xf32>, vector<64x32xf32>, vector<8x32xf32> -> vector<8x32xf32>
    %452 = arith.addf %451, %17 : vector<8x32xf32>
    %c1_205 = arith.constant 1 : index
    %c0_206 = arith.constant 0 : index
    %c0_207 = arith.constant 0 : index
    %453 = vector.load %arg5[%c1_205, %c0_206, %c0_207] : memref<4x64x32xf32, #tpu.memory_space<vmem>>, vector<1x64x32xf32>
    %454 = vector.shape_cast %453 : vector<1x64x32xf32> to vector<64x32xf32>
    %cst_208 = arith.constant dense<0.000000e+00> : vector<8x32xf32>
    %455 = tpu.matmul %448, %454, %cst_208 {dimension_numbers = #tpu.dot_dimension_numbers<[1], [0], [0], [1], [0, 0, 1, 1], [], []>} : vector<8x64xf32>, vector<64x32xf32>, vector<8x32xf32> -> vector<8x32xf32>
    %456 = arith.addf %455, %21 : vector<8x32xf32>
    %c2_209 = arith.constant 2 : index
    %c0_210 = arith.constant 0 : index
    %c0_211 = arith.constant 0 : index
    %457 = vector.load %arg5[%c2_209, %c0_210, %c0_211] : memref<4x64x32xf32, #tpu.memory_space<vmem>>, vector<1x64x32xf32>
    %458 = vector.shape_cast %457 : vector<1x64x32xf32> to vector<64x32xf32>
    %cst_212 = arith.constant dense<0.000000e+00> : vector<8x32xf32>
    %459 = tpu.matmul %448, %458, %cst_212 {dimension_numbers = #tpu.dot_dimension_numbers<[1], [0], [0], [1], [0, 0, 1, 1], [], []>} : vector<8x64xf32>, vector<64x32xf32>, vector<8x32xf32> -> vector<8x32xf32>
    %460 = arith.addf %459, %25 : vector<8x32xf32>
    %c3_213 = arith.constant 3 : index
    %c0_214 = arith.constant 0 : index
    %c0_215 = arith.constant 0 : index
    %461 = vector.load %arg5[%c3_213, %c0_214, %c0_215] : memref<4x64x32xf32, #tpu.memory_space<vmem>>, vector<1x64x32xf32>
    %462 = vector.shape_cast %461 : vector<1x64x32xf32> to vector<64x32xf32>
    %cst_216 = arith.constant dense<0.000000e+00> : vector<8x32xf32>
    %463 = tpu.matmul %448, %462, %cst_216 {dimension_numbers = #tpu.dot_dimension_numbers<[1], [0], [0], [1], [0, 0, 1, 1], [], []>} : vector<8x64xf32>, vector<64x32xf32>, vector<8x32xf32> -> vector<8x32xf32>
    %464 = arith.addf %463, %29 : vector<8x32xf32>
    %465 = arith.negf %452 : vector<8x32xf32>
    %466 = math.exp %465 : vector<8x32xf32>
    %cst_217 = arith.constant 1.000000e+00 : f32
    %467 = vector.broadcast %cst_217 : f32 to vector<8x32xf32>
    %468 = arith.addf %467, %466 : vector<8x32xf32>
    %469 = arith.divf %467, %468 : vector<8x32xf32>
    %470 = arith.negf %456 : vector<8x32xf32>
    %471 = math.exp %470 : vector<8x32xf32>
    %cst_218 = arith.constant 1.000000e+00 : f32
    %472 = vector.broadcast %cst_218 : f32 to vector<8x32xf32>
    %473 = arith.addf %472, %471 : vector<8x32xf32>
    %474 = arith.divf %472, %473 : vector<8x32xf32>
    %475 = math.tanh %460 : vector<8x32xf32>
    %476 = arith.negf %464 : vector<8x32xf32>
    %477 = math.exp %476 : vector<8x32xf32>
    %cst_219 = arith.constant 1.000000e+00 : f32
    %478 = vector.broadcast %cst_219 : f32 to vector<8x32xf32>
    %479 = arith.addf %478, %477 : vector<8x32xf32>
    %480 = arith.divf %478, %479 : vector<8x32xf32>
    %481 = arith.mulf %474, %400 : vector<8x32xf32>
    %482 = arith.mulf %469, %475 : vector<8x32xf32>
    %483 = arith.addf %481, %482 : vector<8x32xf32>
    %484 = math.tanh %483 : vector<8x32xf32>
    %485 = arith.mulf %480, %484 : vector<8x32xf32>
    %486 = vector.broadcast %c4_i32 : i32 to vector<8x1xi32>
    %487 = arith.cmpi sgt, %13, %486 : vector<8x1xi32>
    %488 = vector.shape_cast %487 : vector<8x1xi1> to vector<8x1xi1>
    %489 = vector.broadcast %488 : vector<8x1xi1> to vector<8x32xi1>
    %490 = arith.select %489, %447, %397 : vector<8x32xi1>, vector<8x32xf32>
    %491 = arith.select %489, %445, %398 : vector<8x32xi1>, vector<8x32xf32>
    %492 = arith.select %489, %485, %399 : vector<8x32xi1>, vector<8x32xf32>
    %493 = arith.select %489, %483, %400 : vector<8x32xi1>, vector<8x32xf32>
    %494 = arith.select %489, %485, %30 : vector<8x32xi1>, vector<8x32xf32>
    %495 = arith.addf %402, %494 : vector<8x32xf32>
    %c5_i32 = arith.constant 5 : i32
    %c8_i32_220 = arith.constant 8 : i32
    %496 = arith.muli %c5_i32, %c8_i32_220 : i32
    %497 = tpu.assume_multiple %496, 8 : i32
    %498 = arith.index_cast %497 : i32 to index
    %c0_221 = arith.constant 0 : index
    %499 = vector.load %arg10[%498, %c0_221] : memref<64x128xf32, #tpu.memory_space<vmem>>, vector<8x128xf32>
    %500 = vector.extract_strided_slice %499 {offsets = [0, 0], sizes = [8, 32], strides = [1, 1]} : vector<8x128xf32> to vector<8x32xf32>
    %c0_222 = arith.constant 0 : index
    %c0_223 = arith.constant 0 : index
    %c0_224 = arith.constant 0 : index
    %501 = vector.load %arg4[%c0_222, %c0_223, %c0_224] : memref<4x32x32xf32, #tpu.memory_space<vmem>>, vector<1x32x32xf32>
    %502 = vector.shape_cast %501 : vector<1x32x32xf32> to vector<32x32xf32>
    %cst_225 = arith.constant dense<0.000000e+00> : vector<8x32xf32>
    %503 = tpu.matmul %490, %502, %cst_225 {dimension_numbers = #tpu.dot_dimension_numbers<[1], [0], [0], [1], [0, 0, 1, 1], [], []>} : vector<8x32xf32>, vector<32x32xf32>, vector<8x32xf32> -> vector<8x32xf32>
    %504 = arith.addf %500, %503 : vector<8x32xf32>
    %505 = vector.extract_strided_slice %499 {offsets = [0, 32], sizes = [8, 32], strides = [1, 1]} : vector<8x128xf32> to vector<8x32xf32>
    %c1_226 = arith.constant 1 : index
    %c0_227 = arith.constant 0 : index
    %c0_228 = arith.constant 0 : index
    %506 = vector.load %arg4[%c1_226, %c0_227, %c0_228] : memref<4x32x32xf32, #tpu.memory_space<vmem>>, vector<1x32x32xf32>
    %507 = vector.shape_cast %506 : vector<1x32x32xf32> to vector<32x32xf32>
    %cst_229 = arith.constant dense<0.000000e+00> : vector<8x32xf32>
    %508 = tpu.matmul %490, %507, %cst_229 {dimension_numbers = #tpu.dot_dimension_numbers<[1], [0], [0], [1], [0, 0, 1, 1], [], []>} : vector<8x32xf32>, vector<32x32xf32>, vector<8x32xf32> -> vector<8x32xf32>
    %509 = arith.addf %505, %508 : vector<8x32xf32>
    %510 = vector.extract_strided_slice %499 {offsets = [0, 64], sizes = [8, 32], strides = [1, 1]} : vector<8x128xf32> to vector<8x32xf32>
    %c2_230 = arith.constant 2 : index
    %c0_231 = arith.constant 0 : index
    %c0_232 = arith.constant 0 : index
    %511 = vector.load %arg4[%c2_230, %c0_231, %c0_232] : memref<4x32x32xf32, #tpu.memory_space<vmem>>, vector<1x32x32xf32>
    %512 = vector.shape_cast %511 : vector<1x32x32xf32> to vector<32x32xf32>
    %cst_233 = arith.constant dense<0.000000e+00> : vector<8x32xf32>
    %513 = tpu.matmul %490, %512, %cst_233 {dimension_numbers = #tpu.dot_dimension_numbers<[1], [0], [0], [1], [0, 0, 1, 1], [], []>} : vector<8x32xf32>, vector<32x32xf32>, vector<8x32xf32> -> vector<8x32xf32>
    %514 = arith.addf %510, %513 : vector<8x32xf32>
    %515 = vector.extract_strided_slice %499 {offsets = [0, 96], sizes = [8, 32], strides = [1, 1]} : vector<8x128xf32> to vector<8x32xf32>
    %c3_234 = arith.constant 3 : index
    %c0_235 = arith.constant 0 : index
    %c0_236 = arith.constant 0 : index
    %516 = vector.load %arg4[%c3_234, %c0_235, %c0_236] : memref<4x32x32xf32, #tpu.memory_space<vmem>>, vector<1x32x32xf32>
    %517 = vector.shape_cast %516 : vector<1x32x32xf32> to vector<32x32xf32>
    %cst_237 = arith.constant dense<0.000000e+00> : vector<8x32xf32>
    %518 = tpu.matmul %490, %517, %cst_237 {dimension_numbers = #tpu.dot_dimension_numbers<[1], [0], [0], [1], [0, 0, 1, 1], [], []>} : vector<8x32xf32>, vector<32x32xf32>, vector<8x32xf32> -> vector<8x32xf32>
    %519 = arith.addf %515, %518 : vector<8x32xf32>
    %520 = arith.negf %504 : vector<8x32xf32>
    %521 = math.exp %520 : vector<8x32xf32>
    %cst_238 = arith.constant 1.000000e+00 : f32
    %522 = vector.broadcast %cst_238 : f32 to vector<8x32xf32>
    %523 = arith.addf %522, %521 : vector<8x32xf32>
    %524 = arith.divf %522, %523 : vector<8x32xf32>
    %525 = arith.negf %509 : vector<8x32xf32>
    %526 = math.exp %525 : vector<8x32xf32>
    %cst_239 = arith.constant 1.000000e+00 : f32
    %527 = vector.broadcast %cst_239 : f32 to vector<8x32xf32>
    %528 = arith.addf %527, %526 : vector<8x32xf32>
    %529 = arith.divf %527, %528 : vector<8x32xf32>
    %530 = math.tanh %514 : vector<8x32xf32>
    %531 = arith.negf %519 : vector<8x32xf32>
    %532 = math.exp %531 : vector<8x32xf32>
    %cst_240 = arith.constant 1.000000e+00 : f32
    %533 = vector.broadcast %cst_240 : f32 to vector<8x32xf32>
    %534 = arith.addf %533, %532 : vector<8x32xf32>
    %535 = arith.divf %533, %534 : vector<8x32xf32>
    %536 = arith.mulf %529, %491 : vector<8x32xf32>
    %537 = arith.mulf %524, %530 : vector<8x32xf32>
    %538 = arith.addf %536, %537 : vector<8x32xf32>
    %539 = math.tanh %538 : vector<8x32xf32>
    %540 = arith.mulf %535, %539 : vector<8x32xf32>
    %541 = tpu.concatenate %540, %492 in 1 : vector<8x32xf32>, vector<8x32xf32> -> vector<8x64xf32>
    %c0_241 = arith.constant 0 : index
    %c0_242 = arith.constant 0 : index
    %c0_243 = arith.constant 0 : index
    %542 = vector.load %arg5[%c0_241, %c0_242, %c0_243] : memref<4x64x32xf32, #tpu.memory_space<vmem>>, vector<1x64x32xf32>
    %543 = vector.shape_cast %542 : vector<1x64x32xf32> to vector<64x32xf32>
    %cst_244 = arith.constant dense<0.000000e+00> : vector<8x32xf32>
    %544 = tpu.matmul %541, %543, %cst_244 {dimension_numbers = #tpu.dot_dimension_numbers<[1], [0], [0], [1], [0, 0, 1, 1], [], []>} : vector<8x64xf32>, vector<64x32xf32>, vector<8x32xf32> -> vector<8x32xf32>
    %545 = arith.addf %544, %17 : vector<8x32xf32>
    %c1_245 = arith.constant 1 : index
    %c0_246 = arith.constant 0 : index
    %c0_247 = arith.constant 0 : index
    %546 = vector.load %arg5[%c1_245, %c0_246, %c0_247] : memref<4x64x32xf32, #tpu.memory_space<vmem>>, vector<1x64x32xf32>
    %547 = vector.shape_cast %546 : vector<1x64x32xf32> to vector<64x32xf32>
    %cst_248 = arith.constant dense<0.000000e+00> : vector<8x32xf32>
    %548 = tpu.matmul %541, %547, %cst_248 {dimension_numbers = #tpu.dot_dimension_numbers<[1], [0], [0], [1], [0, 0, 1, 1], [], []>} : vector<8x64xf32>, vector<64x32xf32>, vector<8x32xf32> -> vector<8x32xf32>
    %549 = arith.addf %548, %21 : vector<8x32xf32>
    %c2_249 = arith.constant 2 : index
    %c0_250 = arith.constant 0 : index
    %c0_251 = arith.constant 0 : index
    %550 = vector.load %arg5[%c2_249, %c0_250, %c0_251] : memref<4x64x32xf32, #tpu.memory_space<vmem>>, vector<1x64x32xf32>
    %551 = vector.shape_cast %550 : vector<1x64x32xf32> to vector<64x32xf32>
    %cst_252 = arith.constant dense<0.000000e+00> : vector<8x32xf32>
    %552 = tpu.matmul %541, %551, %cst_252 {dimension_numbers = #tpu.dot_dimension_numbers<[1], [0], [0], [1], [0, 0, 1, 1], [], []>} : vector<8x64xf32>, vector<64x32xf32>, vector<8x32xf32> -> vector<8x32xf32>
    %553 = arith.addf %552, %25 : vector<8x32xf32>
    %c3_253 = arith.constant 3 : index
    %c0_254 = arith.constant 0 : index
    %c0_255 = arith.constant 0 : index
    %554 = vector.load %arg5[%c3_253, %c0_254, %c0_255] : memref<4x64x32xf32, #tpu.memory_space<vmem>>, vector<1x64x32xf32>
    %555 = vector.shape_cast %554 : vector<1x64x32xf32> to vector<64x32xf32>
    %cst_256 = arith.constant dense<0.000000e+00> : vector<8x32xf32>
    %556 = tpu.matmul %541, %555, %cst_256 {dimension_numbers = #tpu.dot_dimension_numbers<[1], [0], [0], [1], [0, 0, 1, 1], [], []>} : vector<8x64xf32>, vector<64x32xf32>, vector<8x32xf32> -> vector<8x32xf32>
    %557 = arith.addf %556, %29 : vector<8x32xf32>
    %558 = arith.negf %545 : vector<8x32xf32>
    %559 = math.exp %558 : vector<8x32xf32>
    %cst_257 = arith.constant 1.000000e+00 : f32
    %560 = vector.broadcast %cst_257 : f32 to vector<8x32xf32>
    %561 = arith.addf %560, %559 : vector<8x32xf32>
    %562 = arith.divf %560, %561 : vector<8x32xf32>
    %563 = arith.negf %549 : vector<8x32xf32>
    %564 = math.exp %563 : vector<8x32xf32>
    %cst_258 = arith.constant 1.000000e+00 : f32
    %565 = vector.broadcast %cst_258 : f32 to vector<8x32xf32>
    %566 = arith.addf %565, %564 : vector<8x32xf32>
    %567 = arith.divf %565, %566 : vector<8x32xf32>
    %568 = math.tanh %553 : vector<8x32xf32>
    %569 = arith.negf %557 : vector<8x32xf32>
    %570 = math.exp %569 : vector<8x32xf32>
    %cst_259 = arith.constant 1.000000e+00 : f32
    %571 = vector.broadcast %cst_259 : f32 to vector<8x32xf32>
    %572 = arith.addf %571, %570 : vector<8x32xf32>
    %573 = arith.divf %571, %572 : vector<8x32xf32>
    %574 = arith.mulf %567, %493 : vector<8x32xf32>
    %575 = arith.mulf %562, %568 : vector<8x32xf32>
    %576 = arith.addf %574, %575 : vector<8x32xf32>
    %577 = math.tanh %576 : vector<8x32xf32>
    %578 = arith.mulf %573, %577 : vector<8x32xf32>
    %579 = vector.broadcast %c5_i32 : i32 to vector<8x1xi32>
    %580 = arith.cmpi sgt, %13, %579 : vector<8x1xi32>
    %581 = vector.shape_cast %580 : vector<8x1xi1> to vector<8x1xi1>
    %582 = vector.broadcast %581 : vector<8x1xi1> to vector<8x32xi1>
    %583 = arith.select %582, %540, %490 : vector<8x32xi1>, vector<8x32xf32>
    %584 = arith.select %582, %538, %491 : vector<8x32xi1>, vector<8x32xf32>
    %585 = arith.select %582, %578, %492 : vector<8x32xi1>, vector<8x32xf32>
    %586 = arith.select %582, %576, %493 : vector<8x32xi1>, vector<8x32xf32>
    %587 = arith.select %582, %578, %30 : vector<8x32xi1>, vector<8x32xf32>
    %588 = arith.addf %495, %587 : vector<8x32xf32>
    %c6_i32 = arith.constant 6 : i32
    %c8_i32_260 = arith.constant 8 : i32
    %589 = arith.muli %c6_i32, %c8_i32_260 : i32
    %590 = tpu.assume_multiple %589, 8 : i32
    %591 = arith.index_cast %590 : i32 to index
    %c0_261 = arith.constant 0 : index
    %592 = vector.load %arg10[%591, %c0_261] : memref<64x128xf32, #tpu.memory_space<vmem>>, vector<8x128xf32>
    %593 = vector.extract_strided_slice %592 {offsets = [0, 0], sizes = [8, 32], strides = [1, 1]} : vector<8x128xf32> to vector<8x32xf32>
    %c0_262 = arith.constant 0 : index
    %c0_263 = arith.constant 0 : index
    %c0_264 = arith.constant 0 : index
    %594 = vector.load %arg4[%c0_262, %c0_263, %c0_264] : memref<4x32x32xf32, #tpu.memory_space<vmem>>, vector<1x32x32xf32>
    %595 = vector.shape_cast %594 : vector<1x32x32xf32> to vector<32x32xf32>
    %cst_265 = arith.constant dense<0.000000e+00> : vector<8x32xf32>
    %596 = tpu.matmul %583, %595, %cst_265 {dimension_numbers = #tpu.dot_dimension_numbers<[1], [0], [0], [1], [0, 0, 1, 1], [], []>} : vector<8x32xf32>, vector<32x32xf32>, vector<8x32xf32> -> vector<8x32xf32>
    %597 = arith.addf %593, %596 : vector<8x32xf32>
    %598 = vector.extract_strided_slice %592 {offsets = [0, 32], sizes = [8, 32], strides = [1, 1]} : vector<8x128xf32> to vector<8x32xf32>
    %c1_266 = arith.constant 1 : index
    %c0_267 = arith.constant 0 : index
    %c0_268 = arith.constant 0 : index
    %599 = vector.load %arg4[%c1_266, %c0_267, %c0_268] : memref<4x32x32xf32, #tpu.memory_space<vmem>>, vector<1x32x32xf32>
    %600 = vector.shape_cast %599 : vector<1x32x32xf32> to vector<32x32xf32>
    %cst_269 = arith.constant dense<0.000000e+00> : vector<8x32xf32>
    %601 = tpu.matmul %583, %600, %cst_269 {dimension_numbers = #tpu.dot_dimension_numbers<[1], [0], [0], [1], [0, 0, 1, 1], [], []>} : vector<8x32xf32>, vector<32x32xf32>, vector<8x32xf32> -> vector<8x32xf32>
    %602 = arith.addf %598, %601 : vector<8x32xf32>
    %603 = vector.extract_strided_slice %592 {offsets = [0, 64], sizes = [8, 32], strides = [1, 1]} : vector<8x128xf32> to vector<8x32xf32>
    %c2_270 = arith.constant 2 : index
    %c0_271 = arith.constant 0 : index
    %c0_272 = arith.constant 0 : index
    %604 = vector.load %arg4[%c2_270, %c0_271, %c0_272] : memref<4x32x32xf32, #tpu.memory_space<vmem>>, vector<1x32x32xf32>
    %605 = vector.shape_cast %604 : vector<1x32x32xf32> to vector<32x32xf32>
    %cst_273 = arith.constant dense<0.000000e+00> : vector<8x32xf32>
    %606 = tpu.matmul %583, %605, %cst_273 {dimension_numbers = #tpu.dot_dimension_numbers<[1], [0], [0], [1], [0, 0, 1, 1], [], []>} : vector<8x32xf32>, vector<32x32xf32>, vector<8x32xf32> -> vector<8x32xf32>
    %607 = arith.addf %603, %606 : vector<8x32xf32>
    %608 = vector.extract_strided_slice %592 {offsets = [0, 96], sizes = [8, 32], strides = [1, 1]} : vector<8x128xf32> to vector<8x32xf32>
    %c3_274 = arith.constant 3 : index
    %c0_275 = arith.constant 0 : index
    %c0_276 = arith.constant 0 : index
    %609 = vector.load %arg4[%c3_274, %c0_275, %c0_276] : memref<4x32x32xf32, #tpu.memory_space<vmem>>, vector<1x32x32xf32>
    %610 = vector.shape_cast %609 : vector<1x32x32xf32> to vector<32x32xf32>
    %cst_277 = arith.constant dense<0.000000e+00> : vector<8x32xf32>
    %611 = tpu.matmul %583, %610, %cst_277 {dimension_numbers = #tpu.dot_dimension_numbers<[1], [0], [0], [1], [0, 0, 1, 1], [], []>} : vector<8x32xf32>, vector<32x32xf32>, vector<8x32xf32> -> vector<8x32xf32>
    %612 = arith.addf %608, %611 : vector<8x32xf32>
    %613 = arith.negf %597 : vector<8x32xf32>
    %614 = math.exp %613 : vector<8x32xf32>
    %cst_278 = arith.constant 1.000000e+00 : f32
    %615 = vector.broadcast %cst_278 : f32 to vector<8x32xf32>
    %616 = arith.addf %615, %614 : vector<8x32xf32>
    %617 = arith.divf %615, %616 : vector<8x32xf32>
    %618 = arith.negf %602 : vector<8x32xf32>
    %619 = math.exp %618 : vector<8x32xf32>
    %cst_279 = arith.constant 1.000000e+00 : f32
    %620 = vector.broadcast %cst_279 : f32 to vector<8x32xf32>
    %621 = arith.addf %620, %619 : vector<8x32xf32>
    %622 = arith.divf %620, %621 : vector<8x32xf32>
    %623 = math.tanh %607 : vector<8x32xf32>
    %624 = arith.negf %612 : vector<8x32xf32>
    %625 = math.exp %624 : vector<8x32xf32>
    %cst_280 = arith.constant 1.000000e+00 : f32
    %626 = vector.broadcast %cst_280 : f32 to vector<8x32xf32>
    %627 = arith.addf %626, %625 : vector<8x32xf32>
    %628 = arith.divf %626, %627 : vector<8x32xf32>
    %629 = arith.mulf %622, %584 : vector<8x32xf32>
    %630 = arith.mulf %617, %623 : vector<8x32xf32>
    %631 = arith.addf %629, %630 : vector<8x32xf32>
    %632 = math.tanh %631 : vector<8x32xf32>
    %633 = arith.mulf %628, %632 : vector<8x32xf32>
    %634 = tpu.concatenate %633, %585 in 1 : vector<8x32xf32>, vector<8x32xf32> -> vector<8x64xf32>
    %c0_281 = arith.constant 0 : index
    %c0_282 = arith.constant 0 : index
    %c0_283 = arith.constant 0 : index
    %635 = vector.load %arg5[%c0_281, %c0_282, %c0_283] : memref<4x64x32xf32, #tpu.memory_space<vmem>>, vector<1x64x32xf32>
    %636 = vector.shape_cast %635 : vector<1x64x32xf32> to vector<64x32xf32>
    %cst_284 = arith.constant dense<0.000000e+00> : vector<8x32xf32>
    %637 = tpu.matmul %634, %636, %cst_284 {dimension_numbers = #tpu.dot_dimension_numbers<[1], [0], [0], [1], [0, 0, 1, 1], [], []>} : vector<8x64xf32>, vector<64x32xf32>, vector<8x32xf32> -> vector<8x32xf32>
    %638 = arith.addf %637, %17 : vector<8x32xf32>
    %c1_285 = arith.constant 1 : index
    %c0_286 = arith.constant 0 : index
    %c0_287 = arith.constant 0 : index
    %639 = vector.load %arg5[%c1_285, %c0_286, %c0_287] : memref<4x64x32xf32, #tpu.memory_space<vmem>>, vector<1x64x32xf32>
    %640 = vector.shape_cast %639 : vector<1x64x32xf32> to vector<64x32xf32>
    %cst_288 = arith.constant dense<0.000000e+00> : vector<8x32xf32>
    %641 = tpu.matmul %634, %640, %cst_288 {dimension_numbers = #tpu.dot_dimension_numbers<[1], [0], [0], [1], [0, 0, 1, 1], [], []>} : vector<8x64xf32>, vector<64x32xf32>, vector<8x32xf32> -> vector<8x32xf32>
    %642 = arith.addf %641, %21 : vector<8x32xf32>
    %c2_289 = arith.constant 2 : index
    %c0_290 = arith.constant 0 : index
    %c0_291 = arith.constant 0 : index
    %643 = vector.load %arg5[%c2_289, %c0_290, %c0_291] : memref<4x64x32xf32, #tpu.memory_space<vmem>>, vector<1x64x32xf32>
    %644 = vector.shape_cast %643 : vector<1x64x32xf32> to vector<64x32xf32>
    %cst_292 = arith.constant dense<0.000000e+00> : vector<8x32xf32>
    %645 = tpu.matmul %634, %644, %cst_292 {dimension_numbers = #tpu.dot_dimension_numbers<[1], [0], [0], [1], [0, 0, 1, 1], [], []>} : vector<8x64xf32>, vector<64x32xf32>, vector<8x32xf32> -> vector<8x32xf32>
    %646 = arith.addf %645, %25 : vector<8x32xf32>
    %c3_293 = arith.constant 3 : index
    %c0_294 = arith.constant 0 : index
    %c0_295 = arith.constant 0 : index
    %647 = vector.load %arg5[%c3_293, %c0_294, %c0_295] : memref<4x64x32xf32, #tpu.memory_space<vmem>>, vector<1x64x32xf32>
    %648 = vector.shape_cast %647 : vector<1x64x32xf32> to vector<64x32xf32>
    %cst_296 = arith.constant dense<0.000000e+00> : vector<8x32xf32>
    %649 = tpu.matmul %634, %648, %cst_296 {dimension_numbers = #tpu.dot_dimension_numbers<[1], [0], [0], [1], [0, 0, 1, 1], [], []>} : vector<8x64xf32>, vector<64x32xf32>, vector<8x32xf32> -> vector<8x32xf32>
    %650 = arith.addf %649, %29 : vector<8x32xf32>
    %651 = arith.negf %638 : vector<8x32xf32>
    %652 = math.exp %651 : vector<8x32xf32>
    %cst_297 = arith.constant 1.000000e+00 : f32
    %653 = vector.broadcast %cst_297 : f32 to vector<8x32xf32>
    %654 = arith.addf %653, %652 : vector<8x32xf32>
    %655 = arith.divf %653, %654 : vector<8x32xf32>
    %656 = arith.negf %642 : vector<8x32xf32>
    %657 = math.exp %656 : vector<8x32xf32>
    %cst_298 = arith.constant 1.000000e+00 : f32
    %658 = vector.broadcast %cst_298 : f32 to vector<8x32xf32>
    %659 = arith.addf %658, %657 : vector<8x32xf32>
    %660 = arith.divf %658, %659 : vector<8x32xf32>
    %661 = math.tanh %646 : vector<8x32xf32>
    %662 = arith.negf %650 : vector<8x32xf32>
    %663 = math.exp %662 : vector<8x32xf32>
    %cst_299 = arith.constant 1.000000e+00 : f32
    %664 = vector.broadcast %cst_299 : f32 to vector<8x32xf32>
    %665 = arith.addf %664, %663 : vector<8x32xf32>
    %666 = arith.divf %664, %665 : vector<8x32xf32>
    %667 = arith.mulf %660, %586 : vector<8x32xf32>
    %668 = arith.mulf %655, %661 : vector<8x32xf32>
    %669 = arith.addf %667, %668 : vector<8x32xf32>
    %670 = math.tanh %669 : vector<8x32xf32>
    %671 = arith.mulf %666, %670 : vector<8x32xf32>
    %672 = vector.broadcast %c6_i32 : i32 to vector<8x1xi32>
    %673 = arith.cmpi sgt, %13, %672 : vector<8x1xi32>
    %674 = vector.shape_cast %673 : vector<8x1xi1> to vector<8x1xi1>
    %675 = vector.broadcast %674 : vector<8x1xi1> to vector<8x32xi1>
    %676 = arith.select %675, %633, %583 : vector<8x32xi1>, vector<8x32xf32>
    %677 = arith.select %675, %631, %584 : vector<8x32xi1>, vector<8x32xf32>
    %678 = arith.select %675, %671, %585 : vector<8x32xi1>, vector<8x32xf32>
    %679 = arith.select %675, %669, %586 : vector<8x32xi1>, vector<8x32xf32>
    %680 = arith.select %675, %671, %30 : vector<8x32xi1>, vector<8x32xf32>
    %681 = arith.addf %588, %680 : vector<8x32xf32>
    %c7_i32 = arith.constant 7 : i32
    %c8_i32_300 = arith.constant 8 : i32
    %682 = arith.muli %c7_i32, %c8_i32_300 : i32
    %683 = tpu.assume_multiple %682, 8 : i32
    %684 = arith.index_cast %683 : i32 to index
    %c0_301 = arith.constant 0 : index
    %685 = vector.load %arg10[%684, %c0_301] : memref<64x128xf32, #tpu.memory_space<vmem>>, vector<8x128xf32>
    %686 = vector.extract_strided_slice %685 {offsets = [0, 0], sizes = [8, 32], strides = [1, 1]} : vector<8x128xf32> to vector<8x32xf32>
    %c0_302 = arith.constant 0 : index
    %c0_303 = arith.constant 0 : index
    %c0_304 = arith.constant 0 : index
    %687 = vector.load %arg4[%c0_302, %c0_303, %c0_304] : memref<4x32x32xf32, #tpu.memory_space<vmem>>, vector<1x32x32xf32>
    %688 = vector.shape_cast %687 : vector<1x32x32xf32> to vector<32x32xf32>
    %cst_305 = arith.constant dense<0.000000e+00> : vector<8x32xf32>
    %689 = tpu.matmul %676, %688, %cst_305 {dimension_numbers = #tpu.dot_dimension_numbers<[1], [0], [0], [1], [0, 0, 1, 1], [], []>} : vector<8x32xf32>, vector<32x32xf32>, vector<8x32xf32> -> vector<8x32xf32>
    %690 = arith.addf %686, %689 : vector<8x32xf32>
    %691 = vector.extract_strided_slice %685 {offsets = [0, 32], sizes = [8, 32], strides = [1, 1]} : vector<8x128xf32> to vector<8x32xf32>
    %c1_306 = arith.constant 1 : index
    %c0_307 = arith.constant 0 : index
    %c0_308 = arith.constant 0 : index
    %692 = vector.load %arg4[%c1_306, %c0_307, %c0_308] : memref<4x32x32xf32, #tpu.memory_space<vmem>>, vector<1x32x32xf32>
    %693 = vector.shape_cast %692 : vector<1x32x32xf32> to vector<32x32xf32>
    %cst_309 = arith.constant dense<0.000000e+00> : vector<8x32xf32>
    %694 = tpu.matmul %676, %693, %cst_309 {dimension_numbers = #tpu.dot_dimension_numbers<[1], [0], [0], [1], [0, 0, 1, 1], [], []>} : vector<8x32xf32>, vector<32x32xf32>, vector<8x32xf32> -> vector<8x32xf32>
    %695 = arith.addf %691, %694 : vector<8x32xf32>
    %696 = vector.extract_strided_slice %685 {offsets = [0, 64], sizes = [8, 32], strides = [1, 1]} : vector<8x128xf32> to vector<8x32xf32>
    %c2_310 = arith.constant 2 : index
    %c0_311 = arith.constant 0 : index
    %c0_312 = arith.constant 0 : index
    %697 = vector.load %arg4[%c2_310, %c0_311, %c0_312] : memref<4x32x32xf32, #tpu.memory_space<vmem>>, vector<1x32x32xf32>
    %698 = vector.shape_cast %697 : vector<1x32x32xf32> to vector<32x32xf32>
    %cst_313 = arith.constant dense<0.000000e+00> : vector<8x32xf32>
    %699 = tpu.matmul %676, %698, %cst_313 {dimension_numbers = #tpu.dot_dimension_numbers<[1], [0], [0], [1], [0, 0, 1, 1], [], []>} : vector<8x32xf32>, vector<32x32xf32>, vector<8x32xf32> -> vector<8x32xf32>
    %700 = arith.addf %696, %699 : vector<8x32xf32>
    %701 = vector.extract_strided_slice %685 {offsets = [0, 96], sizes = [8, 32], strides = [1, 1]} : vector<8x128xf32> to vector<8x32xf32>
    %c3_314 = arith.constant 3 : index
    %c0_315 = arith.constant 0 : index
    %c0_316 = arith.constant 0 : index
    %702 = vector.load %arg4[%c3_314, %c0_315, %c0_316] : memref<4x32x32xf32, #tpu.memory_space<vmem>>, vector<1x32x32xf32>
    %703 = vector.shape_cast %702 : vector<1x32x32xf32> to vector<32x32xf32>
    %cst_317 = arith.constant dense<0.000000e+00> : vector<8x32xf32>
    %704 = tpu.matmul %676, %703, %cst_317 {dimension_numbers = #tpu.dot_dimension_numbers<[1], [0], [0], [1], [0, 0, 1, 1], [], []>} : vector<8x32xf32>, vector<32x32xf32>, vector<8x32xf32> -> vector<8x32xf32>
    %705 = arith.addf %701, %704 : vector<8x32xf32>
    %706 = arith.negf %690 : vector<8x32xf32>
    %707 = math.exp %706 : vector<8x32xf32>
    %cst_318 = arith.constant 1.000000e+00 : f32
    %708 = vector.broadcast %cst_318 : f32 to vector<8x32xf32>
    %709 = arith.addf %708, %707 : vector<8x32xf32>
    %710 = arith.divf %708, %709 : vector<8x32xf32>
    %711 = arith.negf %695 : vector<8x32xf32>
    %712 = math.exp %711 : vector<8x32xf32>
    %cst_319 = arith.constant 1.000000e+00 : f32
    %713 = vector.broadcast %cst_319 : f32 to vector<8x32xf32>
    %714 = arith.addf %713, %712 : vector<8x32xf32>
    %715 = arith.divf %713, %714 : vector<8x32xf32>
    %716 = math.tanh %700 : vector<8x32xf32>
    %717 = arith.negf %705 : vector<8x32xf32>
    %718 = math.exp %717 : vector<8x32xf32>
    %cst_320 = arith.constant 1.000000e+00 : f32
    %719 = vector.broadcast %cst_320 : f32 to vector<8x32xf32>
    %720 = arith.addf %719, %718 : vector<8x32xf32>
    %721 = arith.divf %719, %720 : vector<8x32xf32>
    %722 = arith.mulf %715, %677 : vector<8x32xf32>
    %723 = arith.mulf %710, %716 : vector<8x32xf32>
    %724 = arith.addf %722, %723 : vector<8x32xf32>
    %725 = math.tanh %724 : vector<8x32xf32>
    %726 = arith.mulf %721, %725 : vector<8x32xf32>
    %727 = tpu.concatenate %726, %678 in 1 : vector<8x32xf32>, vector<8x32xf32> -> vector<8x64xf32>
    %c0_321 = arith.constant 0 : index
    %c0_322 = arith.constant 0 : index
    %c0_323 = arith.constant 0 : index
    %728 = vector.load %arg5[%c0_321, %c0_322, %c0_323] : memref<4x64x32xf32, #tpu.memory_space<vmem>>, vector<1x64x32xf32>
    %729 = vector.shape_cast %728 : vector<1x64x32xf32> to vector<64x32xf32>
    %cst_324 = arith.constant dense<0.000000e+00> : vector<8x32xf32>
    %730 = tpu.matmul %727, %729, %cst_324 {dimension_numbers = #tpu.dot_dimension_numbers<[1], [0], [0], [1], [0, 0, 1, 1], [], []>} : vector<8x64xf32>, vector<64x32xf32>, vector<8x32xf32> -> vector<8x32xf32>
    %731 = arith.addf %730, %17 : vector<8x32xf32>
    %c1_325 = arith.constant 1 : index
    %c0_326 = arith.constant 0 : index
    %c0_327 = arith.constant 0 : index
    %732 = vector.load %arg5[%c1_325, %c0_326, %c0_327] : memref<4x64x32xf32, #tpu.memory_space<vmem>>, vector<1x64x32xf32>
    %733 = vector.shape_cast %732 : vector<1x64x32xf32> to vector<64x32xf32>
    %cst_328 = arith.constant dense<0.000000e+00> : vector<8x32xf32>
    %734 = tpu.matmul %727, %733, %cst_328 {dimension_numbers = #tpu.dot_dimension_numbers<[1], [0], [0], [1], [0, 0, 1, 1], [], []>} : vector<8x64xf32>, vector<64x32xf32>, vector<8x32xf32> -> vector<8x32xf32>
    %735 = arith.addf %734, %21 : vector<8x32xf32>
    %c2_329 = arith.constant 2 : index
    %c0_330 = arith.constant 0 : index
    %c0_331 = arith.constant 0 : index
    %736 = vector.load %arg5[%c2_329, %c0_330, %c0_331] : memref<4x64x32xf32, #tpu.memory_space<vmem>>, vector<1x64x32xf32>
    %737 = vector.shape_cast %736 : vector<1x64x32xf32> to vector<64x32xf32>
    %cst_332 = arith.constant dense<0.000000e+00> : vector<8x32xf32>
    %738 = tpu.matmul %727, %737, %cst_332 {dimension_numbers = #tpu.dot_dimension_numbers<[1], [0], [0], [1], [0, 0, 1, 1], [], []>} : vector<8x64xf32>, vector<64x32xf32>, vector<8x32xf32> -> vector<8x32xf32>
    %739 = arith.addf %738, %25 : vector<8x32xf32>
    %c3_333 = arith.constant 3 : index
    %c0_334 = arith.constant 0 : index
    %c0_335 = arith.constant 0 : index
    %740 = vector.load %arg5[%c3_333, %c0_334, %c0_335] : memref<4x64x32xf32, #tpu.memory_space<vmem>>, vector<1x64x32xf32>
    %741 = vector.shape_cast %740 : vector<1x64x32xf32> to vector<64x32xf32>
    %cst_336 = arith.constant dense<0.000000e+00> : vector<8x32xf32>
    %742 = tpu.matmul %727, %741, %cst_336 {dimension_numbers = #tpu.dot_dimension_numbers<[1], [0], [0], [1], [0, 0, 1, 1], [], []>} : vector<8x64xf32>, vector<64x32xf32>, vector<8x32xf32> -> vector<8x32xf32>
    %743 = arith.addf %742, %29 : vector<8x32xf32>
    %744 = arith.negf %731 : vector<8x32xf32>
    %745 = math.exp %744 : vector<8x32xf32>
    %cst_337 = arith.constant 1.000000e+00 : f32
    %746 = vector.broadcast %cst_337 : f32 to vector<8x32xf32>
    %747 = arith.addf %746, %745 : vector<8x32xf32>
    %748 = arith.divf %746, %747 : vector<8x32xf32>
    %749 = arith.negf %735 : vector<8x32xf32>
    %750 = math.exp %749 : vector<8x32xf32>
    %cst_338 = arith.constant 1.000000e+00 : f32
    %751 = vector.broadcast %cst_338 : f32 to vector<8x32xf32>
    %752 = arith.addf %751, %750 : vector<8x32xf32>
    %753 = arith.divf %751, %752 : vector<8x32xf32>
    %754 = math.tanh %739 : vector<8x32xf32>
    %755 = arith.negf %743 : vector<8x32xf32>
    %756 = math.exp %755 : vector<8x32xf32>
    %cst_339 = arith.constant 1.000000e+00 : f32
    %757 = vector.broadcast %cst_339 : f32 to vector<8x32xf32>
    %758 = arith.addf %757, %756 : vector<8x32xf32>
    %759 = arith.divf %757, %758 : vector<8x32xf32>
    %760 = arith.mulf %753, %679 : vector<8x32xf32>
    %761 = arith.mulf %748, %754 : vector<8x32xf32>
    %762 = arith.addf %760, %761 : vector<8x32xf32>
    %763 = math.tanh %762 : vector<8x32xf32>
    %764 = arith.mulf %759, %763 : vector<8x32xf32>
    %765 = vector.broadcast %c7_i32 : i32 to vector<8x1xi32>
    %766 = arith.cmpi sgt, %13, %765 : vector<8x1xi32>
    %767 = vector.shape_cast %766 : vector<8x1xi1> to vector<8x1xi1>
    %768 = vector.broadcast %767 : vector<8x1xi1> to vector<8x32xi1>
    %769 = arith.select %768, %726, %676 : vector<8x32xi1>, vector<8x32xf32>
    %770 = arith.select %768, %724, %677 : vector<8x32xi1>, vector<8x32xf32>
    %771 = arith.select %768, %764, %678 : vector<8x32xi1>, vector<8x32xf32>
    %772 = arith.select %768, %762, %679 : vector<8x32xi1>, vector<8x32xf32>
    %773 = arith.select %768, %764, %30 : vector<8x32xi1>, vector<8x32xf32>
    %774 = arith.addf %681, %773 : vector<8x32xf32>
    %c8_i32_340 = arith.constant 8 : i32
    %c0_341 = arith.constant 0 : index
    %c0_342 = arith.constant 0 : index
    %775 = vector.load %arg7[%c0_341, %c0_342] : memref<1x32xf32, #tpu.memory_space<vmem>>, vector<1x32xf32>
    %776 = vector.broadcast %775 : vector<1x32xf32> to vector<8x32xf32>
    %777 = arith.mulf %774, %776 : vector<8x32xf32>
    %cst_343 = arith.constant dense<0.000000e+00> : vector<8xf32>
    %778 = vector.multi_reduction <add>, %777, %cst_343 [1] : vector<8x32xf32> to vector<8xf32>
    %779 = vector.shape_cast %778 : vector<8xf32> to vector<8x1xf32>
    %c0_344 = arith.constant 0 : index
    %c0_345 = arith.constant 0 : index
    %780 = vector.load %arg8[%c0_344, %c0_345] : memref<1x1xf32, #tpu.memory_space<vmem>>, vector<1x1xf32>
    %781 = vector.broadcast %780 : vector<1x1xf32> to vector<8x1xf32>
    %782 = arith.addf %779, %781 : vector<8x1xf32>
    %c0_346 = arith.constant 0 : index
    %c0_347 = arith.constant 0 : index
    %783 = vector.load %arg9[%c0_346, %c0_347] : memref<8x1xf32, #tpu.memory_space<vmem>>, vector<8x1xf32>
    tpu.vector_store %arg9[%c0_346, %c0_347], %782 {strides = array<i32>} : memref<8x1xf32, #tpu.memory_space<vmem>>, vector<8x1xf32>,
    return
  }
}

</mosaic_0001>

<bundles_post_ra>
// kernel: tpu_custom_call.1
= control target key start
LH: loop header
LB: loop body
LE: loop exit
PB: predicated region body
PF: predicated region fallthrough
CT: control target
= control target key end

     0   :  { %v9961_v0 = vmov 0.0   ;;  %v9963_v1 = vmov 0   ;;  %vm7656_vm0 = vmmov 0   ;;  %v34_v29 = vlaneseq  ;;  %s7657_s26 = smov 64   ;;  %s7658_s27 = smov 32   ;;  %s9951_s4 = inlined_call_operand.vmem [shape: f32[4,32,32], index: 4, kind: input, shape index: {}]   ;;  %s9952_s0 = inlined_call_operand.vmem [shape: s32[64,1], index: 0, kind: input, shape index: {}]   ;;  %s9953_s2 = inlined_call_operand.vmem [shape: f32[56,128], index: 2, kind: input, shape index: {}]   ;;  %s9954_s3 = inlined_call_operand.vmem [shape: f32[1,128], index: 3, kind: input, shape index: {}]   ;;  %s9955_s1 = inlined_call_operand.vmem [shape: s32[8,1], index: 1, kind: input, shape index: {}]   ;;  %s9956_s5 = inlined_call_operand.vmem [shape: f32[4,64,32], index: 5, kind: input, shape index: {}]   ;;  %s9957_s6 = inlined_call_operand.vmem [shape: f32[4,1,32], index: 6, kind: input, shape index: {}]   ;;  %s9958_s8 = inlined_call_operand.<no memory space> [shape: f32[1,1], index: 8, kind: input, shape index: {}]   ;;  %s9959_s7 = inlined_call_operand.vmem [shape: f32[1,32], index: 7, kind: input, shape index: {}]   ;;  %s9960_s9 = inlined_call_operand.vmem [shape: f32[8,1], index: 9, kind: output, shape index: {}]  }
   0x1   :  { %6324 = vmatprep.subr.mxu1 %v9961_v0  ;;  %7290 = vset.pattern.permute.xlu0 %v9963_v1  ;;  %v7715_v2 = vld [vmem:[%s9951_s4 + $0x18] sm:$0xff]  ;;  %v36_v3 = vld [vmem:[%s9952_s0] sm:$0xff]  ;;  %v7723_v4 = vld [vmem:[%s9951_s4 + $0x10] sm:$0xff]  ;;  %vm98_vm1 = vcmask 457728   ;;  %s7659_s10 = smov 96   ;;  %vm273_vm12 = vcmask 261120  }
   0x2   :  { %6325 = vmatpush3.msra.mxu1 %v7715_v2  ;;  %45 = vperm.xlu0 %7290, %v36_v3   ;;  %v38_v5 = vld [vmem:[%s9952_s0 + $0x10] sm:$0xff]  ;;  %v7734_v6 = vld [vmem:[%s9951_s4 + $0x8] sm:$0xff]  ;;  %v7744_v8 = vld [vmem:[%s9951_s4] sm:$0xff]  ;;  %v35_v30 = vand.u32 127, %v34_v29  ;;  %vm637_vm13 = vcmask 523264  }
   0x3   :  { %6326 = vmatprep.subr.mxu1 %v9961_v0  ;;  %7291 = vset.pattern.permute.xlu1 %v9963_v1  ;;  %v37_v7 = vld [vmem:[%s9952_s0 + $0x8] sm:$0xff]  ;;  %v39_v9 = vld [vmem:[%s9952_s0 + $0x18] sm:$0xff]  ;;  %v40_v11 = vld [vmem:[%s9952_s0 + $0x20] sm:$0xff] }
   0x4   :  { %6327 = vmatpush3.msra.mxu1 %v7723_v4  ;;  %51 = vperm.xlu1 %7291, %v38_v5   ;;  %v7756_v10 = vld [vmem:[%s9951_s4 + $0x38] sm:$0xff]  ;;  %v7767_v12 = vld [vmem:[%s9951_s4 + $0x30] sm:$0xff]  ;;  %v41_v13 = vld [vmem:[%s9952_s0 + $0x28] sm:$0xff] }
   0x5   :  { %6328 = vmatprep.subr.mxu1 %v9961_v0  ;;  %6332 = vmatprep.mubr.msk.f32.mxu1 %vm7656_vm0, %v9961_v0  ;;  %v90_v14 = vld [vmem:[%s9953_s2 + $0x30] sm:$0xff]  ;;  %v7780_v15 = vld [vmem:[%s9951_s4 + $0x28] sm:$0xff]  ;;  %v7792_v17 = vld [vmem:[%s9951_s4 + $0x20] sm:$0xff] }
   0x6   :  { %6329 = vmatpush3.msra.mxu1 %v7734_v6  ;;  %48 = vperm.xlu0 %7290, %v37_v7   ;;  %v42_v16 = vld [vmem:[%s9952_s0 + $0x30] sm:$0xff]  ;;  %v43_v18 = vld [vmem:[%s9952_s0 + $0x38] sm:$0xff]  ;;  %v89_v20 = vld [vmem:[%s9953_s2 + $0x28] sm:$0xff] }
   0x7   :  { %6330 = vmatprep.subr.mxu1 %v9961_v0  ;;  %6298 = vmatprep.subr.mxu0 %v90_v14  ;;  %v7802_v19 = vld [vmem:[%s9951_s4 + $0x58] sm:$0xff]  ;;  %v7813_v21 = vld [vmem:[%s9951_s4 + $0x50] sm:$0xff]  ;;  %v88_v22 = vld [vmem:[%s9953_s2 + $0x20] sm:$0xff] }
   0x8   :  { %6331 = vmatpush3.msra.mxu1 %v7744_v8  ;;  %54 = vperm.xlu1 %7291, %v39_v9   ;;  %v7825_v23 = vld [vmem:[%s9951_s4 + $0x48] sm:$0xff]  ;;  %v87_v24 = vld [vmem:[%s9953_s2 + $0x18] sm:$0xff]  ;;  %v7835_v25 = vld [vmem:[%s9951_s4 + $0x40] sm:$0xff] }
   0x9   :  { %6333 = vmatmul.mubr.f32.vlgmr.msra.gmra.mxu1 %v9961_v0  ;;  %6335 = vmatprep.subr.mxu1 %v9961_v0  ;;  %v86_v26 = vld [vmem:[%s9953_s2 + $0x10] sm:$0xff]  ;;  %v85_v27 = vld [vmem:[%s9953_s2 + $0x8] sm:$0xff]  ;;  %v84_v28 = vld [vmem:[%s9953_s2] sm:$0xff] }
   0xa   :  { %6336 = vmatpush3.msra.mxu1 %v7756_v10  ;;  %57 = vperm.xlu0 %7290, %v40_v11   ;;  %v7860_v36 = vld [vmem:[%s9951_s4 + $0x78] sm:$0xff]  ;;  %v7867_v39 = vld [vmem:[%s9951_s4 + $0x70] sm:$0xff]  ;;  %v7876_v42 = vld [vmem:[%s9951_s4 + $0x68] sm:$0xff] }
   0xb   :  { %6337 = vmatprep.subr.mxu1 %v9961_v0  ;;  %6343 = vmatprep.mubr.msk.f32.mxu1 %vm7656_vm0, %v9961_v0  ;;  %v7885_v45 = vld [vmem:[%s9951_s4 + $0x60] sm:$0xff] }
   0xc   :  { %6338 = vmatpush3.msra.mxu1 %v7767_v12  ;;  %60 = vperm.xlu1 %7291, %v41_v13   ;;  %v5673_v57 = vld [vmem:[%s9954_s3] ss:$0 sm:$0xff] }
   0xd   :  { %6339 = vmatprep.subr.mxu1 %v9961_v0  ;;  %6299 = vmatpush3.msra.mxu0 %v90_v14 }
   0xe   :  { %6340 = vmatpush3.msra.mxu1 %v7780_v15  ;;  %63 = vperm.xlu0 %7290, %v42_v16  }
   0xf   :  { %6341 = vmatprep.subr.mxu1 %v9961_v0  ;;  %6300 = vmatprep.subr.mxu0 %v89_v20 }
  0x10   :  { %6342 = vmatpush3.msra.mxu1 %v7792_v17  ;;  %66 = vperm.xlu1 %7291, %v43_v18  }
  0x11   :  { %6344 = vmatmul.mubr.f32.vlgmr.msra.gmra.mxu1 %v9961_v0  ;;  %6346 = vmatprep.subr.mxu1 %v9961_v0 }
  0x12   :  { %6347 = vmatpush3.msra.mxu1 %v7802_v19  ;;  %6354 = vmatprep.mubr.msk.f32.mxu1 %vm7656_vm0, %v9961_v0 }
  0x13   :  { %6348 = vmatprep.subr.mxu1 %v9961_v0  ;;  %6301 = vmatpush3.msra.mxu0 %v89_v20  ;;  %v7924_v20 = vld [vmem:[%s9955_s1] sm:$0xff] }
  0x14   :  { %6349 = vmatpush3.msra.mxu1 %v7813_v21  ;;  %6302 = vmatprep.subr.mxu0 %v88_v22  ;;  %vm972_vm10 = vcmp.gt.s32.totalorder %v7924_v20, 0  ;;  %vm1638_vm14 = vcmp.gt.s32.totalorder %v7924_v20, 1 }
  0x15   :  { %6350 = vmatprep.subr.mxu1 %v9961_v0  ;;  %6303 = vmatpush3.msra.mxu0 %v88_v22 }
  0x16   :  { %6351 = vmatpush3.msra.mxu1 %v7825_v23  ;;  %6304 = vmatprep.subr.mxu0 %v87_v24 }
  0x17   :  { %6352 = vmatprep.subr.mxu1 %v9961_v0  ;;  %6305 = vmatpush3.msra.mxu0 %v87_v24 }
  0x18   :  { %6353 = vmatpush3.msra.mxu1 %v7835_v25  ;;  %6306 = vmatprep.subr.mxu0 %v86_v26 }
  0x19   :  { %6355 = vmatmul.mubr.f32.vlgmr.msra.gmra.mxu1 %v9961_v0  ;;  %6307 = vmatpush3.msra.mxu0 %v86_v26 }
  0x1a   :  { %6368 = vmatprep.subr.mxu1 %v9961_v0  ;;  %6308 = vmatprep.subr.mxu0 %v85_v27 }
  0x1b   :  { %6384 = vmatprep.mubr.msk.f32.mxu1 %vm7656_vm0, %v9961_v0  ;;  %6309 = vmatpush3.msra.mxu0 %v85_v27 }
  0x1c   :  { %6310 = vmatprep.subr.mxu0 %v84_v28 }
  0x1d   :  { %6311 = vmatpush3.msra.mxu0 %v84_v28  ;;  %v973_v28 = vsel %vm972_vm10, 1, %v9963_v1 }
  0x1e   :  { %6357 = vmatprep.subr.mxu0 %v9961_v0 }
  0x7d   :  { %v46_v31 = vpop.permute.xlu0 %45 }
  0x7e   :  { %vm68_vm2 = vcmp.eq.s32.totalorder %v46_v31, %v35_v30 }
  0x7f   :  { %v52_v32 = vpop.permute.xlu1 %51  ;;  %v76_v33 = vsel %vm68_vm2, 1.0, %v9961_v0 }
  0x80   :  { %vm70_vm3 = vcmp.eq.s32.totalorder %v52_v32, %v35_v30  ;;  %6312 = vmatprep.mubr.msk.f32.mxu0 %vm98_vm1, %v76_v33 }
  0x81   :  { %v49_v34 = vpop.permute.xlu0 %48  ;;  %v78_v35 = vsel %vm70_vm3, 1.0, %v9961_v0 }
  0x82   :  { %vm69_vm4 = vcmp.eq.s32.totalorder %v49_v34, %v35_v30 }
  0x83   :  { %v77_v37 = vsel %vm69_vm4, 1.0, %v9961_v0  ;;  %v55_v38 = vpop.permute.xlu1 %54 }
  0x84   :  { %6313 = vmatmul.mubr.msk.f32.vlgmr.msra.gmra.mxu0 %vm98_vm1, %v77_v37  ;;  %vm71_vm5 = vcmp.eq.s32.totalorder %v55_v38, %v35_v30 }
  0x85   :  { %v79_v40 = vsel %vm71_vm5, 1.0, %v9961_v0  ;;  %v58_v41 = vpop.permute.xlu0 %57  ;;  %6315 = vmatprep.mubr.msk.f32.mxu0 %vm98_vm1, %v78_v35  ;;  %6358 = vmatpush3.msra.mxu0 %v7860_v36 }
  0x86   :  { %vm72_vm6 = vcmp.eq.s32.totalorder %v58_v41, %v35_v30  ;;  %6359 = vmatprep.subr.mxu0 %v9961_v0 }
  0x87   :  { %v80_v43 = vsel %vm72_vm6, 1.0, %v9961_v0  ;;  %v61_v44 = vpop.permute.xlu1 %60  ;;  %6360 = vmatpush3.msra.mxu0 %v7867_v39 }
  0x88   :  { %6316 = vmatmul.mubr.msk.f32.gmra.mxu0 %vm98_vm1, %v79_v40  ;;  %vm73_vm7 = vcmp.eq.s32.totalorder %v61_v44, %v35_v30  ;;  %6361 = vmatprep.subr.mxu0 %v9961_v0 }
  0x89   :  { %v81_v46 = vsel %vm73_vm7, 1.0, %v9961_v0  ;;  %6318 = vmatprep.mubr.msk.f32.mxu0 %vm98_vm1, %v80_v43  ;;  %v64_v47 = vpop.permute.xlu0 %63  ;;  %6362 = vmatpush3.msra.mxu0 %v7876_v42 }
  0x8a   :  { %vm74_vm8 = vcmp.eq.s32.totalorder %v64_v47, %v35_v30  ;;  %6363 = vmatprep.subr.mxu0 %v9961_v0 }
  0x8b   :  { %v82_v48 = vsel %vm74_vm8, 1.0, %v9961_v0  ;;  %v67_v49 = vpop.permute.xlu1 %66  ;;  %6364 = vmatpush3.msra.mxu0 %v7885_v45 }
  0x8c   :  { %6319 = vmatmul.mubr.msk.f32.gmra.mxu0 %vm98_vm1, %v81_v46  ;;  %vm75_vm9 = vcmp.eq.s32.totalorder %v67_v49, %v35_v30  ;;  %6387 = vmatprep.subr.mxu0 %v9961_v0 }
  0x8d   :  { %v83_v50 = vsel %vm75_vm9, 1.0, %v9961_v0  ;;  %6321 = vmatprep.mubr.msk.f32.mxu0 %vm98_vm1, %v82_v48 }
  0x90   :  { %6322 = vmatmul.mubr.msk.f32.gmra.mxu0 %vm98_vm1, %v83_v50  ;;  %vm2305_vm1 = vcmp.gt.s32.totalorder %v7924_v20, 2 }
  0x91   :  { %6365 = vmatprep.mubr.msk.f32.mxu0 %vm7656_vm0, %v9961_v0 }
  0x94   :  { %6366 = vmatmul.mubr.f32.vlgmr.msra.gmra.mxu0 %v9961_v0 }
  0x95   :  { %6403 = vmatprep.mubr.msk.f32.mxu0 %vm7656_vm0, %v9961_v0 }
  0xc9   :  { %v343_v51 = vpop.f32.mrf.mxu1 }
  0xcb   :  { %v6334_v52 = vpop.f32.mrf.mxu1 }
  0xcc   :  { %v7948_v52 = vld [vmem:[%s9956_s5 + $0x78] sm:$0xff] }
  0xcd   :  { %6388 = vmatpush3.msra.mxu0 %v7948_v52 }
  0xce   :  { %6389 = vmatprep.subr.mxu0 %v9961_v0 }
  0xd1   :  { %v419_v53 = vpop.f32.mrf.mxu1 }
  0xd3   :  { %v6345_v54 = vpop.f32.mrf.mxu1 }
  0xd4   :  { %v7960_v54 = vld [vmem:[%s9956_s5 + $0x70] sm:$0xff] }
  0xd5   :  { %6390 = vmatpush3.msra.mxu0 %v7960_v54 }
  0xd6   :  { %6391 = vmatprep.subr.mxu0 %v9961_v0 }
  0xd9   :  { %v499_v55 = vpop.f32.mrf.mxu1 }
  0xda   :  { %504 = vrot.lane.b32.xlu0 %v499_v55, %s7657_s26  ;;  %v7967_v55 = vld [vmem:[%s9956_s5 + $0x28] sm:$0xff] }
  0xdb   :  { %v6356_v56 = vpop.f32.mrf.mxu1 }
  0xdc   :  { %v7972_v56 = vld [vmem:[%s9956_s5 + $0x68] sm:$0xff] }
  0xdd   :  { %6392 = vmatpush3.msra.mxu0 %v7972_v56 }
  0xde   :  { %424 = vrot.lane.b32.xlu0 %v419_v53, %s7658_s27  ;;  %v7953_v53 = vld [vmem:[%s9956_s5 + $0x30] sm:$0xff]  ;;  %6393 = vmatprep.subr.mxu0 %v9961_v0 }
 0x144   :  { %v6314_v58 = vpop.f32.mrf.mxu0 }
 0x145   :  { %v7908_v59 = vadd.f32 %v6314_v58, %v5673_v57  ;;  %v7986_v58 = vld [vmem:[%s9956_s5 + $0x60] sm:$0xff] }
 0x146   :  { %v189_v60 = vpop.f32.mrf.mxu0  ;;  %6394 = vmatpush3.msra.mxu0 %v7986_v58 }
 0x147   :  { %v7912_v3 = vadd.f32 %v5673_v57, %v189_v60  ;;  %v7995_v60 = vld [vmem:[%s9956_s5 + $0x18] sm:$0xff]  ;;  %6395 = vmatprep.subr.mxu0 %v9961_v0 }
 0x148   :  { %v6317_v61 = vpop.f32.mrf.mxu0 }
 0x149   :  { %v7910_v62 = vadd.f32 %v6317_v61, %v5673_v57  ;;  %v347_v31 = vadd.f32 %v343_v51, %v7912_v3  ;;  %v7943_v51 = vld [vmem:[%s9956_s5 + $0x38] sm:$0xff] }
 0x14a   :  { %v199_v63 = vpop.f32.mrf.mxu0  ;;  %6369 = vmatpush3.msra.mxu1 %v7943_v51  ;;  %v8002_v61 = vld [vmem:[%s9956_s5 + $0x58] sm:$0xff] }
 0x14b   :  { %9981 = vst [vmem:[#allocation4_spill] sm:$0xff] %v7910_v62  ;;  %v7914_v5 = vadd.f32 %v5673_v57, %v199_v63  ;;  %v5701_v32 = vmul.f32 -1.442695, %v347_v31  ;;  %6370 = vmatprep.subr.mxu1 %v9961_v0  ;;  %6396 = vmatpush3.msra.mxu0 %v8002_v61 }
 0x14c   :  { %v6320_v7 = vpop.f32.mrf.mxu0  ;;  %v505_v9 = vpop.permute.xlu0 %504  ;;  %6371 = vmatpush3.msra.mxu1 %v7953_v53  ;;  %6397 = vmatprep.subr.mxu0 %v9961_v0 }
 0x14d   :  { %9982 = vst [vmem:[#allocation5_spill] sm:$0xff] %v7914_v5  ;;  %v7916_v11 = vadd.f32 %v6320_v7, %v5673_v57  ;;  %v507_v13 = vadd.f32 %v505_v9, %v7912_v3  ;;  %6372 = vmatprep.subr.mxu1 %v9961_v0  ;;  %v8009_v7 = vld [vmem:[%s9956_s5 + $0x10] sm:$0xff] }
 0x14e   :  { %v209_v14 = vpop.f32.mrf.mxu0  ;;  %6373 = vmatpush3.msra.mxu1 %v7967_v55  ;;  %v8016_v9 = vld [vmem:[%s9956_s5 + $0x50] sm:$0xff] }
 0x14f   :  { %9983 = vst [vmem:[#allocation6_spill] sm:$0xff] %v7916_v11  ;;  %7292 = vtanh.f32 %v507_v13  ;;  %v7919_v16 = vadd.f32 %v5673_v57, %v209_v14  ;;  %6374 = vmatprep.subr.mxu1 %v9961_v0  ;;  %v8023_v13 = vld [vmem:[%s9956_s5 + $0x8] sm:$0xff]  ;;  %6398 = vmatpush3.msra.mxu0 %v8016_v9 }
 0x150   :  { %v6323_v18 = vpop.f32.mrf.mxu0  ;;  %7294 = vpow2.f32 %v5701_v32  ;;  %v425_v40 = vpop.permute.xlu0 %424  ;;  %v8030_v14 = vld [vmem:[%s9956_s5 + $0x48] sm:$0xff]  ;;  %6399 = vmatprep.subr.mxu0 %v9961_v0 }
 0x151   :  { %9984 = vst [vmem:[#allocation7_spill] sm:$0xff] %v7919_v16  ;;  %v7926_v22 = vadd.f32 %v6323_v18, %v5673_v57  ;;  %v427_v41 = vadd.f32 %v425_v40, %v7912_v3  ;;  %v8037_v18 = vld [vmem:[%s9956_s5] sm:$0xff]  ;;  %6400 = vmatpush3.msra.mxu0 %v8030_v14  ;;  %v8072_v40 = vld [vmem:[%s9956_s5 + $0xf8] sm:$0xff] }
 0x152   :  { %v219_v24 = vpop.f32.mrf.mxu0  ;;  %6401 = vmatprep.subr.mxu0 %v9961_v0 }
 0x153   :  { %9985 = vst [vmem:[#allocation8_spill] sm:$0xff] %v7926_v22  ;;  %v7928_v26 = vadd.f32 %v5673_v57, %v219_v24  ;;  %v5702_v43 = vmul.f32 -1.442695, %v427_v41  ;;  %v7981_v57 = vld [vmem:[%s9956_s5 + $0x20] sm:$0xff] }
 0x154   :  { %v579_v27 = vpop.f32.mrf.mxu0  ;;  %6375 = vmatpush3.msra.mxu1 %v7981_v57  ;;  %v8044_v24 = vld [vmem:[%s9956_s5 + $0x40] sm:$0xff]  ;;  %v9991_v20 = vld [vmem:[#allocation5_spill] sm:$0xff] }
 0x155   :  { %9986 = vst [vmem:[#allocation9_spill] sm:$0xff] %v7928_v26  ;;  %584 = vrot.lane.b32.xlu0 %v579_v27, %s7659_s10  ;;  %6376 = vmatprep.subr.mxu1 %v9961_v0 }
 0x156   :  { %v6367_v29 = vpop.f32.mrf.mxu0  ;;  %6377 = vmatpush3.msra.mxu1 %v7995_v60  ;;  %6402 = vmatpush3.msra.mxu0 %v8044_v24 }
 0x157   :  { %6378 = vmatprep.subr.mxu1 %v9961_v0  ;;  %6425 = vmatprep.subr.mxu0 %v9961_v0 }
 0x158   :  { %6379 = vmatpush3.msra.mxu1 %v8009_v7 }
 0x159   :  { %975 = vperm.xlu0 %7290, %v973_v28   ;;  %6380 = vmatprep.subr.mxu1 %v9961_v0 }
 0x15a   :  { %6381 = vmatpush3.msra.mxu1 %v8023_v13 }
 0x15b   :  { %6382 = vmatprep.subr.mxu1 %v9961_v0 }
 0x15c   :  { %v7293_v30 = vpop.eup %7292  ;;  %6383 = vmatpush3.msra.mxu1 %v8037_v18 }
 0x15d   :  { %609 = vrot.lane.b32.xlu1 %v7293_v30, %s7657_s26  ;;  %v7295_v33 = vpop.eup %7294  ;;  %6406 = vmatprep.subr.mxu1 %v9961_v0 }
 0x15e   :  { %v591_v34 = vadd.f32 1.0, %v7295_v33 }
 0x160   :  { %7296 = vrcp.f32 %v591_v34 }
 0x161   :  { %7298 = vpow2.f32 %v5702_v43  ;;  %v8080_v43 = vld [vmem:[%s9956_s5 + $0xb0] sm:$0xff] }
 0x16d   :  { %v7297_v35 = vpop.eup %7296 }
 0x16e   :  { %v7299_v44 = vpop.eup %7298 }
 0x16f   :  { %v597_v46 = vadd.f32 1.0, %v7299_v44  ;;  %v8085_v44 = vld [vmem:[%s9956_s5 + $0xf0] sm:$0xff] }
 0x171   :  { %7300 = vrcp.f32 %v597_v46  ;;  %v8094_v46 = vld [vmem:[%s9956_s5 + $0xa8] sm:$0xff] }
 0x17e   :  { %v7301_v47 = vpop.eup %7300 }
 0x17f   :  { %v607_v48 = vmul.f32 0.0, %v7301_v47  ;;  %v8099_v47 = vld [vmem:[%s9956_s5 + $0xe8] sm:$0xff] }
 0x1c7   :  { %v585_v27 = vpop.permute.xlu0 %584 }
 0x1c8   :  { %v587_v28 = vadd.f32 %v585_v27, %v7912_v3  ;;  %v8127_v27 = vld [vmem:[%s9956_s5 + $0xd8] sm:$0xff] }
 0x1ca   :  { %v5703_v29 = vmul.f32 -1.442695, %v587_v28  ;;  %v8136_v28 = vld [vmem:[%s9956_s5 + $0x90] sm:$0xff] }
 0x1cf   :  { %v610_v37 = vpop.permute.xlu1 %609 }
 0x1d0   :  { %v612_v38 = vmul.f32 %v7297_v35, %v610_v37 }
 0x1d2   :  { %614 = vrot.lane.b32.xlu1 %v612_v38, %s7658_s27  ;;  %v8067_v38 = vld [vmem:[%s9956_s5 + $0xb8] sm:$0xff] }
 0x1d4   :  { %v8054_v32 = vpop.permute.xlu0 %975 }
 0x1d5   :  { %vm977_vm11 = vcmp.eq.s32.totalorder %v8054_v32, 1 }
 0x244   :  { %v615_v49 = vpop.permute.xlu1 %614 }
 0x245   :  { %v7937_v50 = vadd.f32 %v615_v49, %v607_v48  ;;  %v8108_v48 = vld [vmem:[%s9956_s5 + $0xa0] sm:$0xff] }
 0x246   :  { %v8113_v49 = vld [vmem:[%s9956_s5 + $0xe0] sm:$0xff] }
 0x247   :  { %7302 = vtanh.f32 %v7937_v50 }
 0x248   :  { %7304 = vpow2.f32 %v5703_v29  ;;  %v8141_v29 = vld [vmem:[%s9956_s5 + $0xd0] sm:$0xff] }
 0x254   :  { %v7303_v63 = vpop.eup %7302 }
 0x255   :  { %620 = vrot.lane.b32.xlu1 %v7303_v63, %s7657_s26  ;;  %v7305_v30 = vpop.eup %7304  ;;  %v8122_v63 = vld [vmem:[%s9956_s5 + $0x98] sm:$0xff] }
 0x256   :  { %v604_v31 = vadd.f32 1.0, %v7305_v30  ;;  %v8150_v30 = vld [vmem:[%s9956_s5 + $0x88] sm:$0xff] }
 0x258   :  { %7306 = vrcp.f32 %v604_v31  ;;  %v8155_v31 = vld [vmem:[%s9956_s5 + $0xc8] sm:$0xff] }
 0x265   :  { %v7307_v33 = vpop.eup %7306 }
 0x2c7   :  { %v621_v34 = vpop.permute.xlu1 %620 }
 0x2c8   :  { %v623_v35 = vmul.f32 %v7307_v33, %v621_v34  ;;  %v8164_v33 = vld [vmem:[%s9956_s5 + $0x80] sm:$0xff] }
 0x2c9   :  { %v8171_v34 = vld [vmem:[%s9956_s5 + $0xc0] sm:$0xff] }
 0x2ca   :  { %625 = vrot.lane.b32.xlu1 %v623_v35, %s7658_s27  ;;  %v8060_v37 = vsel %vm977_vm11, %v623_v35, 0.0  ;;  %v8285_v35 = vld [vmem:[%s9957_s6 + $0x3] ss:$0 sm:$0xff] }
 0x2cb   :  { %986 = vrot.lane.b32.xlu0 %v8060_v37, %s7658_s27  ;;  %9987 = vst [vmem:[#allocation10_spill] sm:$0xff] %v8285_v35 }
 0x33c   :  { %v626_v3 = vpop.permute.xlu1 %625 }
 0x33d   :  { %v628_v41 = vsel %vm273_vm12, %v626_v3, 0.0 }
 0x33e   :  { %6385 = vmatmul.mubr.msk.f32.vlgmr.msra.gmra.mxu1 %vm637_vm13, %v628_v41  ;;  %6404 = vmatmul.mubr.msk.f32.vlgmr.msra.gmra.mxu0 %vm637_vm13, %v628_v41 }
 0x33f   :  { %6407 = vmatpush3.msra.mxu1 %v8067_v38  ;;  %6426 = vmatpush3.msra.mxu0 %v8072_v40 }
 0x340   :  { %6408 = vmatprep.subr.mxu1 %v9961_v0  ;;  %6427 = vmatprep.subr.mxu0 %v9961_v0 }
 0x341   :  { %6409 = vmatpush3.msra.mxu1 %v8080_v43  ;;  %6428 = vmatpush3.msra.mxu0 %v8085_v44 }
 0x342   :  { %6410 = vmatprep.subr.mxu1 %v9961_v0  ;;  %6429 = vmatprep.subr.mxu0 %v9961_v0 }
 0x343   :  { %6411 = vmatpush3.msra.mxu1 %v8094_v46  ;;  %6430 = vmatpush3.msra.mxu0 %v8099_v47 }
 0x344   :  { %6412 = vmatprep.subr.mxu1 %v9961_v0  ;;  %6431 = vmatprep.subr.mxu0 %v9961_v0 }
 0x345   :  { %6413 = vmatpush3.msra.mxu1 %v8108_v48  ;;  %6432 = vmatpush3.msra.mxu0 %v8113_v49 }
 0x346   :  { %6414 = vmatprep.subr.mxu1 %v9961_v0  ;;  %6433 = vmatprep.subr.mxu0 %v9961_v0 }
 0x347   :  { %6415 = vmatpush3.msra.mxu1 %v8122_v63  ;;  %6434 = vmatpush3.msra.mxu0 %v8127_v27 }
 0x348   :  { %6416 = vmatprep.subr.mxu1 %v9961_v0  ;;  %6435 = vmatprep.subr.mxu0 %v9961_v0 }
 0x349   :  { %6417 = vmatpush3.msra.mxu1 %v8136_v28  ;;  %6436 = vmatpush3.msra.mxu0 %v8141_v29 }
 0x34a   :  { %6418 = vmatprep.subr.mxu1 %v9961_v0  ;;  %6437 = vmatprep.subr.mxu0 %v9961_v0 }
 0x34b   :  { %6419 = vmatpush3.msra.mxu1 %v8150_v30  ;;  %6438 = vmatpush3.msra.mxu0 %v8155_v31 }
 0x34c   :  { %6420 = vmatprep.subr.mxu1 %v9961_v0  ;;  %6439 = vmatprep.subr.mxu0 %v9961_v0 }
 0x34d   :  { %6421 = vmatpush3.msra.mxu1 %v8164_v33  ;;  %6422 = vmatprep.mubr.msk.f32.mxu1 %vm7656_vm0, %v9961_v0 }
 0x34e   :  { %6440 = vmatpush3.msra.mxu0 %v8171_v34  ;;  %6441 = vmatprep.mubr.msk.f32.mxu0 %vm7656_vm0, %v9961_v0 }
 0x34f   :  { %6423 = vmatmul.mubr.msk.f32.vlgmr.msra.gmra.mxu1 %vm637_vm13, %v628_v41  ;;  %6442 = vmatmul.mubr.msk.f32.vlgmr.msra.gmra.mxu0 %vm637_vm13, %v628_v41 }
 0x350   :  { %6444 = vmatprep.subr.mxu1 %v9961_v0  ;;  %6455 = vmatprep.subr.mxu0 %v9961_v0 }
 0x351   :  { %6445 = vmatpush3.msra.mxu1 %v7715_v2  ;;  %6456 = vmatpush3.msra.mxu0 %v7756_v10  ;;  %v987_v2 = vpop.permute.xlu0 %986 }
 0x352   :  { %6446 = vmatprep.subr.mxu1 %v9961_v0  ;;  %6457 = vmatprep.subr.mxu0 %v9961_v0 }
 0x353   :  { %6447 = vmatpush3.msra.mxu1 %v7723_v4  ;;  %6458 = vmatpush3.msra.mxu0 %v7767_v12  ;;  %v8268_v4 = vld [vmem:[%s9957_s6] ss:$0 sm:$0xff] }
 0x354   :  { %6448 = vmatprep.subr.mxu1 %v9961_v0  ;;  %6459 = vmatprep.subr.mxu0 %v9961_v0 }
 0x355   :  { %6449 = vmatpush3.msra.mxu1 %v7734_v6  ;;  %6460 = vmatpush3.msra.mxu0 %v7780_v15  ;;  %v8273_v6 = vld [vmem:[%s9957_s6 + $0x1] ss:$0 sm:$0xff] }
 0x356   :  { %6450 = vmatprep.subr.mxu1 %v9961_v0  ;;  %6461 = vmatprep.subr.mxu0 %v9961_v0 }
 0x357   :  { %6451 = vmatpush3.msra.mxu1 %v7744_v8  ;;  %6452 = vmatprep.mubr.msk.f32.mxu1 %vm7656_vm0, %v9961_v0 }
 0x358   :  { %6462 = vmatpush3.msra.mxu0 %v7792_v17  ;;  %6463 = vmatprep.mubr.msk.f32.mxu0 %vm7656_vm0, %v9961_v0 }
 0x359   :  { %6453 = vmatmul.mubr.msk.f32.vlgmr.msra.gmra.mxu1 %vm273_vm12, %v987_v2  ;;  %6464 = vmatmul.mubr.msk.f32.vlgmr.msra.gmra.mxu0 %vm273_vm12, %v987_v2 }
 0x35a   :  { %6466 = vmatprep.subr.mxu1 %v9961_v0  ;;  %6477 = vmatprep.subr.mxu0 %v9961_v0 }
 0x35b   :  { %6467 = vmatpush3.msra.mxu1 %v7802_v19  ;;  %6478 = vmatpush3.msra.mxu0 %v7860_v36 }
 0x35c   :  { %6468 = vmatprep.subr.mxu1 %v9961_v0  ;;  %6479 = vmatprep.subr.mxu0 %v9961_v0 }
 0x35d   :  { %6469 = vmatpush3.msra.mxu1 %v7813_v21  ;;  %6480 = vmatpush3.msra.mxu0 %v7867_v39 }
 0x35e   :  { %6470 = vmatprep.subr.mxu1 %v9961_v0  ;;  %6481 = vmatprep.subr.mxu0 %v9961_v0 }
 0x35f   :  { %6471 = vmatpush3.msra.mxu1 %v7825_v23  ;;  %6482 = vmatpush3.msra.mxu0 %v7876_v42 }
 0x360   :  { %6472 = vmatprep.subr.mxu1 %v9961_v0  ;;  %6483 = vmatprep.subr.mxu0 %v9961_v0 }
 0x361   :  { %6473 = vmatpush3.msra.mxu1 %v7835_v25  ;;  %6474 = vmatprep.mubr.msk.f32.mxu1 %vm7656_vm0, %v9961_v0  ;;  %v8280_v25 = vld [vmem:[%s9957_s6 + $0x2] ss:$0 sm:$0xff] }
 0x362   :  { %6484 = vmatpush3.msra.mxu0 %v7885_v45  ;;  %6485 = vmatprep.mubr.msk.f32.mxu0 %vm7656_vm0, %v9961_v0 }
 0x363   :  { %6475 = vmatmul.mubr.msk.f32.vlgmr.msra.gmra.mxu1 %vm273_vm12, %v987_v2  ;;  %6486 = vmatmul.mubr.msk.f32.vlgmr.msra.gmra.mxu0 %vm273_vm12, %v987_v2 }
 0x364   :  { %6488 = vmatprep.subr.mxu1 %v9961_v0  ;;  %6507 = vmatprep.subr.mxu0 %v9961_v0 }
 0x365   :  { %6489 = vmatpush3.msra.mxu1 %v7943_v51  ;;  %6508 = vmatpush3.msra.mxu0 %v7948_v52 }
 0x366   :  { %6490 = vmatprep.subr.mxu1 %v9961_v0  ;;  %6509 = vmatprep.subr.mxu0 %v9961_v0 }
 0x367   :  { %6491 = vmatpush3.msra.mxu1 %v7953_v53  ;;  %6510 = vmatpush3.msra.mxu0 %v7960_v54 }
 0x368   :  { %6492 = vmatprep.subr.mxu1 %v9961_v0  ;;  %6511 = vmatprep.subr.mxu0 %v9961_v0 }
 0x369   :  { %6493 = vmatpush3.msra.mxu1 %v7967_v55  ;;  %6512 = vmatpush3.msra.mxu0 %v7972_v56 }
 0x36a   :  { %6494 = vmatprep.subr.mxu1 %v9961_v0  ;;  %6513 = vmatprep.subr.mxu0 %v9961_v0 }
 0x36b   :  { %6495 = vmatpush3.msra.mxu1 %v7981_v57  ;;  %6514 = vmatpush3.msra.mxu0 %v7986_v58 }
 0x36c   :  { %6496 = vmatprep.subr.mxu1 %v9961_v0  ;;  %6515 = vmatprep.subr.mxu0 %v9961_v0 }
 0x36d   :  { %6497 = vmatpush3.msra.mxu1 %v7995_v60  ;;  %6516 = vmatpush3.msra.mxu0 %v8002_v61 }
 0x36e   :  { %6498 = vmatprep.subr.mxu1 %v9961_v0  ;;  %6517 = vmatprep.subr.mxu0 %v9961_v0 }
 0x36f   :  { %6499 = vmatpush3.msra.mxu1 %v8009_v7  ;;  %6518 = vmatpush3.msra.mxu0 %v8016_v9 }
 0x370   :  { %6500 = vmatprep.subr.mxu1 %v9961_v0  ;;  %6519 = vmatprep.subr.mxu0 %v9961_v0 }
 0x371   :  { %6501 = vmatpush3.msra.mxu1 %v8023_v13  ;;  %6520 = vmatpush3.msra.mxu0 %v8030_v14 }
 0x372   :  { %6502 = vmatprep.subr.mxu1 %v9961_v0  ;;  %6521 = vmatprep.subr.mxu0 %v9961_v0 }
 0x373   :  { %6503 = vmatpush3.msra.mxu1 %v8037_v18  ;;  %6522 = vmatpush3.msra.mxu0 %v8044_v24 }
 0x374   :  { %6504 = vmatprep.mubr.msk.f32.mxu1 %vm7656_vm0, %v9961_v0  ;;  %6523 = vmatprep.mubr.msk.f32.mxu0 %vm7656_vm0, %v9961_v0 }
 0x375   :  { %6526 = vmatprep.subr.mxu1 %v9961_v0  ;;  %6545 = vmatprep.subr.mxu0 %v9961_v0 }
 0x3fe   :  { %v707_v8 = vpop.f32.mrf.mxu1  ;;  %v786_v10 = vpop.f32.mrf.mxu0 }
 0x3ff   :  { %v708_v12 = vadd.f32 %v8268_v4, %v707_v8  ;;  %v787_v15 = vadd.f32 %v8273_v6, %v786_v10 }
 0x400   :  { %v6386_v17 = vpop.f32.mrf.mxu1  ;;  %v6405_v19 = vpop.f32.mrf.mxu0 }
 0x401   :  { %v5732_v21 = vmul.f32 -1.442695, %v708_v12  ;;  %v5733_v23 = vmul.f32 -1.442695, %v787_v15 }
 0x403   :  { %7308 = vpow2.f32 %v5732_v21 }
 0x404   :  { %7310 = vpow2.f32 %v5733_v23 }
 0x40f   :  { %v865_v3 = vpop.f32.mrf.mxu1  ;;  %v944_v41 = vpop.f32.mrf.mxu0 }
 0x410   :  { %v7309_v2 = vpop.eup %7308  ;;  %v866_v8 = vadd.f32 %v8280_v25, %v865_v3  ;;  %v945_v10 = vadd.f32 %v8285_v35, %v944_v41 }
 0x411   :  { %v7311_v12 = vpop.eup %7310  ;;  %v951_v15 = vadd.f32 1.0, %v7309_v2  ;;  %v6424_v17 = vpop.f32.mrf.mxu1 }
 0x412   :  { %v6443_v19 = vpop.f32.mrf.mxu0  ;;  %v957_v21 = vadd.f32 1.0, %v7311_v12  ;;  %7312 = vtanh.f32 %v866_v8  ;;  %v5734_v23 = vmul.f32 -1.442695, %v945_v10 }
 0x413   :  { %7314 = vrcp.f32 %v951_v15 }
 0x414   :  { %7316 = vrcp.f32 %v957_v21 }
 0x415   :  { %7318 = vpow2.f32 %v5734_v23 }
 0x419   :  { %v1056_v0 = vpop.f32.mrf.mxu1  ;;  %v1127_v1 = vpop.f32.mrf.mxu0 }
 0x41a   :  { %v1060_v15 = vadd.f32 %v1056_v0, %v7908_v59  ;;  %v8311_v0 = vsel %vm977_vm11, %v7937_v50, 0.0 }
 0x41b   :  { %v6454_v22 = vpop.f32.mrf.mxu1  ;;  %v6465_v26 = vpop.f32.mrf.mxu0 }
 0x41c   :  { %v5739_v21 = vmul.f32 -1.442695, %v1060_v15 }
 0x41f   :  { %v7313_v11 = vpop.eup %7312 }
 0x420   :  { %v7315_v16 = vpop.eup %7314 }
 0x421   :  { %v7317_v62 = vpop.eup %7316  ;;  %v968_v3 = vmul.f32 %v7315_v16, %v7313_v11  ;;  %v9988_v11 = vmov 0  }
 0x422   :  { %v7319_v5 = vpop.eup %7318  ;;  %v967_v41 = vmul.f32 0.0, %v7317_v62  ;;  %v1639_v62 = vsel %vm1638_vm14, 1, %v9988_v11  ;;  %v2306_v32 = vsel %vm2305_vm1, 1, %v9988_v11 }
 0x423   :  { %v964_v35 = vadd.f32 1.0, %v7319_v5  ;;  %v1202_v2 = vpop.f32.mrf.mxu1  ;;  %v1277_v17 = vpop.f32.mrf.mxu0 }
 0x424   :  { %v8289_v19 = vadd.f32 %v968_v3, %v967_v41  ;;  %1207 = vrot.lane.b32.xlu1 %v1202_v2, %s7657_s26 }
 0x425   :  { %7320 = vrcp.f32 %v964_v35  ;;  %v6476_v8 = vpop.f32.mrf.mxu1  ;;  %v6487_v10 = vpop.f32.mrf.mxu0 }
 0x426   :  { %7322 = vtanh.f32 %v8289_v19 }
 0x428   :  { %1132 = vrot.lane.b32.xlu1 %v1127_v1, %s7658_s27 }
 0x42c   :  { %1282 = vrot.lane.b32.xlu1 %v1277_v17, %s7659_s10 }
 0x430   :  { %1641 = vperm.xlu1 %7291, %v1639_v62  }
 0x432   :  { %v7321_v5 = vpop.eup %7320 }
 0x433   :  { %v7323_v16 = vpop.eup %7322 }
 0x434   :  { %v971_v22 = vmul.f32 %v7323_v16, %v7321_v5 }
 0x436   :  { %v8299_v26 = vsel %vm977_vm11, %v971_v22, 0.0 }
 0x437   :  { %1327 = vrot.lane.b32.xlu1 %v8299_v26, %s7658_s27 }
 0x496   :  { %v1208_v35 = vpop.permute.xlu1 %1207 }
 0x497   :  { %v1210_v1 = vadd.f32 %v1208_v35, %v7908_v59 }
 0x499   :  { %7324 = vtanh.f32 %v1210_v1 }
 0x49a   :  { %7326 = vpow2.f32 %v5739_v21  ;;  %v1133_v8 = vpop.permute.xlu1 %1132 }
 0x49b   :  { %v1135_v10 = vadd.f32 %v1133_v8, %v7908_v59 }
 0x49d   :  { %v5740_v62 = vmul.f32 -1.442695, %v1135_v10 }
 0x49e   :  { %v1283_v21 = vpop.permute.xlu1 %1282 }
 0x4a6   :  { %v7325_v12 = vpop.eup %7324 }
 0x4a7   :  { %1307 = vrot.lane.b32.xlu0 %v7325_v12, %s7657_s26  ;;  %v7327_v23 = vpop.eup %7326 }
 0x4a8   :  { %v1289_v3 = vadd.f32 1.0, %v7327_v23  ;;  %v1285_v23 = vadd.f32 %v1283_v21, %v7908_v59  ;;  %v8402_v21 = vld [vmem:[%s9951_s4 + $0x8] sm:$0xff] }
 0x4aa   :  { %7328 = vrcp.f32 %v1289_v3  ;;  %v5741_v3 = vmul.f32 -1.442695, %v1285_v23  ;;  %v8408_v23 = vld [vmem:[%s9951_s4 + $0x28] sm:$0xff] }
 0x4ab   :  { %7330 = vpow2.f32 %v5740_v62  ;;  %v8319_v10 = vpop.permute.xlu1 %1641 }
 0x4ac   :  { %vm1643_vm15 = vcmp.eq.s32.totalorder %v8319_v10, 1  ;;  %v9994_v10 = vld [vmem:[#allocation4_spill] sm:$0xff] }
 0x4af   :  { %v1328_v59 = vpop.permute.xlu1 %1327 }
 0x4b7   :  { %v7329_v41 = vpop.eup %7328 }
 0x4b8   :  { %v7331_v5 = vpop.eup %7330 }
 0x4b9   :  { %v1295_v16 = vadd.f32 1.0, %v7331_v5 }
 0x4bb   :  { %7332 = vrcp.f32 %v1295_v16 }
 0x4c8   :  { %v7333_v22 = vpop.eup %7332 }
 0x4c9   :  { %v1305_v35 = vmul.f32 %v7333_v22, %v8311_v0  ;;  %v9989_v22 = vmov 0.0  }
 0x519   :  { %v1308_v2 = vpop.permute.xlu0 %1307 }
 0x51a   :  { %v1310_v17 = vmul.f32 %v7329_v41, %v1308_v2 }
 0x51c   :  { %1312 = vrot.lane.b32.xlu0 %v1310_v17, %s7658_s27 }
 0x58e   :  { %v1313_v1 = vpop.permute.xlu0 %1312 }
 0x58f   :  { %v8314_v12 = vadd.f32 %v1313_v1, %v1305_v35  ;;  %v8380_v35 = vld [vmem:[%s9951_s4 + $0x38] sm:$0xff]  ;;  %v8388_v1 = vld [vmem:[%s9951_s4 + $0x10] sm:$0xff] }
 0x591   :  { %7334 = vtanh.f32 %v8314_v12 }
 0x592   :  { %7336 = vpow2.f32 %v5741_v3  ;;  %v8416_v3 = vld [vmem:[%s9951_s4] sm:$0xff] }
 0x59e   :  { %v7335_v15 = vpop.eup %7334 }
 0x59f   :  { %1318 = vrot.lane.b32.xlu0 %v7335_v15, %s7657_s26  ;;  %v7337_v41 = vpop.eup %7336  ;;  %v8394_v15 = vld [vmem:[%s9951_s4 + $0x30] sm:$0xff] }
 0x5a0   :  { %v1302_v2 = vadd.f32 1.0, %v7337_v41 }
 0x5a2   :  { %7338 = vrcp.f32 %v1302_v2  ;;  %v8424_v2 = vld [vmem:[%s9951_s4 + $0x20] sm:$0xff] }
 0x5af   :  { %v7339_v50 = vpop.eup %7338 }
 0x611   :  { %v1319_v17 = vpop.permute.xlu0 %1318 }
 0x612   :  { %v1321_v8 = vmul.f32 %v7339_v50, %v1319_v17  ;;  %v8436_v50 = vld [vmem:[%s9951_s4 + $0x58] sm:$0xff]  ;;  %v8445_v17 = vld [vmem:[%s9951_s4 + $0x50] sm:$0xff] }
 0x614   :  { %1323 = vrot.lane.b32.xlu0 %v1321_v8, %s7658_s27  ;;  %v8326_v62 = vsel %vm1643_vm15, %v1321_v8, %v8060_v37  ;;  %v8374_v37 = vld [vmem:[%s9951_s4 + $0x18] sm:$0xff] }
 0x618   :  { %1653 = vrot.lane.b32.xlu0 %v8326_v62, %s7658_s27 }
 0x686   :  { %v1324_v5 = vpop.permute.xlu0 %1323 }
 0x687   :  { %v1330_v16 = vsel %vm273_vm12, %v1324_v5, %v1328_v59 }
 0x688   :  { %6505 = vmatmul.mubr.msk.f32.vlgmr.msra.gmra.mxu1 %vm637_vm13, %v1330_v16  ;;  %6524 = vmatmul.mubr.msk.f32.vlgmr.msra.gmra.mxu0 %vm637_vm13, %v1330_v16 }
 0x689   :  { %6527 = vmatpush3.msra.mxu1 %v8067_v38  ;;  %6546 = vmatpush3.msra.mxu0 %v8072_v40 }
 0x68a   :  { %6528 = vmatprep.subr.mxu1 %v9989_v22  ;;  %6547 = vmatprep.subr.mxu0 %v9989_v22  ;;  %v1654_v41 = vpop.permute.xlu0 %1653 }
 0x68b   :  { %6529 = vmatpush3.msra.mxu1 %v8080_v43  ;;  %6548 = vmatpush3.msra.mxu0 %v8085_v44 }
 0x68c   :  { %6530 = vmatprep.subr.mxu1 %v9989_v22  ;;  %6549 = vmatprep.subr.mxu0 %v9989_v22 }
 0x68d   :  { %6531 = vmatpush3.msra.mxu1 %v8094_v46  ;;  %6550 = vmatpush3.msra.mxu0 %v8099_v47 }
 0x68e   :  { %6532 = vmatprep.subr.mxu1 %v9989_v22  ;;  %6551 = vmatprep.subr.mxu0 %v9989_v22 }
 0x68f   :  { %6533 = vmatpush3.msra.mxu1 %v8108_v48  ;;  %6552 = vmatpush3.msra.mxu0 %v8113_v49 }
 0x690   :  { %6534 = vmatprep.subr.mxu1 %v9989_v22  ;;  %6553 = vmatprep.subr.mxu0 %v9989_v22 }
 0x691   :  { %6535 = vmatpush3.msra.mxu1 %v8122_v63  ;;  %6554 = vmatpush3.msra.mxu0 %v8127_v27 }
 0x692   :  { %6536 = vmatprep.subr.mxu1 %v9989_v22  ;;  %6555 = vmatprep.subr.mxu0 %v9989_v22 }
 0x693   :  { %6537 = vmatpush3.msra.mxu1 %v8136_v28  ;;  %6556 = vmatpush3.msra.mxu0 %v8141_v29 }
 0x694   :  { %6538 = vmatprep.subr.mxu1 %v9989_v22  ;;  %6557 = vmatprep.subr.mxu0 %v9989_v22 }
 0x695   :  { %6539 = vmatpush3.msra.mxu1 %v8150_v30  ;;  %6558 = vmatpush3.msra.mxu0 %v8155_v31 }
 0x696   :  { %6540 = vmatprep.subr.mxu1 %v9989_v22  ;;  %6559 = vmatprep.subr.mxu0 %v9989_v22 }
 0x697   :  { %6541 = vmatpush3.msra.mxu1 %v8164_v33  ;;  %6542 = vmatprep.mubr.msk.f32.mxu1 %vm7656_vm0, %v9989_v22 }
 0x698   :  { %6560 = vmatpush3.msra.mxu0 %v8171_v34  ;;  %6561 = vmatprep.mubr.msk.f32.mxu0 %vm7656_vm0, %v9989_v22 }
 0x699   :  { %6543 = vmatmul.mubr.msk.f32.vlgmr.msra.gmra.mxu1 %vm637_vm13, %v1330_v16  ;;  %6562 = vmatmul.mubr.msk.f32.vlgmr.msra.gmra.mxu0 %vm637_vm13, %v1330_v16 }
 0x69a   :  { %6564 = vmatprep.subr.mxu1 %v9989_v22  ;;  %6575 = vmatprep.subr.mxu0 %v9989_v22 }
 0x69b   :  { %6565 = vmatpush3.msra.mxu1 %v8374_v37  ;;  %6576 = vmatpush3.msra.mxu0 %v8380_v35 }
 0x69c   :  { %6566 = vmatprep.subr.mxu1 %v9989_v22  ;;  %6577 = vmatprep.subr.mxu0 %v9989_v22 }
 0x69d   :  { %6567 = vmatpush3.msra.mxu1 %v8388_v1  ;;  %6578 = vmatpush3.msra.mxu0 %v8394_v15 }
 0x69e   :  { %6568 = vmatprep.subr.mxu1 %v9989_v22  ;;  %6579 = vmatprep.subr.mxu0 %v9989_v22 }
 0x69f   :  { %6569 = vmatpush3.msra.mxu1 %v8402_v21  ;;  %6580 = vmatpush3.msra.mxu0 %v8408_v23 }
 0x6a0   :  { %6570 = vmatprep.subr.mxu1 %v9989_v22  ;;  %6581 = vmatprep.subr.mxu0 %v9989_v22 }
 0x6a1   :  { %6571 = vmatpush3.msra.mxu1 %v8416_v3  ;;  %6572 = vmatprep.mubr.msk.f32.mxu1 %vm7656_vm0, %v9989_v22 }
 0x6a2   :  { %6582 = vmatpush3.msra.mxu0 %v8424_v2  ;;  %6583 = vmatprep.mubr.msk.f32.mxu0 %vm7656_vm0, %v9989_v22 }
 0x6a3   :  { %6573 = vmatmul.mubr.msk.f32.vlgmr.msra.gmra.mxu1 %vm273_vm12, %v1654_v41  ;;  %6584 = vmatmul.mubr.msk.f32.vlgmr.msra.gmra.mxu0 %vm273_vm12, %v1654_v41 }
 0x6a4   :  { %6586 = vmatprep.subr.mxu1 %v9989_v22  ;;  %6597 = vmatprep.subr.mxu0 %v9989_v22 }
 0x6a5   :  { %6587 = vmatpush3.msra.mxu1 %v8436_v50  ;;  %6598 = vmatpush3.msra.mxu0 %v7860_v36  ;;  %v8454_v36 = vld [vmem:[%s9951_s4 + $0x48] sm:$0xff] }
 0x6a6   :  { %6588 = vmatprep.subr.mxu1 %v9989_v22  ;;  %6599 = vmatprep.subr.mxu0 %v9989_v22 }
 0x6a7   :  { %6589 = vmatpush3.msra.mxu1 %v8445_v17  ;;  %6600 = vmatpush3.msra.mxu0 %v7867_v39  ;;  %v8463_v39 = vld [vmem:[%s9951_s4 + $0x40] sm:$0xff] }
 0x6a8   :  { %6590 = vmatprep.subr.mxu1 %v9989_v22  ;;  %6601 = vmatprep.subr.mxu0 %v9989_v22 }
 0x6a9   :  { %6591 = vmatpush3.msra.mxu1 %v8454_v36  ;;  %6602 = vmatpush3.msra.mxu0 %v7876_v42 }
 0x6aa   :  { %6592 = vmatprep.subr.mxu1 %v9989_v22  ;;  %6603 = vmatprep.subr.mxu0 %v9989_v22 }
 0x6ab   :  { %6593 = vmatpush3.msra.mxu1 %v8463_v39  ;;  %6594 = vmatprep.mubr.msk.f32.mxu1 %vm7656_vm0, %v9989_v22 }
 0x6ac   :  { %6604 = vmatpush3.msra.mxu0 %v7885_v45  ;;  %6605 = vmatprep.mubr.msk.f32.mxu0 %vm7656_vm0, %v9989_v22 }
 0x6ad   :  { %6595 = vmatmul.mubr.msk.f32.vlgmr.msra.gmra.mxu1 %vm273_vm12, %v1654_v41  ;;  %6606 = vmatmul.mubr.msk.f32.vlgmr.msra.gmra.mxu0 %vm273_vm12, %v1654_v41 }
 0x6ae   :  { %6608 = vmatprep.subr.mxu1 %v9989_v22  ;;  %6627 = vmatprep.subr.mxu0 %v9989_v22 }
 0x6af   :  { %6609 = vmatpush3.msra.mxu1 %v7943_v51  ;;  %6628 = vmatpush3.msra.mxu0 %v7948_v52 }
 0x6b0   :  { %6610 = vmatprep.subr.mxu1 %v9989_v22  ;;  %6629 = vmatprep.subr.mxu0 %v9989_v22 }
 0x6b1   :  { %6611 = vmatpush3.msra.mxu1 %v7953_v53  ;;  %6630 = vmatpush3.msra.mxu0 %v7960_v54 }
 0x6b2   :  { %6612 = vmatprep.subr.mxu1 %v9989_v22  ;;  %6631 = vmatprep.subr.mxu0 %v9989_v22 }
 0x6b3   :  { %6613 = vmatpush3.msra.mxu1 %v7967_v55  ;;  %6632 = vmatpush3.msra.mxu0 %v7972_v56 }
 0x6b4   :  { %6614 = vmatprep.subr.mxu1 %v9989_v22  ;;  %6633 = vmatprep.subr.mxu0 %v9989_v22 }
 0x6b5   :  { %6615 = vmatpush3.msra.mxu1 %v7981_v57  ;;  %6634 = vmatpush3.msra.mxu0 %v7986_v58 }
 0x6b6   :  { %6616 = vmatprep.subr.mxu1 %v9989_v22  ;;  %6635 = vmatprep.subr.mxu0 %v9989_v22 }
 0x6b7   :  { %6617 = vmatpush3.msra.mxu1 %v7995_v60  ;;  %6636 = vmatpush3.msra.mxu0 %v8002_v61 }
 0x6b8   :  { %6618 = vmatprep.subr.mxu1 %v9989_v22  ;;  %6637 = vmatprep.subr.mxu0 %v9989_v22 }
 0x6b9   :  { %6619 = vmatpush3.msra.mxu1 %v8009_v7  ;;  %6638 = vmatpush3.msra.mxu0 %v8016_v9  ;;  %v9990_v7 = vld [vmem:[#allocation10_spill] sm:$0xff] }
 0x6ba   :  { %6620 = vmatprep.subr.mxu1 %v9989_v22  ;;  %6639 = vmatprep.subr.mxu0 %v9989_v22 }
 0x6bb   :  { %6621 = vmatpush3.msra.mxu1 %v8023_v13  ;;  %6640 = vmatpush3.msra.mxu0 %v8030_v14 }
 0x6bc   :  { %6622 = vmatprep.subr.mxu1 %v9989_v22  ;;  %6641 = vmatprep.subr.mxu0 %v9989_v22 }
 0x6bd   :  { %6623 = vmatpush3.msra.mxu1 %v8037_v18  ;;  %6642 = vmatpush3.msra.mxu0 %v8044_v24 }
 0x6be   :  { %6624 = vmatprep.mubr.msk.f32.mxu1 %vm7656_vm0, %v9989_v22  ;;  %6643 = vmatprep.mubr.msk.f32.mxu0 %vm7656_vm0, %v9989_v22 }
 0x6bf   :  { %6646 = vmatprep.subr.mxu1 %v9989_v22  ;;  %6665 = vmatprep.subr.mxu0 %v9989_v22 }
 0x748   :  { %v1400_v42 = vpop.f32.mrf.mxu1  ;;  %v1470_v45 = vpop.f32.mrf.mxu0 }
 0x749   :  { %v1401_v51 = vadd.f32 %v8268_v4, %v1400_v42  ;;  %v1471_v52 = vadd.f32 %v8273_v6, %v1470_v45 }
 0x74a   :  { %v6506_v53 = vpop.f32.mrf.mxu1  ;;  %v6525_v54 = vpop.f32.mrf.mxu0 }
 0x74b   :  { %v5746_v55 = vmul.f32 -1.442695, %v1401_v51  ;;  %v5747_v56 = vmul.f32 -1.442695, %v1471_v52  ;;  %v981_v53 = vsel %vm977_vm11, %v8289_v19, 0.0 }
 0x74d   :  { %7340 = vpow2.f32 %v5746_v55 }
 0x74e   :  { %7342 = vpow2.f32 %v5747_v56 }
 0x759   :  { %v1540_v57 = vpop.f32.mrf.mxu1  ;;  %v1610_v58 = vpop.f32.mrf.mxu0 }
 0x75a   :  { %v7341_v60 = vpop.eup %7340  ;;  %v1541_v61 = vadd.f32 %v8280_v25, %v1540_v57  ;;  %v1611_v9 = vadd.f32 %v9990_v7, %v1610_v58 }
 0x75b   :  { %v7343_v13 = vpop.eup %7342  ;;  %v1617_v14 = vadd.f32 1.0, %v7341_v60  ;;  %v6544_v18 = vpop.f32.mrf.mxu1 }
 0x75c   :  { %v6563_v24 = vpop.f32.mrf.mxu0  ;;  %v1623_v8 = vadd.f32 1.0, %v7343_v13  ;;  %7344 = vtanh.f32 %v1541_v61  ;;  %v5748_v59 = vmul.f32 -1.442695, %v1611_v9 }
 0x75d   :  { %7346 = vrcp.f32 %v1617_v14 }
 0x75e   :  { %7348 = vrcp.f32 %v1623_v8 }
 0x75f   :  { %7350 = vpow2.f32 %v5748_v59 }
 0x763   :  { %v1723_v5 = vpop.f32.mrf.mxu1  ;;  %v1794_v16 = vpop.f32.mrf.mxu0 }
 0x765   :  { %v6574_v41 = vpop.f32.mrf.mxu1  ;;  %v6585_v42 = vpop.f32.mrf.mxu0 }
 0x766   :  { %v1727_v42 = vadd.f32 %v1723_v5, %v9991_v20  ;;  %v8546_v5 = vsel %vm1643_vm15, %v8314_v12, %v8311_v0 }
 0x769   :  { %v7345_v45 = vpop.eup %7344 }
 0x76a   :  { %v7347_v51 = vpop.eup %7346 }
 0x76b   :  { %v7349_v52 = vpop.eup %7348  ;;  %v1634_v54 = vmul.f32 %v7347_v51, %v7345_v45  ;;  %v5753_v45 = vmul.f32 -1.442695, %v1727_v42 }
 0x76c   :  { %v7351_v55 = vpop.eup %7350  ;;  %v1633_v56 = vmul.f32 %v7349_v52, %v981_v53 }
 0x76d   :  { %v1630_v57 = vadd.f32 1.0, %v7351_v55  ;;  %v1869_v58 = vpop.f32.mrf.mxu1  ;;  %v1944_v60 = vpop.f32.mrf.mxu0 }
 0x76e   :  { %v1635_v61 = vadd.f32 %v1634_v54, %v1633_v56  ;;  %1874 = vrot.lane.b32.xlu1 %v1869_v58, %s7657_s26 }
 0x76f   :  { %7352 = vrcp.f32 %v1630_v57  ;;  %v6596_v9 = vpop.f32.mrf.mxu1  ;;  %v6607_v13 = vpop.f32.mrf.mxu0 }
 0x770   :  { %7354 = vtanh.f32 %v1635_v61  ;;  %v8521_v14 = vsel %vm1643_vm15, %v1635_v61, %v981_v53 }
 0x772   :  { %1799 = vrot.lane.b32.xlu1 %v1794_v16, %s7658_s27 }
 0x776   :  { %1949 = vrot.lane.b32.xlu1 %v1944_v60, %s7659_s10 }
 0x77a   :  { %2308 = vperm.xlu1 %7291, %v2306_v32  }
 0x77c   :  { %v7353_v19 = vpop.eup %7352 }
 0x77d   :  { %v7355_v18 = vpop.eup %7354 }
 0x77e   :  { %v8527_v24 = vmul.f32 %v7355_v18, %v7353_v19 }
 0x780   :  { %v8533_v8 = vsel %vm1643_vm15, %v8527_v24, %v8299_v26 }
 0x781   :  { %1994 = vrot.lane.b32.xlu1 %v8533_v8, %s7658_s27 }
 0x7e0   :  { %v1875_v59 = vpop.permute.xlu1 %1874 }
 0x7e1   :  { %v1877_v16 = vadd.f32 %v1875_v59, %v9991_v20 }
 0x7e3   :  { %7356 = vtanh.f32 %v1877_v16 }
 0x7e4   :  { %7358 = vpow2.f32 %v5753_v45  ;;  %v1800_v56 = vpop.permute.xlu1 %1799 }
 0x7e5   :  { %v1802_v57 = vadd.f32 %v1800_v56, %v9991_v20  ;;  %v8757_v56 = vld [vmem:[%s9956_s5 + $0x8] sm:$0xff] }
 0x7e7   :  { %v5754_v58 = vmul.f32 -1.442695, %v1802_v57  ;;  %v8763_v57 = vld [vmem:[%s9956_s5 + $0x48] sm:$0xff] }
 0x7e8   :  { %v1950_v59 = vpop.permute.xlu1 %1949 }
 0x7e9   :  { %v1952_v16 = vadd.f32 %v1950_v59, %v9991_v20 }
 0x7f0   :  { %v7357_v41 = vpop.eup %7356 }
 0x7f1   :  { %1974 = vrot.lane.b32.xlu0 %v7357_v41, %s7657_s26  ;;  %v7359_v51 = vpop.eup %7358  ;;  %v5755_v41 = vmul.f32 -1.442695, %v1952_v16 }
 0x7f2   :  { %v1956_v52 = vadd.f32 1.0, %v7359_v51 }
 0x7f4   :  { %7360 = vrcp.f32 %v1956_v52 }
 0x7f5   :  { %7362 = vpow2.f32 %v5754_v58  ;;  %v8554_v52 = vpop.permute.xlu1 %2308  ;;  %v8771_v58 = vld [vmem:[%s9956_s5] sm:$0xff] }
 0x7f6   :  { %vm2310_vm2 = vcmp.eq.s32.totalorder %v8554_v52, 1  ;;  %9992 = vst [vmem:[#allocation10_spill] sm:$0xff] %v8771_v58 }
 0x7f9   :  { %v1995_v20 = vpop.permute.xlu1 %1994 }
 0x801   :  { %v7361_v53 = vpop.eup %7360 }
 0x802   :  { %v7363_v60 = vpop.eup %7362 }
 0x803   :  { %v1962_v61 = vadd.f32 1.0, %v7363_v60  ;;  %v8777_v60 = vld [vmem:[%s9956_s5 + $0x40] sm:$0xff] }
 0x804   :  { %9993 = vst [vmem:[#allocation5_spill] sm:$0xff] %v8777_v60 }
 0x805   :  { %7364 = vrcp.f32 %v1962_v61 }
 0x812   :  { %v7365_v9 = vpop.eup %7364 }
 0x813   :  { %v1972_v13 = vmul.f32 %v7365_v9, %v8546_v5 }
 0x863   :  { %v1975_v54 = vpop.permute.xlu0 %1974 }
 0x864   :  { %v1977_v55 = vmul.f32 %v7361_v53, %v1975_v54 }
 0x866   :  { %1979 = vrot.lane.b32.xlu0 %v1977_v55, %s7658_s27 }
 0x8d8   :  { %v1980_v32 = vpop.permute.xlu0 %1979 }
 0x8d9   :  { %v8549_v19 = vadd.f32 %v1980_v32, %v1972_v13 }
 0x8db   :  { %7366 = vtanh.f32 %v8549_v19 }
 0x8dc   :  { %7368 = vpow2.f32 %v5755_v41 }
 0x8e8   :  { %v7367_v18 = vpop.eup %7366 }
 0x8e9   :  { %1985 = vrot.lane.b32.xlu0 %v7367_v18, %s7657_s26  ;;  %v7369_v42 = vpop.eup %7368 }
 0x8ea   :  { %v1969_v45 = vadd.f32 1.0, %v7369_v42 }
 0x8ec   :  { %7370 = vrcp.f32 %v1969_v45 }
 0x8f9   :  { %v7371_v0 = vpop.eup %7370 }
 0x95b   :  { %v1986_v12 = vpop.permute.xlu0 %1985 }
 0x95c   :  { %v1988_v51 = vmul.f32 %v7371_v0, %v1986_v12 }
 0x95e   :  { %1990 = vrot.lane.b32.xlu0 %v1988_v51, %s7658_s27  ;;  %v8561_v53 = vsel %vm2310_vm2, %v1988_v51, %v8326_v62  ;;  %v8749_v62 = vld [vmem:[%s9956_s5 + $0x50] sm:$0xff] }
 0x962   :  { %2320 = vrot.lane.b32.xlu0 %v8561_v53, %s7658_s27 }
 0x9d0   :  { %v1991_v54 = vpop.permute.xlu0 %1990 }
 0x9d1   :  { %v1997_v55 = vsel %vm273_vm12, %v1991_v54, %v1995_v20 }
 0x9d2   :  { %6625 = vmatmul.mubr.msk.f32.vlgmr.msra.gmra.mxu1 %vm637_vm13, %v1997_v55  ;;  %6644 = vmatmul.mubr.msk.f32.vlgmr.msra.gmra.mxu0 %vm637_vm13, %v1997_v55 }
 0x9d3   :  { %6647 = vmatpush3.msra.mxu1 %v8067_v38  ;;  %6666 = vmatpush3.msra.mxu0 %v8072_v40  ;;  %v8632_v40 = vld [vmem:[%s9951_s4 + $0x78] sm:$0xff] }
 0x9d4   :  { %6648 = vmatprep.subr.mxu1 %v9989_v22  ;;  %6667 = vmatprep.subr.mxu0 %v9989_v22  ;;  %v2321_v38 = vpop.permute.xlu0 %2320 }
 0x9d5   :  { %6649 = vmatpush3.msra.mxu1 %v8080_v43  ;;  %6668 = vmatpush3.msra.mxu0 %v8085_v44  ;;  %v8641_v43 = vld [vmem:[%s9951_s4 + $0x70] sm:$0xff]  ;;  %v8650_v44 = vld [vmem:[%s9951_s4 + $0x68] sm:$0xff] }
 0x9d6   :  { %6650 = vmatprep.subr.mxu1 %v9989_v22  ;;  %6669 = vmatprep.subr.mxu0 %v9989_v22 }
 0x9d7   :  { %6651 = vmatpush3.msra.mxu1 %v8094_v46  ;;  %6670 = vmatpush3.msra.mxu0 %v8099_v47  ;;  %v8661_v46 = vld [vmem:[%s9951_s4 + $0x60] sm:$0xff]  ;;  %v8673_v47 = vld [vmem:[%s9956_s5 + $0x38] sm:$0xff] }
 0x9d8   :  { %6652 = vmatprep.subr.mxu1 %v9989_v22  ;;  %6671 = vmatprep.subr.mxu0 %v9989_v22 }
 0x9d9   :  { %6653 = vmatpush3.msra.mxu1 %v8108_v48  ;;  %6672 = vmatpush3.msra.mxu0 %v8113_v49  ;;  %v8679_v48 = vld [vmem:[%s9956_s5 + $0x78] sm:$0xff]  ;;  %v8687_v49 = vld [vmem:[%s9956_s5 + $0x30] sm:$0xff] }
 0x9da   :  { %6654 = vmatprep.subr.mxu1 %v9989_v22  ;;  %6673 = vmatprep.subr.mxu0 %v9989_v22 }
 0x9db   :  { %6655 = vmatpush3.msra.mxu1 %v8122_v63  ;;  %6674 = vmatpush3.msra.mxu0 %v8127_v27  ;;  %v8693_v63 = vld [vmem:[%s9956_s5 + $0x70] sm:$0xff]  ;;  %v8701_v27 = vld [vmem:[%s9956_s5 + $0x28] sm:$0xff] }
 0x9dc   :  { %6656 = vmatprep.subr.mxu1 %v9989_v22  ;;  %6675 = vmatprep.subr.mxu0 %v9989_v22 }
 0x9dd   :  { %6657 = vmatpush3.msra.mxu1 %v8136_v28  ;;  %6676 = vmatpush3.msra.mxu0 %v8141_v29  ;;  %v8707_v28 = vld [vmem:[%s9956_s5 + $0x68] sm:$0xff]  ;;  %v8715_v29 = vld [vmem:[%s9956_s5 + $0x20] sm:$0xff] }
 0x9de   :  { %6658 = vmatprep.subr.mxu1 %v9989_v22  ;;  %6677 = vmatprep.subr.mxu0 %v9989_v22 }
 0x9df   :  { %6659 = vmatpush3.msra.mxu1 %v8150_v30  ;;  %6678 = vmatpush3.msra.mxu0 %v8155_v31  ;;  %v8721_v30 = vld [vmem:[%s9956_s5 + $0x60] sm:$0xff]  ;;  %v8729_v31 = vld [vmem:[%s9956_s5 + $0x18] sm:$0xff] }
 0x9e0   :  { %6660 = vmatprep.subr.mxu1 %v9989_v22  ;;  %6679 = vmatprep.subr.mxu0 %v9989_v22 }
 0x9e1   :  { %6661 = vmatpush3.msra.mxu1 %v8164_v33  ;;  %6662 = vmatprep.mubr.msk.f32.mxu1 %vm7656_vm0, %v9989_v22  ;;  %v8735_v33 = vld [vmem:[%s9956_s5 + $0x58] sm:$0xff] }
 0x9e2   :  { %6680 = vmatpush3.msra.mxu0 %v8171_v34  ;;  %6681 = vmatprep.mubr.msk.f32.mxu0 %vm7656_vm0, %v9989_v22  ;;  %v8743_v34 = vld [vmem:[%s9956_s5 + $0x10] sm:$0xff] }
 0x9e3   :  { %6663 = vmatmul.mubr.msk.f32.vlgmr.msra.gmra.mxu1 %vm637_vm13, %v1997_v55  ;;  %6682 = vmatmul.mubr.msk.f32.vlgmr.msra.gmra.mxu0 %vm637_vm13, %v1997_v55 }
 0x9e4   :  { %6684 = vmatprep.subr.mxu1 %v9989_v22  ;;  %6695 = vmatprep.subr.mxu0 %v9989_v22 }
 0x9e5   :  { %6685 = vmatpush3.msra.mxu1 %v8374_v37  ;;  %6696 = vmatpush3.msra.mxu0 %v8380_v35 }
 0x9e6   :  { %6686 = vmatprep.subr.mxu1 %v9989_v22  ;;  %6697 = vmatprep.subr.mxu0 %v9989_v22 }
 0x9e7   :  { %6687 = vmatpush3.msra.mxu1 %v8388_v1  ;;  %6698 = vmatpush3.msra.mxu0 %v8394_v15 }
 0x9e8   :  { %6688 = vmatprep.subr.mxu1 %v9989_v22  ;;  %6699 = vmatprep.subr.mxu0 %v9989_v22 }
 0x9e9   :  { %6689 = vmatpush3.msra.mxu1 %v8402_v21  ;;  %6700 = vmatpush3.msra.mxu0 %v8408_v23 }
 0x9ea   :  { %6690 = vmatprep.subr.mxu1 %v9989_v22  ;;  %6701 = vmatprep.subr.mxu0 %v9989_v22 }
 0x9eb   :  { %6691 = vmatpush3.msra.mxu1 %v8416_v3  ;;  %6692 = vmatprep.mubr.msk.f32.mxu1 %vm7656_vm0, %v9989_v22 }
 0x9ec   :  { %6702 = vmatpush3.msra.mxu0 %v8424_v2  ;;  %6703 = vmatprep.mubr.msk.f32.mxu0 %vm7656_vm0, %v9989_v22 }
 0x9ed   :  { %6693 = vmatmul.mubr.msk.f32.vlgmr.msra.gmra.mxu1 %vm273_vm12, %v2321_v38  ;;  %6704 = vmatmul.mubr.msk.f32.vlgmr.msra.gmra.mxu0 %vm273_vm12, %v2321_v38 }
 0x9ee   :  { %6706 = vmatprep.subr.mxu1 %v9989_v22  ;;  %6717 = vmatprep.subr.mxu0 %v9989_v22 }
 0x9ef   :  { %6707 = vmatpush3.msra.mxu1 %v8436_v50  ;;  %6718 = vmatpush3.msra.mxu0 %v8632_v40 }
 0x9f0   :  { %6708 = vmatprep.subr.mxu1 %v9989_v22  ;;  %6719 = vmatprep.subr.mxu0 %v9989_v22 }
 0x9f1   :  { %6709 = vmatpush3.msra.mxu1 %v8445_v17  ;;  %6720 = vmatpush3.msra.mxu0 %v8641_v43 }
 0x9f2   :  { %6710 = vmatprep.subr.mxu1 %v9989_v22  ;;  %6721 = vmatprep.subr.mxu0 %v9989_v22 }
 0x9f3   :  { %6711 = vmatpush3.msra.mxu1 %v8454_v36  ;;  %6722 = vmatpush3.msra.mxu0 %v8650_v44 }
 0x9f4   :  { %6712 = vmatprep.subr.mxu1 %v9989_v22  ;;  %6723 = vmatprep.subr.mxu0 %v9989_v22 }
 0x9f5   :  { %6713 = vmatpush3.msra.mxu1 %v8463_v39  ;;  %6714 = vmatprep.mubr.msk.f32.mxu1 %vm7656_vm0, %v9989_v22 }
 0x9f6   :  { %6724 = vmatpush3.msra.mxu0 %v8661_v46  ;;  %6725 = vmatprep.mubr.msk.f32.mxu0 %vm7656_vm0, %v9989_v22 }
 0x9f7   :  { %6715 = vmatmul.mubr.msk.f32.vlgmr.msra.gmra.mxu1 %vm273_vm12, %v2321_v38  ;;  %6726 = vmatmul.mubr.msk.f32.vlgmr.msra.gmra.mxu0 %vm273_vm12, %v2321_v38 }
 0x9f8   :  { %6728 = vmatprep.subr.mxu1 %v9989_v22  ;;  %6747 = vmatprep.subr.mxu0 %v9989_v22 }
 0x9f9   :  { %6729 = vmatpush3.msra.mxu1 %v8673_v47  ;;  %6748 = vmatpush3.msra.mxu0 %v8679_v48 }
 0x9fa   :  { %6730 = vmatprep.subr.mxu1 %v9989_v22  ;;  %6749 = vmatprep.subr.mxu0 %v9989_v22 }
 0x9fb   :  { %6731 = vmatpush3.msra.mxu1 %v8687_v49  ;;  %6750 = vmatpush3.msra.mxu0 %v8693_v63 }
 0x9fc   :  { %6732 = vmatprep.subr.mxu1 %v9989_v22  ;;  %6751 = vmatprep.subr.mxu0 %v9989_v22 }
 0x9fd   :  { %6733 = vmatpush3.msra.mxu1 %v8701_v27  ;;  %6752 = vmatpush3.msra.mxu0 %v8707_v28 }
 0x9fe   :  { %6734 = vmatprep.subr.mxu1 %v9989_v22  ;;  %6753 = vmatprep.subr.mxu0 %v9989_v22 }
 0x9ff   :  { %6735 = vmatpush3.msra.mxu1 %v8715_v29  ;;  %6754 = vmatpush3.msra.mxu0 %v8721_v30 }
 0xa00   :  { %6736 = vmatprep.subr.mxu1 %v9989_v22  ;;  %6755 = vmatprep.subr.mxu0 %v9989_v22 }
 0xa01   :  { %6737 = vmatpush3.msra.mxu1 %v8729_v31  ;;  %6756 = vmatpush3.msra.mxu0 %v8735_v33 }
 0xa02   :  { %6738 = vmatprep.subr.mxu1 %v9989_v22  ;;  %6757 = vmatprep.subr.mxu0 %v9989_v22 }
 0xa03   :  { %6739 = vmatpush3.msra.mxu1 %v8743_v34  ;;  %6758 = vmatpush3.msra.mxu0 %v8749_v62 }
 0xa04   :  { %6740 = vmatprep.subr.mxu1 %v9989_v22  ;;  %6759 = vmatprep.subr.mxu0 %v9989_v22 }
 0xa05   :  { %6741 = vmatpush3.msra.mxu1 %v8757_v56  ;;  %6760 = vmatpush3.msra.mxu0 %v8763_v57 }
 0xa06   :  { %6742 = vmatprep.subr.mxu1 %v9989_v22  ;;  %6761 = vmatprep.subr.mxu0 %v9989_v22 }
 0xa07   :  { %6743 = vmatpush3.msra.mxu1 %v8771_v58  ;;  %6762 = vmatpush3.msra.mxu0 %v8777_v60 }
 0xa08   :  { %6744 = vmatprep.mubr.msk.f32.mxu1 %vm7656_vm0, %v9989_v22  ;;  %6763 = vmatprep.mubr.msk.f32.mxu0 %vm7656_vm0, %v9989_v22 }
 0xa09   :  { %6766 = vmatprep.subr.mxu1 %v9989_v22  ;;  %6785 = vmatprep.subr.mxu0 %v9989_v22 }
 0xa92   :  { %v2067_v61 = vpop.f32.mrf.mxu1  ;;  %v2137_v9 = vpop.f32.mrf.mxu0 }
 0xa93   :  { %v2068_v13 = vadd.f32 %v8268_v4, %v2067_v61  ;;  %v2138_v32 = vadd.f32 %v8273_v6, %v2137_v9 }
 0xa94   :  { %v6626_v18 = vpop.f32.mrf.mxu1  ;;  %v6645_v59 = vpop.f32.mrf.mxu0 }
 0xa95   :  { %v5760_v16 = vmul.f32 -1.442695, %v2068_v13  ;;  %v5761_v41 = vmul.f32 -1.442695, %v2138_v32 }
 0xa97   :  { %7372 = vpow2.f32 %v5760_v16 }
 0xa98   :  { %7374 = vpow2.f32 %v5761_v41 }
 0xaa3   :  { %v2207_v42 = vpop.f32.mrf.mxu1  ;;  %v2277_v45 = vpop.f32.mrf.mxu0 }
 0xaa4   :  { %v7373_v0 = vpop.eup %7372  ;;  %v2208_v12 = vadd.f32 %v8280_v25, %v2207_v42  ;;  %v2278_v51 = vadd.f32 %v9990_v7, %v2277_v45 }
 0xaa5   :  { %v7375_v20 = vpop.eup %7374  ;;  %v2284_v54 = vadd.f32 1.0, %v7373_v0  ;;  %v6664_v55 = vpop.f32.mrf.mxu1 }
 0xaa6   :  { %v6683_v38 = vpop.f32.mrf.mxu0  ;;  %v2290_v4 = vadd.f32 1.0, %v7375_v20  ;;  %7376 = vtanh.f32 %v2208_v12  ;;  %v5762_v6 = vmul.f32 -1.442695, %v2278_v51  ;;  %v8801_v55 = vld [vmem:[%s9955_s1] sm:$0xff] }
 0xaa7   :  { %7378 = vrcp.f32 %v2284_v54  ;;  %vm2972_vm3 = vcmp.gt.s32.totalorder %v8801_v55, 3  ;;  %vm3639_vm5 = vcmp.gt.s32.totalorder %v8801_v55, 4  ;;  %vm4306_vm7 = vcmp.gt.s32.totalorder %v8801_v55, 5 }
 0xaa8   :  { %7380 = vrcp.f32 %v2290_v4  ;;  %v2973_v38 = vsel %vm2972_vm3, 1, %v9988_v11 }
 0xaa9   :  { %7382 = vpow2.f32 %v5762_v6 }
 0xaad   :  { %v2390_v61 = vpop.f32.mrf.mxu1  ;;  %v2461_v9 = vpop.f32.mrf.mxu0 }
 0xaaf   :  { %v6694_v13 = vpop.f32.mrf.mxu1  ;;  %v6705_v32 = vpop.f32.mrf.mxu0 }
 0xab3   :  { %v7377_v18 = vpop.eup %7376 }
 0xab4   :  { %v7379_v59 = vpop.eup %7378 }
 0xab5   :  { %v7381_v16 = vpop.eup %7380  ;;  %v2301_v25 = vmul.f32 %v7379_v59, %v7377_v18 }
 0xab6   :  { %v7383_v41 = vpop.eup %7382  ;;  %v2300_v7 = vmul.f32 %v7381_v16, %v8521_v14 }
 0xab7   :  { %v2297_v42 = vadd.f32 1.0, %v7383_v41  ;;  %v2536_v45 = vpop.f32.mrf.mxu1  ;;  %v2611_v0 = vpop.f32.mrf.mxu0 }
 0xab8   :  { %v2302_v20 = vadd.f32 %v2301_v25, %v2300_v7  ;;  %2541 = vrot.lane.b32.xlu1 %v2536_v45, %s7657_s26 }
 0xab9   :  { %7384 = vrcp.f32 %v2297_v42  ;;  %v6716_v12 = vpop.f32.mrf.mxu1  ;;  %v6727_v51 = vpop.f32.mrf.mxu0 }
 0xaba   :  { %7386 = vtanh.f32 %v2302_v20  ;;  %v8795_v54 = vsel %vm2310_vm2, %v2302_v20, %v8521_v14  ;;  %v1648_v14 = vsel %vm1643_vm15, %v8527_v24, 0.0 }
 0xabc   :  { %2466 = vrot.lane.b32.xlu1 %v2461_v9, %s7658_s27  ;;  %v1649_v9 = vadd.f32 %v1648_v14, %v8299_v26  ;;  %v2394_v26 = vadd.f32 %v2390_v61, %v9994_v10  ;;  %v8830_v61 = vsel %vm2310_vm2, %v8549_v19, %v8546_v5 }
 0xabe   :  { %v5767_v41 = vmul.f32 -1.442695, %v2394_v26 }
 0xac0   :  { %2616 = vrot.lane.b32.xlu1 %v2611_v0, %s7659_s10 }
 0xac4   :  { %2975 = vperm.xlu1 %7291, %v2973_v38  }
 0xac6   :  { %v7385_v4 = vpop.eup %7384 }
 0xac7   :  { %v7387_v6 = vpop.eup %7386 }
 0xac8   :  { %v2304_v13 = vmul.f32 %v7387_v6, %v7385_v4 }
 0xaca   :  { %v8813_v32 = vsel %vm2310_vm2, %v2304_v13, %v8533_v8  ;;  %v2315_v18 = vsel %vm2310_vm2, %v2304_v13, 0.0 }
 0xacb   :  { %v8817_v59 = vadd.f32 %v2315_v18, %v1649_v9  ;;  %2661 = vrot.lane.b32.xlu1 %v8813_v32, %s7658_s27 }
 0xb2a   :  { %v2542_v16 = vpop.permute.xlu1 %2541 }
 0xb2b   :  { %v2544_v24 = vadd.f32 %v2542_v16, %v9994_v10 }
 0xb2d   :  { %7388 = vtanh.f32 %v2544_v24 }
 0xb2e   :  { %7390 = vpow2.f32 %v5767_v41  ;;  %v2467_v20 = vpop.permute.xlu1 %2466 }
 0xb2f   :  { %v2469_v12 = vadd.f32 %v2467_v20, %v9994_v10  ;;  %v8869_v20 = vld [vmem:[%s9956_s5 + $0xb0] sm:$0xff] }
 0xb31   :  { %v5768_v51 = vmul.f32 -1.442695, %v2469_v12  ;;  %v8875_v12 = vld [vmem:[%s9956_s5 + $0xf0] sm:$0xff] }
 0xb32   :  { %v2617_v16 = vpop.permute.xlu1 %2616 }
 0xb33   :  { %v2619_v24 = vadd.f32 %v2617_v16, %v9994_v10  ;;  %v8931_v16 = vld [vmem:[%s9956_s5 + $0xd0] sm:$0xff] }
 0xb3a   :  { %v7389_v25 = vpop.eup %7388 }
 0xb3b   :  { %2641 = vrot.lane.b32.xlu0 %v7389_v25, %s7657_s26  ;;  %v7391_v8 = vpop.eup %7390  ;;  %v5769_v25 = vmul.f32 -1.442695, %v2619_v24  ;;  %v8939_v24 = vld [vmem:[%s9956_s5 + $0x88] sm:$0xff] }
 0xb3c   :  { %v2623_v7 = vadd.f32 1.0, %v7391_v8 }
 0xb3e   :  { %7392 = vrcp.f32 %v2623_v7 }
 0xb3f   :  { %7394 = vpow2.f32 %v5768_v51  ;;  %v8838_v8 = vpop.permute.xlu1 %2975  ;;  %v8883_v51 = vld [vmem:[%s9956_s5 + $0xa8] sm:$0xff] }
 0xb40   :  { %vm2977_vm4 = vcmp.eq.s32.totalorder %v8838_v8, 1 }
 0xb43   :  { %v2662_v10 = vpop.permute.xlu1 %2661 }
 0xb4b   :  { %v7393_v42 = vpop.eup %7392 }
 0xb4c   :  { %v7395_v38 = vpop.eup %7394 }
 0xb4d   :  { %v2629_v4 = vadd.f32 1.0, %v7395_v38  ;;  %v8889_v38 = vld [vmem:[%s9956_s5 + $0xe8] sm:$0xff] }
 0xb4f   :  { %7396 = vrcp.f32 %v2629_v4  ;;  %v8897_v4 = vld [vmem:[%s9956_s5 + $0xa0] sm:$0xff] }
 0xb5c   :  { %v7397_v14 = vpop.eup %7396 }
 0xb5d   :  { %v2639_v6 = vmul.f32 %v7397_v14, %v8830_v61  ;;  %v8903_v14 = vld [vmem:[%s9956_s5 + $0xe0] sm:$0xff] }
 0xbad   :  { %v2642_v45 = vpop.permute.xlu0 %2641 }
 0xbae   :  { %v2644_v0 = vmul.f32 %v7393_v42, %v2642_v45 }
 0xbb0   :  { %2646 = vrot.lane.b32.xlu0 %v2644_v0, %s7658_s27  ;;  %v8855_v0 = vld [vmem:[%s9956_s5 + $0xb8] sm:$0xff] }
 0xc22   :  { %v2647_v13 = vpop.permute.xlu0 %2646 }
 0xc23   :  { %v8833_v9 = vadd.f32 %v2647_v13, %v2639_v6  ;;  %v8911_v6 = vld [vmem:[%s9956_s5 + $0x98] sm:$0xff] }
 0xc24   :  { %v8917_v13 = vld [vmem:[%s9956_s5 + $0xd8] sm:$0xff] }
 0xc25   :  { %7398 = vtanh.f32 %v8833_v9 }
 0xc26   :  { %7400 = vpow2.f32 %v5769_v25  ;;  %v8945_v25 = vld [vmem:[%s9956_s5 + $0xc8] sm:$0xff] }
 0xc32   :  { %v7399_v18 = vpop.eup %7398 }
 0xc33   :  { %2652 = vrot.lane.b32.xlu0 %v7399_v18, %s7657_s26  ;;  %v7401_v26 = vpop.eup %7400  ;;  %v8925_v18 = vld [vmem:[%s9956_s5 + $0x90] sm:$0xff] }
 0xc34   :  { %v2636_v41 = vadd.f32 1.0, %v7401_v26  ;;  %v8953_v26 = vld [vmem:[%s9956_s5 + $0x80] sm:$0xff] }
 0xc36   :  { %7402 = vrcp.f32 %v2636_v41  ;;  %v8961_v41 = vld [vmem:[%s9956_s5 + $0xc0] sm:$0xff] }
 0xc43   :  { %v7403_v5 = vpop.eup %7402 }
 0xca5   :  { %v2653_v19 = vpop.permute.xlu0 %2652 }
 0xca6   :  { %v2655_v52 = vmul.f32 %v7403_v5, %v2653_v19 }
 0xca8   :  { %2657 = vrot.lane.b32.xlu0 %v2655_v52, %s7658_s27  ;;  %v8845_v7 = vsel %vm2977_vm4, %v2655_v52, %v8561_v53  ;;  %v8861_v53 = vld [vmem:[%s9956_s5 + $0xf8] sm:$0xff]  ;;  %v9065_v52 = vld [vmem:[%s9957_s6 + $0x2] ss:$0 sm:$0xff] }
 0xca9   :  { %9997 = vst [vmem:[#allocation12_spill] sm:$0xff] %v9065_v52 }
 0xcac   :  { %2987 = vrot.lane.b32.xlu0 %v8845_v7, %s7658_s27 }
 0xd1a   :  { %v2658_v42 = vpop.permute.xlu0 %2657 }
 0xd1b   :  { %v2664_v45 = vsel %vm273_vm12, %v2658_v42, %v2662_v10  ;;  %v9071_v42 = vld [vmem:[%s9957_s6 + $0x3] ss:$0 sm:$0xff] }
 0xd1c   :  { %6745 = vmatmul.mubr.msk.f32.vlgmr.msra.gmra.mxu1 %vm637_vm13, %v2664_v45  ;;  %6764 = vmatmul.mubr.msk.f32.vlgmr.msra.gmra.mxu0 %vm637_vm13, %v2664_v45 }
 0xd1d   :  { %6767 = vmatpush3.msra.mxu1 %v8855_v0  ;;  %6786 = vmatpush3.msra.mxu0 %v8861_v53 }
 0xd1e   :  { %6768 = vmatprep.subr.mxu1 %v9989_v22  ;;  %6787 = vmatprep.subr.mxu0 %v9989_v22 }
 0xd1f   :  { %6769 = vmatpush3.msra.mxu1 %v8869_v20  ;;  %6788 = vmatpush3.msra.mxu0 %v8875_v12 }
 0xd20   :  { %6770 = vmatprep.subr.mxu1 %v9989_v22  ;;  %6789 = vmatprep.subr.mxu0 %v9989_v22 }
 0xd21   :  { %6771 = vmatpush3.msra.mxu1 %v8883_v51  ;;  %6790 = vmatpush3.msra.mxu0 %v8889_v38 }
 0xd22   :  { %6772 = vmatprep.subr.mxu1 %v9989_v22  ;;  %6791 = vmatprep.subr.mxu0 %v9989_v22 }
 0xd23   :  { %6773 = vmatpush3.msra.mxu1 %v8897_v4  ;;  %6792 = vmatpush3.msra.mxu0 %v8903_v14 }
 0xd24   :  { %6774 = vmatprep.subr.mxu1 %v9989_v22  ;;  %6793 = vmatprep.subr.mxu0 %v9989_v22 }
 0xd25   :  { %6775 = vmatpush3.msra.mxu1 %v8911_v6  ;;  %6794 = vmatpush3.msra.mxu0 %v8917_v13 }
 0xd26   :  { %6776 = vmatprep.subr.mxu1 %v9989_v22  ;;  %6795 = vmatprep.subr.mxu0 %v9989_v22 }
 0xd27   :  { %6777 = vmatpush3.msra.mxu1 %v8925_v18  ;;  %6796 = vmatpush3.msra.mxu0 %v8931_v16 }
 0xd28   :  { %6778 = vmatprep.subr.mxu1 %v9989_v22  ;;  %6797 = vmatprep.subr.mxu0 %v9989_v22 }
 0xd29   :  { %6779 = vmatpush3.msra.mxu1 %v8939_v24  ;;  %6798 = vmatpush3.msra.mxu0 %v8945_v25 }
 0xd2a   :  { %6780 = vmatprep.subr.mxu1 %v9989_v22  ;;  %6799 = vmatprep.subr.mxu0 %v9989_v22 }
 0xd2b   :  { %6781 = vmatpush3.msra.mxu1 %v8953_v26  ;;  %6782 = vmatprep.mubr.msk.f32.mxu1 %vm7656_vm0, %v9989_v22 }
 0xd2c   :  { %6800 = vmatpush3.msra.mxu0 %v8961_v41  ;;  %6801 = vmatprep.mubr.msk.f32.mxu0 %vm7656_vm0, %v9989_v22 }
 0xd2d   :  { %6783 = vmatmul.mubr.msk.f32.vlgmr.msra.gmra.mxu1 %vm637_vm13, %v2664_v45  ;;  %6802 = vmatmul.mubr.msk.f32.vlgmr.msra.gmra.mxu0 %vm637_vm13, %v2664_v45 }
 0xd2e   :  { %6804 = vmatprep.subr.mxu1 %v9989_v22  ;;  %6815 = vmatprep.subr.mxu0 %v9989_v22 }
 0xd2f   :  { %6805 = vmatpush3.msra.mxu1 %v8374_v37  ;;  %6816 = vmatpush3.msra.mxu0 %v8380_v35  ;;  %v2988_v37 = vpop.permute.xlu0 %2987 }
 0xd30   :  { %6806 = vmatprep.subr.mxu1 %v9989_v22  ;;  %6817 = vmatprep.subr.mxu0 %v9989_v22 }
 0xd31   :  { %6807 = vmatpush3.msra.mxu1 %v8388_v1  ;;  %6818 = vmatpush3.msra.mxu0 %v8394_v15  ;;  %v9053_v15 = vld [vmem:[%s9957_s6] ss:$0 sm:$0xff] }
 0xd32   :  { %6808 = vmatprep.subr.mxu1 %v9989_v22  ;;  %6819 = vmatprep.subr.mxu0 %v9989_v22  ;;  %9995 = vst [vmem:[#allocation4_spill] sm:$0xff] %v9053_v15 }
 0xd33   :  { %6809 = vmatpush3.msra.mxu1 %v8402_v21  ;;  %6820 = vmatpush3.msra.mxu0 %v8408_v23  ;;  %v9059_v23 = vld [vmem:[%s9957_s6 + $0x1] ss:$0 sm:$0xff] }
 0xd34   :  { %6810 = vmatprep.subr.mxu1 %v9989_v22  ;;  %6821 = vmatprep.subr.mxu0 %v9989_v22  ;;  %9996 = vst [vmem:[#allocation11_spill] sm:$0xff] %v9059_v23 }
 0xd35   :  { %6811 = vmatpush3.msra.mxu1 %v8416_v3  ;;  %6812 = vmatprep.mubr.msk.f32.mxu1 %vm7656_vm0, %v9989_v22 }
 0xd36   :  { %6822 = vmatpush3.msra.mxu0 %v8424_v2  ;;  %6823 = vmatprep.mubr.msk.f32.mxu0 %vm7656_vm0, %v9989_v22 }
 0xd37   :  { %6813 = vmatmul.mubr.msk.f32.vlgmr.msra.gmra.mxu1 %vm273_vm12, %v2988_v37  ;;  %6824 = vmatmul.mubr.msk.f32.vlgmr.msra.gmra.mxu0 %vm273_vm12, %v2988_v37 }
 0xd38   :  { %6826 = vmatprep.subr.mxu1 %v9989_v22  ;;  %6837 = vmatprep.subr.mxu0 %v9989_v22 }
 0xd39   :  { %6827 = vmatpush3.msra.mxu1 %v8436_v50  ;;  %6838 = vmatpush3.msra.mxu0 %v8632_v40 }
 0xd3a   :  { %6828 = vmatprep.subr.mxu1 %v9989_v22  ;;  %6839 = vmatprep.subr.mxu0 %v9989_v22 }
 0xd3b   :  { %6829 = vmatpush3.msra.mxu1 %v8445_v17  ;;  %6840 = vmatpush3.msra.mxu0 %v8641_v43 }
 0xd3c   :  { %6830 = vmatprep.subr.mxu1 %v9989_v22  ;;  %6841 = vmatprep.subr.mxu0 %v9989_v22 }
 0xd3d   :  { %6831 = vmatpush3.msra.mxu1 %v8454_v36  ;;  %6842 = vmatpush3.msra.mxu0 %v8650_v44 }
 0xd3e   :  { %6832 = vmatprep.subr.mxu1 %v9989_v22  ;;  %6843 = vmatprep.subr.mxu0 %v9989_v22 }
 0xd3f   :  { %6833 = vmatpush3.msra.mxu1 %v8463_v39  ;;  %6834 = vmatprep.mubr.msk.f32.mxu1 %vm7656_vm0, %v9989_v22 }
 0xd40   :  { %6844 = vmatpush3.msra.mxu0 %v8661_v46  ;;  %6845 = vmatprep.mubr.msk.f32.mxu0 %vm7656_vm0, %v9989_v22 }
 0xd41   :  { %6835 = vmatmul.mubr.msk.f32.vlgmr.msra.gmra.mxu1 %vm273_vm12, %v2988_v37  ;;  %6846 = vmatmul.mubr.msk.f32.vlgmr.msra.gmra.mxu0 %vm273_vm12, %v2988_v37 }
 0xd42   :  { %6848 = vmatprep.subr.mxu1 %v9989_v22  ;;  %6867 = vmatprep.subr.mxu0 %v9989_v22 }
 0xd43   :  { %6849 = vmatpush3.msra.mxu1 %v8673_v47  ;;  %6868 = vmatpush3.msra.mxu0 %v8679_v48 }
 0xd44   :  { %6850 = vmatprep.subr.mxu1 %v9989_v22  ;;  %6869 = vmatprep.subr.mxu0 %v9989_v22 }
 0xd45   :  { %6851 = vmatpush3.msra.mxu1 %v8687_v49  ;;  %6870 = vmatpush3.msra.mxu0 %v8693_v63 }
 0xd46   :  { %6852 = vmatprep.subr.mxu1 %v9989_v22  ;;  %6871 = vmatprep.subr.mxu0 %v9989_v22 }
 0xd47   :  { %6853 = vmatpush3.msra.mxu1 %v8701_v27  ;;  %6872 = vmatpush3.msra.mxu0 %v8707_v28 }
 0xd48   :  { %6854 = vmatprep.subr.mxu1 %v9989_v22  ;;  %6873 = vmatprep.subr.mxu0 %v9989_v22 }
 0xd49   :  { %6855 = vmatpush3.msra.mxu1 %v8715_v29  ;;  %6874 = vmatpush3.msra.mxu0 %v8721_v30 }
 0xd4a   :  { %6856 = vmatprep.subr.mxu1 %v9989_v22  ;;  %6875 = vmatprep.subr.mxu0 %v9989_v22 }
 0xd4b   :  { %6857 = vmatpush3.msra.mxu1 %v8729_v31  ;;  %6876 = vmatpush3.msra.mxu0 %v8735_v33 }
 0xd4c   :  { %6858 = vmatprep.subr.mxu1 %v9989_v22  ;;  %6877 = vmatprep.subr.mxu0 %v9989_v22 }
 0xd4d   :  { %6859 = vmatpush3.msra.mxu1 %v8743_v34  ;;  %6878 = vmatpush3.msra.mxu0 %v8749_v62 }
 0xd4e   :  { %6860 = vmatprep.subr.mxu1 %v9989_v22  ;;  %6879 = vmatprep.subr.mxu0 %v9989_v22 }
 0xd4f   :  { %6861 = vmatpush3.msra.mxu1 %v8757_v56  ;;  %6880 = vmatpush3.msra.mxu0 %v8763_v57 }
 0xd50   :  { %6862 = vmatprep.subr.mxu1 %v9989_v22  ;;  %6881 = vmatprep.subr.mxu0 %v9989_v22 }
 0xd51   :  { %6863 = vmatpush3.msra.mxu1 %v8771_v58  ;;  %6882 = vmatpush3.msra.mxu0 %v8777_v60 }
 0xd52   :  { %6864 = vmatprep.mubr.msk.f32.mxu1 %vm7656_vm0, %v9989_v22  ;;  %6883 = vmatprep.mubr.msk.f32.mxu0 %vm7656_vm0, %v9989_v22 }
 0xd53   :  { %6886 = vmatprep.subr.mxu1 %v9989_v22  ;;  %6905 = vmatprep.subr.mxu0 %v9989_v22 }
 0xddc   :  { %v2734_v35 = vpop.f32.mrf.mxu1  ;;  %v2804_v1 = vpop.f32.mrf.mxu0 }
 0xddd   :  { %v2735_v21 = vadd.f32 %v9053_v15, %v2734_v35  ;;  %v2805_v3 = vadd.f32 %v9059_v23, %v2804_v1 }
 0xdde   :  { %v6746_v2 = vpop.f32.mrf.mxu1  ;;  %v6765_v50 = vpop.f32.mrf.mxu0 }
 0xddf   :  { %v5774_v17 = vmul.f32 -1.442695, %v2735_v21  ;;  %v5775_v36 = vmul.f32 -1.442695, %v2805_v3 }
 0xde1   :  { %7404 = vpow2.f32 %v5774_v17 }
 0xde2   :  { %7406 = vpow2.f32 %v5775_v36 }
 0xded   :  { %v2874_v39 = vpop.f32.mrf.mxu1  ;;  %v2944_v5 = vpop.f32.mrf.mxu0 }
 0xdee   :  { %v7405_v19 = vpop.eup %7404  ;;  %v2875_v10 = vadd.f32 %v9065_v52, %v2874_v39  ;;  %v2945_v45 = vadd.f32 %v9071_v42, %v2944_v5 }
 0xdef   :  { %v7407_v37 = vpop.eup %7406  ;;  %v2951_v35 = vadd.f32 1.0, %v7405_v19  ;;  %v6784_v1 = vpop.f32.mrf.mxu1 }
 0xdf0   :  { %v6803_v21 = vpop.f32.mrf.mxu0  ;;  %v2957_v3 = vadd.f32 1.0, %v7407_v37  ;;  %7408 = vtanh.f32 %v2875_v10  ;;  %v5776_v2 = vmul.f32 -1.442695, %v2945_v45 }
 0xdf1   :  { %7410 = vrcp.f32 %v2951_v35 }
 0xdf2   :  { %7412 = vrcp.f32 %v2957_v3 }
 0xdf3   :  { %7414 = vpow2.f32 %v5776_v2 }
 0xdf7   :  { %v3057_v50 = vpop.f32.mrf.mxu1  ;;  %v3128_v17 = vpop.f32.mrf.mxu0 }
 0xdf9   :  { %v6814_v36 = vpop.f32.mrf.mxu1  ;;  %v6825_v39 = vpop.f32.mrf.mxu0 }
 0xdfd   :  { %v7409_v52 = vpop.eup %7408 }
 0xdfe   :  { %v7411_v23 = vpop.eup %7410 }
 0xdff   :  { %v7413_v15 = vpop.eup %7412  ;;  %v2968_v60 = vmul.f32 %v7411_v23, %v7409_v52 }
 0xe00   :  { %v7415_v58 = vpop.eup %7414  ;;  %v2967_v5 = vmul.f32 %v7413_v15, %v8795_v54 }
 0xe01   :  { %v2964_v19 = vadd.f32 1.0, %v7415_v58  ;;  %v3203_v1 = vpop.f32.mrf.mxu1  ;;  %v3278_v21 = vpop.f32.mrf.mxu0  ;;  %v3640_v58 = vsel %vm3639_vm5, 1, %v9988_v11 }
 0xe02   :  { %v2969_v37 = vadd.f32 %v2968_v60, %v2967_v5  ;;  %3208 = vrot.lane.b32.xlu1 %v3203_v1, %s7657_s26 }
 0xe03   :  { %7416 = vrcp.f32 %v2964_v19  ;;  %v6836_v10 = vpop.f32.mrf.mxu1  ;;  %v6847_v45 = vpop.f32.mrf.mxu0 }
 0xe04   :  { %7418 = vtanh.f32 %v2969_v37  ;;  %v9079_v35 = vsel %vm2977_vm4, %v2969_v37, %v8795_v54 }
 0xe06   :  { %3133 = vrot.lane.b32.xlu1 %v3128_v17, %s7658_s27  ;;  %v9998_v17 = vld [vmem:[#allocation7_spill] sm:$0xff] }
 0xe07   :  { %v3061_v5 = vadd.f32 %v3057_v50, %v9998_v17  ;;  %v9106_v50 = vsel %vm2977_vm4, %v8833_v9, %v8830_v61 }
 0xe0a   :  { %3283 = vrot.lane.b32.xlu1 %v3278_v21, %s7659_s10 }
 0xe0e   :  { %3642 = vperm.xlu1 %7291, %v3640_v58  }
 0xe10   :  { %v7417_v60 = vpop.eup %7416 }
 0xe11   :  { %v7419_v15 = vpop.eup %7418 }
 0xe12   :  { %v2971_v23 = vmul.f32 %v7419_v15, %v7417_v60 }
 0xe14   :  { %v9088_v52 = vsel %vm2977_vm4, %v2971_v23, %v8813_v32  ;;  %v2982_v54 = vsel %vm2977_vm4, %v2971_v23, 0.0  ;;  %v5781_v32 = vmul.f32 -1.442695, %v3061_v5 }
 0xe15   :  { %v9093_v3 = vadd.f32 %v2982_v54, %v8817_v59  ;;  %3328 = vrot.lane.b32.xlu1 %v9088_v52, %s7658_s27 }
 0xe74   :  { %v3209_v2 = vpop.permute.xlu1 %3208 }
 0xe75   :  { %v3211_v36 = vadd.f32 %v3209_v2, %v9998_v17 }
 0xe77   :  { %7420 = vtanh.f32 %v3211_v36 }
 0xe78   :  { %7422 = vpow2.f32 %v5781_v32  ;;  %v3134_v10 = vpop.permute.xlu1 %3133 }
 0xe79   :  { %v3136_v45 = vadd.f32 %v3134_v10, %v9998_v17 }
 0xe7b   :  { %v5782_v58 = vmul.f32 -1.442695, %v3136_v45 }
 0xe7c   :  { %v3284_v5 = vpop.permute.xlu1 %3283 }
 0xe7d   :  { %v3286_v32 = vadd.f32 %v3284_v5, %v9998_v17  ;;  %v9219_v5 = vld [vmem:[%s9951_s4 + $0x20] sm:$0xff] }
 0xe84   :  { %v7421_v39 = vpop.eup %7420 }
 0xe85   :  { %3308 = vrot.lane.b32.xlu0 %v7421_v39, %s7657_s26  ;;  %v7423_v19 = vpop.eup %7422 }
 0xe86   :  { %v3290_v1 = vadd.f32 1.0, %v7423_v19  ;;  %v5783_v19 = vmul.f32 -1.442695, %v3286_v32  ;;  %v9231_v32 = vld [vmem:[%s9951_s4 + $0x58] sm:$0xff] }
 0xe88   :  { %7424 = vrcp.f32 %v3290_v1 }
 0xe89   :  { %7426 = vpow2.f32 %v5782_v58  ;;  %v9175_v58 = vld [vmem:[%s9951_s4 + $0x38] sm:$0xff] }
 0xe95   :  { %v7425_v21 = vpop.eup %7424 }
 0xe96   :  { %v7427_v60 = vpop.eup %7426 }
 0xe97   :  { %v3296_v15 = vadd.f32 1.0, %v7427_v60  ;;  %v9183_v60 = vld [vmem:[%s9951_s4 + $0x10] sm:$0xff] }
 0xe99   :  { %7428 = vrcp.f32 %v3296_v15  ;;  %v9189_v15 = vld [vmem:[%s9951_s4 + $0x30] sm:$0xff] }
 0xea6   :  { %v7429_v23 = vpop.eup %7428 }
 0xea7   :  { %v3306_v54 = vmul.f32 %v7429_v23, %v9106_v50  ;;  %v9197_v23 = vld [vmem:[%s9951_s4 + $0x8] sm:$0xff] }
 0xef7   :  { %v3309_v59 = vpop.permute.xlu0 %3308 }
 0xef8   :  { %v3311_v37 = vmul.f32 %v7425_v21, %v3309_v59  ;;  %v9114_v59 = vpop.permute.xlu1 %3642 }
 0xef9   :  { %vm3644_vm6 = vcmp.eq.s32.totalorder %v9114_v59, 1 }
 0xefa   :  { %3313 = vrot.lane.b32.xlu0 %v3311_v37, %s7658_s27 }
 0xefc   :  { %v3329_v17 = vpop.permute.xlu1 %3328 }
 0xf6c   :  { %v3314_v2 = vpop.permute.xlu0 %3313 }
 0xf6d   :  { %v9109_v36 = vadd.f32 %v3314_v2, %v3306_v54  ;;  %v9203_v54 = vld [vmem:[%s9951_s4 + $0x28] sm:$0xff]  ;;  %v9211_v2 = vld [vmem:[%s9951_s4] sm:$0xff] }
 0xf6f   :  { %7430 = vtanh.f32 %v9109_v36 }
 0xf70   :  { %7432 = vpow2.f32 %v5783_v19  ;;  %v9240_v19 = vld [vmem:[%s9951_s4 + $0x50] sm:$0xff] }
 0xf7c   :  { %v7431_v39 = vpop.eup %7430 }
 0xf7d   :  { %3319 = vrot.lane.b32.xlu0 %v7431_v39, %s7657_s26  ;;  %v7433_v1 = vpop.eup %7432 }
 0xf7e   :  { %v3303_v21 = vadd.f32 1.0, %v7433_v1 }
 0xf80   :  { %7434 = vrcp.f32 %v3303_v21 }
 0xf8d   :  { %v7435_v61 = vpop.eup %7434 }
 0xfef   :  { %v3320_v9 = vpop.permute.xlu0 %3319 }
 0xff0   :  { %v3322_v8 = vmul.f32 %v7435_v61, %v3320_v9 }
 0xff2   :  { %3324 = vrot.lane.b32.xlu0 %v3322_v8, %s7658_s27  ;;  %v9121_v37 = vsel %vm3644_vm6, %v3322_v8, %v8845_v7  ;;  %v9169_v7 = vld [vmem:[%s9951_s4 + $0x18] sm:$0xff] }
 0xff6   :  { %3654 = vrot.lane.b32.xlu0 %v9121_v37, %s7658_s27 }
0x1064   :  { %v3325_v10 = vpop.permute.xlu0 %3324 }
0x1065   :  { %v3331_v45 = vsel %vm273_vm12, %v3325_v10, %v3329_v17 }
0x1066   :  { %6865 = vmatmul.mubr.msk.f32.vlgmr.msra.gmra.mxu1 %vm637_vm13, %v3331_v45  ;;  %6884 = vmatmul.mubr.msk.f32.vlgmr.msra.gmra.mxu0 %vm637_vm13, %v3331_v45 }
0x1067   :  { %6887 = vmatpush3.msra.mxu1 %v8855_v0  ;;  %6906 = vmatpush3.msra.mxu0 %v8861_v53 }
0x1068   :  { %6888 = vmatprep.subr.mxu1 %v9989_v22  ;;  %6907 = vmatprep.subr.mxu0 %v9989_v22  ;;  %v3655_v39 = vpop.permute.xlu0 %3654 }
0x1069   :  { %6889 = vmatpush3.msra.mxu1 %v8869_v20  ;;  %6908 = vmatpush3.msra.mxu0 %v8875_v12 }
0x106a   :  { %6890 = vmatprep.subr.mxu1 %v9989_v22  ;;  %6909 = vmatprep.subr.mxu0 %v9989_v22 }
0x106b   :  { %6891 = vmatpush3.msra.mxu1 %v8883_v51  ;;  %6910 = vmatpush3.msra.mxu0 %v8889_v38 }
0x106c   :  { %6892 = vmatprep.subr.mxu1 %v9989_v22  ;;  %6911 = vmatprep.subr.mxu0 %v9989_v22 }
0x106d   :  { %6893 = vmatpush3.msra.mxu1 %v8897_v4  ;;  %6912 = vmatpush3.msra.mxu0 %v8903_v14 }
0x106e   :  { %6894 = vmatprep.subr.mxu1 %v9989_v22  ;;  %6913 = vmatprep.subr.mxu0 %v9989_v22 }
0x106f   :  { %6895 = vmatpush3.msra.mxu1 %v8911_v6  ;;  %6914 = vmatpush3.msra.mxu0 %v8917_v13 }
0x1070   :  { %6896 = vmatprep.subr.mxu1 %v9989_v22  ;;  %6915 = vmatprep.subr.mxu0 %v9989_v22 }
0x1071   :  { %6897 = vmatpush3.msra.mxu1 %v8925_v18  ;;  %6916 = vmatpush3.msra.mxu0 %v8931_v16 }
0x1072   :  { %6898 = vmatprep.subr.mxu1 %v9989_v22  ;;  %6917 = vmatprep.subr.mxu0 %v9989_v22 }
0x1073   :  { %6899 = vmatpush3.msra.mxu1 %v8939_v24  ;;  %6918 = vmatpush3.msra.mxu0 %v8945_v25 }
0x1074   :  { %6900 = vmatprep.subr.mxu1 %v9989_v22  ;;  %6919 = vmatprep.subr.mxu0 %v9989_v22 }
0x1075   :  { %6901 = vmatpush3.msra.mxu1 %v8953_v26  ;;  %6902 = vmatprep.mubr.msk.f32.mxu1 %vm7656_vm0, %v9989_v22 }
0x1076   :  { %6920 = vmatpush3.msra.mxu0 %v8961_v41  ;;  %6921 = vmatprep.mubr.msk.f32.mxu0 %vm7656_vm0, %v9989_v22 }
0x1077   :  { %6903 = vmatmul.mubr.msk.f32.vlgmr.msra.gmra.mxu1 %vm637_vm13, %v3331_v45  ;;  %6922 = vmatmul.mubr.msk.f32.vlgmr.msra.gmra.mxu0 %vm637_vm13, %v3331_v45 }
0x1078   :  { %6924 = vmatprep.subr.mxu1 %v9989_v22  ;;  %6935 = vmatprep.subr.mxu0 %v9989_v22 }
0x1079   :  { %6925 = vmatpush3.msra.mxu1 %v9169_v7  ;;  %6936 = vmatpush3.msra.mxu0 %v9175_v58 }
0x107a   :  { %6926 = vmatprep.subr.mxu1 %v9989_v22  ;;  %6937 = vmatprep.subr.mxu0 %v9989_v22 }
0x107b   :  { %6927 = vmatpush3.msra.mxu1 %v9183_v60  ;;  %6938 = vmatpush3.msra.mxu0 %v9189_v15 }
0x107c   :  { %6928 = vmatprep.subr.mxu1 %v9989_v22  ;;  %6939 = vmatprep.subr.mxu0 %v9989_v22 }
0x107d   :  { %6929 = vmatpush3.msra.mxu1 %v9197_v23  ;;  %6940 = vmatpush3.msra.mxu0 %v9203_v54 }
0x107e   :  { %6930 = vmatprep.subr.mxu1 %v9989_v22  ;;  %6941 = vmatprep.subr.mxu0 %v9989_v22 }
0x107f   :  { %6931 = vmatpush3.msra.mxu1 %v9211_v2  ;;  %6932 = vmatprep.mubr.msk.f32.mxu1 %vm7656_vm0, %v9989_v22 }
0x1080   :  { %6942 = vmatpush3.msra.mxu0 %v9219_v5  ;;  %6943 = vmatprep.mubr.msk.f32.mxu0 %vm7656_vm0, %v9989_v22 }
0x1081   :  { %6933 = vmatmul.mubr.msk.f32.vlgmr.msra.gmra.mxu1 %vm273_vm12, %v3655_v39  ;;  %6944 = vmatmul.mubr.msk.f32.vlgmr.msra.gmra.mxu0 %vm273_vm12, %v3655_v39 }
0x1082   :  { %6946 = vmatprep.subr.mxu1 %v9989_v22  ;;  %6957 = vmatprep.subr.mxu0 %v9989_v22 }
0x1083   :  { %6947 = vmatpush3.msra.mxu1 %v9231_v32  ;;  %6958 = vmatpush3.msra.mxu0 %v8632_v40  ;;  %v9249_v40 = vld [vmem:[%s9951_s4 + $0x48] sm:$0xff] }
0x1084   :  { %6948 = vmatprep.subr.mxu1 %v9989_v22  ;;  %6959 = vmatprep.subr.mxu0 %v9989_v22 }
0x1085   :  { %6949 = vmatpush3.msra.mxu1 %v9240_v19  ;;  %6960 = vmatpush3.msra.mxu0 %v8641_v43  ;;  %v9258_v43 = vld [vmem:[%s9951_s4 + $0x40] sm:$0xff] }
0x1086   :  { %6950 = vmatprep.subr.mxu1 %v9989_v22  ;;  %6961 = vmatprep.subr.mxu0 %v9989_v22 }
0x1087   :  { %6951 = vmatpush3.msra.mxu1 %v9249_v40  ;;  %6962 = vmatpush3.msra.mxu0 %v8650_v44  ;;  %v9999_v44 = vld [vmem:[#allocation10_spill] sm:$0xff] }
0x1088   :  { %6952 = vmatprep.subr.mxu1 %v9989_v22  ;;  %6963 = vmatprep.subr.mxu0 %v9989_v22 }
0x1089   :  { %6953 = vmatpush3.msra.mxu1 %v9258_v43  ;;  %6954 = vmatprep.mubr.msk.f32.mxu1 %vm7656_vm0, %v9989_v22 }
0x108a   :  { %6964 = vmatpush3.msra.mxu0 %v8661_v46  ;;  %6965 = vmatprep.mubr.msk.f32.mxu0 %vm7656_vm0, %v9989_v22  ;;  %v10000_v46 = vld [vmem:[#allocation5_spill] sm:$0xff] }
0x108b   :  { %6955 = vmatmul.mubr.msk.f32.vlgmr.msra.gmra.mxu1 %vm273_vm12, %v3655_v39  ;;  %6966 = vmatmul.mubr.msk.f32.vlgmr.msra.gmra.mxu0 %vm273_vm12, %v3655_v39 }
0x108c   :  { %6968 = vmatprep.subr.mxu1 %v9989_v22  ;;  %6987 = vmatprep.subr.mxu0 %v9989_v22 }
0x108d   :  { %6969 = vmatpush3.msra.mxu1 %v8673_v47  ;;  %6988 = vmatpush3.msra.mxu0 %v8679_v48 }
0x108e   :  { %6970 = vmatprep.subr.mxu1 %v9989_v22  ;;  %6989 = vmatprep.subr.mxu0 %v9989_v22 }
0x108f   :  { %6971 = vmatpush3.msra.mxu1 %v8687_v49  ;;  %6990 = vmatpush3.msra.mxu0 %v8693_v63  ;;  %v10001_v49 = vld [vmem:[#allocation4_spill] sm:$0xff] }
0x1090   :  { %6972 = vmatprep.subr.mxu1 %v9989_v22  ;;  %6991 = vmatprep.subr.mxu0 %v9989_v22 }
0x1091   :  { %6973 = vmatpush3.msra.mxu1 %v8701_v27  ;;  %6992 = vmatpush3.msra.mxu0 %v8707_v28  ;;  %v10002_v27 = vld [vmem:[#allocation11_spill] sm:$0xff] }
0x1092   :  { %6974 = vmatprep.subr.mxu1 %v9989_v22  ;;  %6993 = vmatprep.subr.mxu0 %v9989_v22 }
0x1093   :  { %6975 = vmatpush3.msra.mxu1 %v8715_v29  ;;  %6994 = vmatpush3.msra.mxu0 %v8721_v30 }
0x1094   :  { %6976 = vmatprep.subr.mxu1 %v9989_v22  ;;  %6995 = vmatprep.subr.mxu0 %v9989_v22 }
0x1095   :  { %6977 = vmatpush3.msra.mxu1 %v8729_v31  ;;  %6996 = vmatpush3.msra.mxu0 %v8735_v33 }
0x1096   :  { %6978 = vmatprep.subr.mxu1 %v9989_v22  ;;  %6997 = vmatprep.subr.mxu0 %v9989_v22 }
0x1097   :  { %6979 = vmatpush3.msra.mxu1 %v8743_v34  ;;  %6998 = vmatpush3.msra.mxu0 %v8749_v62 }
0x1098   :  { %6980 = vmatprep.subr.mxu1 %v9989_v22  ;;  %6999 = vmatprep.subr.mxu0 %v9989_v22 }
0x1099   :  { %6981 = vmatpush3.msra.mxu1 %v8757_v56  ;;  %7000 = vmatpush3.msra.mxu0 %v8763_v57  ;;  %v10003_v57 = vld [vmem:[#allocation12_spill] sm:$0xff] }
0x109a   :  { %6982 = vmatprep.subr.mxu1 %v9989_v22  ;;  %7001 = vmatprep.subr.mxu0 %v9989_v22 }
0x109b   :  { %6983 = vmatpush3.msra.mxu1 %v9999_v44  ;;  %7002 = vmatpush3.msra.mxu0 %v10000_v46 }
0x109c   :  { %6984 = vmatprep.mubr.msk.f32.mxu1 %vm7656_vm0, %v9989_v22  ;;  %7003 = vmatprep.mubr.msk.f32.mxu0 %vm7656_vm0, %v9989_v22 }
0x109d   :  { %7006 = vmatprep.subr.mxu1 %v9989_v22  ;;  %7025 = vmatprep.subr.mxu0 %v9989_v22 }
0x1126   :  { %v3401_v47 = vpop.f32.mrf.mxu1  ;;  %v3471_v48 = vpop.f32.mrf.mxu0 }
0x1127   :  { %v3402_v63 = vadd.f32 %v10001_v49, %v3401_v47  ;;  %v3472_v28 = vadd.f32 %v10002_v27, %v3471_v48 }
0x1128   :  { %v6866_v29 = vpop.f32.mrf.mxu1  ;;  %v6885_v30 = vpop.f32.mrf.mxu0 }
0x1129   :  { %v5788_v31 = vmul.f32 -1.442695, %v3402_v63  ;;  %v5789_v33 = vmul.f32 -1.442695, %v3472_v28 }
0x112b   :  { %7436 = vpow2.f32 %v5788_v31 }
0x112c   :  { %7438 = vpow2.f32 %v5789_v33 }
0x1137   :  { %v3541_v34 = vpop.f32.mrf.mxu1  ;;  %v3611_v62 = vpop.f32.mrf.mxu0 }
0x1138   :  { %v7437_v56 = vpop.eup %7436  ;;  %v3542_v1 = vadd.f32 %v10003_v57, %v3541_v34  ;;  %v3612_v21 = vadd.f32 %v9071_v42, %v3611_v62 }
0x1139   :  { %v7439_v61 = vpop.eup %7438  ;;  %v3618_v9 = vadd.f32 1.0, %v7437_v56  ;;  %v6904_v8 = vpop.f32.mrf.mxu1 }
0x113a   :  { %v6923_v17 = vpop.f32.mrf.mxu0  ;;  %v3624_v10 = vadd.f32 1.0, %v7439_v61  ;;  %7440 = vtanh.f32 %v3542_v1  ;;  %v5790_v45 = vmul.f32 -1.442695, %v3612_v21 }
0x113b   :  { %7442 = vrcp.f32 %v3618_v9  ;;  %v4307_v9 = vsel %vm4306_vm7, 1, %v9988_v11 }
0x113c   :  { %7444 = vrcp.f32 %v3624_v10 }
0x113d   :  { %7446 = vpow2.f32 %v5790_v45 }
0x1141   :  { %v3724_v39 = vpop.f32.mrf.mxu1  ;;  %v3795_v44 = vpop.f32.mrf.mxu0 }
0x1143   :  { %v6934_v46 = vpop.f32.mrf.mxu1  ;;  %v6945_v47 = vpop.f32.mrf.mxu0 }
0x1144   :  { %v10004_v46 = vld [vmem:[#allocation6_spill] sm:$0xff] }
0x1147   :  { %v7441_v48 = vpop.eup %7440 }
0x1148   :  { %v7443_v63 = vpop.eup %7442 }
0x1149   :  { %v7445_v28 = vpop.eup %7444  ;;  %v3635_v29 = vmul.f32 %v7443_v63, %v7441_v48  ;;  %v3728_v63 = vadd.f32 %v3724_v39, %v10004_v46  ;;  %v9342_v39 = vsel %vm3644_vm6, %v9109_v36, %v9106_v50 }
0x114a   :  { %v7447_v30 = vpop.eup %7446  ;;  %v3634_v31 = vmul.f32 %v7445_v28, %v9079_v35 }
0x114b   :  { %v3631_v33 = vadd.f32 1.0, %v7447_v30  ;;  %v3870_v34 = vpop.f32.mrf.mxu1  ;;  %v3945_v62 = vpop.f32.mrf.mxu0 }
0x114c   :  { %v3636_v56 = vadd.f32 %v3635_v29, %v3634_v31  ;;  %3875 = vrot.lane.b32.xlu1 %v3870_v34, %s7657_s26 }
0x114d   :  { %7448 = vrcp.f32 %v3631_v33  ;;  %v6956_v1 = vpop.f32.mrf.mxu1  ;;  %v6967_v21 = vpop.f32.mrf.mxu0 }
0x114e   :  { %7450 = vtanh.f32 %v3636_v56  ;;  %v9315_v61 = vsel %vm3644_vm6, %v3636_v56, %v9079_v35 }
0x1150   :  { %3800 = vrot.lane.b32.xlu1 %v3795_v44, %s7658_s27 }
0x1154   :  { %3950 = vrot.lane.b32.xlu1 %v3945_v62, %s7659_s10 }
0x1158   :  { %4309 = vperm.xlu1 %7291, %v4307_v9  }
0x115a   :  { %v7449_v8 = vpop.eup %7448 }
0x115b   :  { %v7451_v17 = vpop.eup %7450 }
0x115c   :  { %v3638_v10 = vmul.f32 %v7451_v17, %v7449_v8 }
0x115e   :  { %v9324_v45 = vsel %vm3644_vm6, %v3638_v10, %v9088_v52  ;;  %v3649_v35 = vsel %vm3644_vm6, %v3638_v10, 0.0  ;;  %v5795_v52 = vmul.f32 -1.442695, %v3728_v63 }
0x115f   :  { %v9329_v44 = vadd.f32 %v3649_v35, %v9093_v3  ;;  %3995 = vrot.lane.b32.xlu1 %v9324_v45, %s7658_s27 }
0x11be   :  { %v3876_v55 = vpop.permute.xlu1 %3875 }
0x11bf   :  { %v3878_v47 = vadd.f32 %v3876_v55, %v10004_v46 }
0x11c1   :  { %7452 = vtanh.f32 %v3878_v47 }
0x11c2   :  { %7454 = vpow2.f32 %v5795_v52  ;;  %v3801_v33 = vpop.permute.xlu1 %3800 }
0x11c3   :  { %v3803_v34 = vadd.f32 %v3801_v33, %v10004_v46  ;;  %v9567_v33 = vld [vmem:[%s9956_s5] sm:$0xff] }
0x11c5   :  { %v5796_v62 = vmul.f32 -1.442695, %v3803_v34  ;;  %v9573_v34 = vld [vmem:[%s9956_s5 + $0x40] sm:$0xff] }
0x11c6   :  { %v3951_v35 = vpop.permute.xlu1 %3950 }
0x11c7   :  { %v3953_v55 = vadd.f32 %v3951_v35, %v10004_v46 }
0x11c9   :  { %v5797_v47 = vmul.f32 -1.442695, %v3953_v55 }
0x11ce   :  { %v7453_v48 = vpop.eup %7452 }
0x11cf   :  { %3975 = vrot.lane.b32.xlu0 %v7453_v48, %s7657_s26  ;;  %v7455_v28 = vpop.eup %7454 }
0x11d0   :  { %v3957_v29 = vadd.f32 1.0, %v7455_v28 }
0x11d2   :  { %7456 = vrcp.f32 %v3957_v29 }
0x11d3   :  { %7458 = vpow2.f32 %v5796_v62  ;;  %v9350_v52 = vpop.permute.xlu1 %4309 }
0x11d4   :  { %vm4311_vm8 = vcmp.eq.s32.totalorder %v9350_v52, 1 }
0x11d7   :  { %v3996_v46 = vpop.permute.xlu1 %3995 }
0x11df   :  { %v7457_v30 = vpop.eup %7456 }
0x11e0   :  { %v7459_v56 = vpop.eup %7458 }
0x11e1   :  { %v3963_v1 = vadd.f32 1.0, %v7459_v56 }
0x11e3   :  { %7460 = vrcp.f32 %v3963_v1 }
0x11f0   :  { %v7461_v21 = vpop.eup %7460 }
0x11f1   :  { %v3973_v9 = vmul.f32 %v7461_v21, %v9342_v39 }
0x1241   :  { %v3976_v3 = vpop.permute.xlu0 %3975 }
0x1242   :  { %v3978_v31 = vmul.f32 %v7457_v30, %v3976_v3  ;;  %v9553_v3 = vld [vmem:[%s9956_s5 + $0x8] sm:$0xff] }
0x1244   :  { %3980 = vrot.lane.b32.xlu0 %v3978_v31, %s7658_s27  ;;  %v9559_v31 = vld [vmem:[%s9956_s5 + $0x48] sm:$0xff] }
0x12b6   :  { %v3981_v8 = vpop.permute.xlu0 %3980 }
0x12b7   :  { %v9345_v17 = vadd.f32 %v3981_v8, %v3973_v9 }
0x12b9   :  { %7462 = vtanh.f32 %v9345_v17 }
0x12ba   :  { %7464 = vpow2.f32 %v5797_v47 }
0x12c6   :  { %v7463_v10 = vpop.eup %7462 }
0x12c7   :  { %3986 = vrot.lane.b32.xlu0 %v7463_v10, %s7657_s26  ;;  %v7465_v48 = vpop.eup %7464 }
0x12c8   :  { %v3970_v63 = vadd.f32 1.0, %v7465_v48 }
0x12ca   :  { %7466 = vrcp.f32 %v3970_v63 }
0x12d7   :  { %v7467_v50 = vpop.eup %7466 }
0x1339   :  { %v3987_v36 = vpop.permute.xlu0 %3986 }
0x133a   :  { %v3989_v59 = vmul.f32 %v7467_v50, %v3987_v36 }
0x133c   :  { %3991 = vrot.lane.b32.xlu0 %v3989_v59, %s7658_s27  ;;  %v9357_v28 = vsel %vm4311_vm8, %v3989_v59, %v9121_v37  ;;  %v9545_v37 = vld [vmem:[%s9956_s5 + $0x50] sm:$0xff] }
0x1340   :  { %4321 = vrot.lane.b32.xlu0 %v9357_v28, %s7658_s27 }
0x13ae   :  { %v3992_v29 = vpop.permute.xlu0 %3991 }
0x13af   :  { %v3998_v30 = vsel %vm273_vm12, %v3992_v29, %v3996_v46 }
0x13b0   :  { %6985 = vmatmul.mubr.msk.f32.vlgmr.msra.gmra.mxu1 %vm637_vm13, %v3998_v30  ;;  %7004 = vmatmul.mubr.msk.f32.vlgmr.msra.gmra.mxu0 %vm637_vm13, %v3998_v30 }
0x13b1   :  { %7007 = vmatpush3.msra.mxu1 %v8855_v0  ;;  %7026 = vmatpush3.msra.mxu0 %v8861_v53  ;;  %v9428_v53 = vld [vmem:[%s9951_s4 + $0x78] sm:$0xff] }
0x13b2   :  { %7008 = vmatprep.subr.mxu1 %v9989_v22  ;;  %7027 = vmatprep.subr.mxu0 %v9989_v22  ;;  %v4322_v0 = vpop.permute.xlu0 %4321 }
0x13b3   :  { %7009 = vmatpush3.msra.mxu1 %v8869_v20  ;;  %7028 = vmatpush3.msra.mxu0 %v8875_v12  ;;  %v9437_v20 = vld [vmem:[%s9951_s4 + $0x70] sm:$0xff]  ;;  %v9446_v12 = vld [vmem:[%s9951_s4 + $0x68] sm:$0xff] }
0x13b4   :  { %7010 = vmatprep.subr.mxu1 %v9989_v22  ;;  %7029 = vmatprep.subr.mxu0 %v9989_v22 }
0x13b5   :  { %7011 = vmatpush3.msra.mxu1 %v8883_v51  ;;  %7030 = vmatpush3.msra.mxu0 %v8889_v38  ;;  %v9457_v51 = vld [vmem:[%s9951_s4 + $0x60] sm:$0xff]  ;;  %v9469_v38 = vld [vmem:[%s9956_s5 + $0x38] sm:$0xff] }
0x13b6   :  { %7012 = vmatprep.subr.mxu1 %v9989_v22  ;;  %7031 = vmatprep.subr.mxu0 %v9989_v22 }
0x13b7   :  { %7013 = vmatpush3.msra.mxu1 %v8897_v4  ;;  %7032 = vmatpush3.msra.mxu0 %v8903_v14  ;;  %v9475_v4 = vld [vmem:[%s9956_s5 + $0x78] sm:$0xff]  ;;  %v9483_v14 = vld [vmem:[%s9956_s5 + $0x30] sm:$0xff] }
0x13b8   :  { %7014 = vmatprep.subr.mxu1 %v9989_v22  ;;  %7033 = vmatprep.subr.mxu0 %v9989_v22 }
0x13b9   :  { %7015 = vmatpush3.msra.mxu1 %v8911_v6  ;;  %7034 = vmatpush3.msra.mxu0 %v8917_v13  ;;  %v9489_v6 = vld [vmem:[%s9956_s5 + $0x70] sm:$0xff]  ;;  %v9497_v13 = vld [vmem:[%s9956_s5 + $0x28] sm:$0xff] }
0x13ba   :  { %7016 = vmatprep.subr.mxu1 %v9989_v22  ;;  %7035 = vmatprep.subr.mxu0 %v9989_v22 }
0x13bb   :  { %7017 = vmatpush3.msra.mxu1 %v8925_v18  ;;  %7036 = vmatpush3.msra.mxu0 %v8931_v16  ;;  %v9503_v18 = vld [vmem:[%s9956_s5 + $0x68] sm:$0xff]  ;;  %v9511_v16 = vld [vmem:[%s9956_s5 + $0x20] sm:$0xff] }
0x13bc   :  { %7018 = vmatprep.subr.mxu1 %v9989_v22  ;;  %7037 = vmatprep.subr.mxu0 %v9989_v22 }
0x13bd   :  { %7019 = vmatpush3.msra.mxu1 %v8939_v24  ;;  %7038 = vmatpush3.msra.mxu0 %v8945_v25  ;;  %v9517_v24 = vld [vmem:[%s9956_s5 + $0x60] sm:$0xff]  ;;  %v9525_v25 = vld [vmem:[%s9956_s5 + $0x18] sm:$0xff] }
0x13be   :  { %7020 = vmatprep.subr.mxu1 %v9989_v22  ;;  %7039 = vmatprep.subr.mxu0 %v9989_v22 }
0x13bf   :  { %7021 = vmatpush3.msra.mxu1 %v8953_v26  ;;  %7022 = vmatprep.mubr.msk.f32.mxu1 %vm7656_vm0, %v9989_v22  ;;  %v9531_v26 = vld [vmem:[%s9956_s5 + $0x58] sm:$0xff] }
0x13c0   :  { %7040 = vmatpush3.msra.mxu0 %v8961_v41  ;;  %7041 = vmatprep.mubr.msk.f32.mxu0 %vm7656_vm0, %v9989_v22  ;;  %v9539_v41 = vld [vmem:[%s9956_s5 + $0x10] sm:$0xff] }
0x13c1   :  { %7023 = vmatmul.mubr.msk.f32.vlgmr.msra.gmra.mxu1 %vm637_vm13, %v3998_v30  ;;  %7042 = vmatmul.mubr.msk.f32.vlgmr.msra.gmra.mxu0 %vm637_vm13, %v3998_v30 }
0x13c2   :  { %7044 = vmatprep.subr.mxu1 %v9989_v22  ;;  %7055 = vmatprep.subr.mxu0 %v9989_v22 }
0x13c3   :  { %7045 = vmatpush3.msra.mxu1 %v9169_v7  ;;  %7056 = vmatpush3.msra.mxu0 %v9175_v58 }
0x13c4   :  { %7046 = vmatprep.subr.mxu1 %v9989_v22  ;;  %7057 = vmatprep.subr.mxu0 %v9989_v22 }
0x13c5   :  { %7047 = vmatpush3.msra.mxu1 %v9183_v60  ;;  %7058 = vmatpush3.msra.mxu0 %v9189_v15 }
0x13c6   :  { %7048 = vmatprep.subr.mxu1 %v9989_v22  ;;  %7059 = vmatprep.subr.mxu0 %v9989_v22 }
0x13c7   :  { %7049 = vmatpush3.msra.mxu1 %v9197_v23  ;;  %7060 = vmatpush3.msra.mxu0 %v9203_v54 }
0x13c8   :  { %7050 = vmatprep.subr.mxu1 %v9989_v22  ;;  %7061 = vmatprep.subr.mxu0 %v9989_v22 }
0x13c9   :  { %7051 = vmatpush3.msra.mxu1 %v9211_v2  ;;  %7052 = vmatprep.mubr.msk.f32.mxu1 %vm7656_vm0, %v9989_v22 }
0x13ca   :  { %7062 = vmatpush3.msra.mxu0 %v9219_v5  ;;  %7063 = vmatprep.mubr.msk.f32.mxu0 %vm7656_vm0, %v9989_v22 }
0x13cb   :  { %7053 = vmatmul.mubr.msk.f32.vlgmr.msra.gmra.mxu1 %vm273_vm12, %v4322_v0  ;;  %7064 = vmatmul.mubr.msk.f32.vlgmr.msra.gmra.mxu0 %vm273_vm12, %v4322_v0 }
0x13cc   :  { %7066 = vmatprep.subr.mxu1 %v9989_v22  ;;  %7077 = vmatprep.subr.mxu0 %v9989_v22 }
0x13cd   :  { %7067 = vmatpush3.msra.mxu1 %v9231_v32  ;;  %7078 = vmatpush3.msra.mxu0 %v9428_v53 }
0x13ce   :  { %7068 = vmatprep.subr.mxu1 %v9989_v22  ;;  %7079 = vmatprep.subr.mxu0 %v9989_v22 }
0x13cf   :  { %7069 = vmatpush3.msra.mxu1 %v9240_v19  ;;  %7080 = vmatpush3.msra.mxu0 %v9437_v20 }
0x13d0   :  { %7070 = vmatprep.subr.mxu1 %v9989_v22  ;;  %7081 = vmatprep.subr.mxu0 %v9989_v22 }
0x13d1   :  { %7071 = vmatpush3.msra.mxu1 %v9249_v40  ;;  %7082 = vmatpush3.msra.mxu0 %v9446_v12 }
0x13d2   :  { %7072 = vmatprep.subr.mxu1 %v9989_v22  ;;  %7083 = vmatprep.subr.mxu0 %v9989_v22 }
0x13d3   :  { %7073 = vmatpush3.msra.mxu1 %v9258_v43  ;;  %7074 = vmatprep.mubr.msk.f32.mxu1 %vm7656_vm0, %v9989_v22 }
0x13d4   :  { %7084 = vmatpush3.msra.mxu0 %v9457_v51  ;;  %7085 = vmatprep.mubr.msk.f32.mxu0 %vm7656_vm0, %v9989_v22 }
0x13d5   :  { %7075 = vmatmul.mubr.msk.f32.vlgmr.msra.gmra.mxu1 %vm273_vm12, %v4322_v0  ;;  %7086 = vmatmul.mubr.msk.f32.vlgmr.msra.gmra.mxu0 %vm273_vm12, %v4322_v0 }
0x13d6   :  { %7088 = vmatprep.subr.mxu1 %v9989_v22  ;;  %7107 = vmatprep.subr.mxu0 %v9989_v22 }
0x13d7   :  { %7089 = vmatpush3.msra.mxu1 %v9469_v38  ;;  %7108 = vmatpush3.msra.mxu0 %v9475_v4 }
0x13d8   :  { %7090 = vmatprep.subr.mxu1 %v9989_v22  ;;  %7109 = vmatprep.subr.mxu0 %v9989_v22 }
0x13d9   :  { %7091 = vmatpush3.msra.mxu1 %v9483_v14  ;;  %7110 = vmatpush3.msra.mxu0 %v9489_v6 }
0x13da   :  { %7092 = vmatprep.subr.mxu1 %v9989_v22  ;;  %7111 = vmatprep.subr.mxu0 %v9989_v22 }
0x13db   :  { %7093 = vmatpush3.msra.mxu1 %v9497_v13  ;;  %7112 = vmatpush3.msra.mxu0 %v9503_v18 }
0x13dc   :  { %7094 = vmatprep.subr.mxu1 %v9989_v22  ;;  %7113 = vmatprep.subr.mxu0 %v9989_v22 }
0x13dd   :  { %7095 = vmatpush3.msra.mxu1 %v9511_v16  ;;  %7114 = vmatpush3.msra.mxu0 %v9517_v24 }
0x13de   :  { %7096 = vmatprep.subr.mxu1 %v9989_v22  ;;  %7115 = vmatprep.subr.mxu0 %v9989_v22 }
0x13df   :  { %7097 = vmatpush3.msra.mxu1 %v9525_v25  ;;  %7116 = vmatpush3.msra.mxu0 %v9531_v26 }
0x13e0   :  { %7098 = vmatprep.subr.mxu1 %v9989_v22  ;;  %7117 = vmatprep.subr.mxu0 %v9989_v22 }
0x13e1   :  { %7099 = vmatpush3.msra.mxu1 %v9539_v41  ;;  %7118 = vmatpush3.msra.mxu0 %v9545_v37 }
0x13e2   :  { %7100 = vmatprep.subr.mxu1 %v9989_v22  ;;  %7119 = vmatprep.subr.mxu0 %v9989_v22 }
0x13e3   :  { %7101 = vmatpush3.msra.mxu1 %v9553_v3  ;;  %7120 = vmatpush3.msra.mxu0 %v9559_v31 }
0x13e4   :  { %7102 = vmatprep.subr.mxu1 %v9989_v22  ;;  %7121 = vmatprep.subr.mxu0 %v9989_v22 }
0x13e5   :  { %7103 = vmatpush3.msra.mxu1 %v9567_v33  ;;  %7122 = vmatpush3.msra.mxu0 %v9573_v34 }
0x13e6   :  { %7104 = vmatprep.mubr.msk.f32.mxu1 %vm7656_vm0, %v9989_v22  ;;  %7123 = vmatprep.mubr.msk.f32.mxu0 %vm7656_vm0, %v9989_v22 }
0x13e7   :  { %7126 = vmatprep.subr.mxu1 %v9989_v22  ;;  %7145 = vmatprep.subr.mxu0 %v9989_v22 }
0x1470   :  { %v4068_v62 = vpop.f32.mrf.mxu1  ;;  %v4138_v56 = vpop.f32.mrf.mxu0 }
0x1471   :  { %v4069_v1 = vadd.f32 %v10001_v49, %v4068_v62  ;;  %v4139_v21 = vadd.f32 %v10002_v27, %v4138_v56 }
0x1472   :  { %v6986_v9 = vpop.f32.mrf.mxu1  ;;  %v7005_v8 = vpop.f32.mrf.mxu0 }
0x1473   :  { %v5802_v10 = vmul.f32 -1.442695, %v4069_v1  ;;  %v5803_v35 = vmul.f32 -1.442695, %v4139_v21 }
0x1475   :  { %7468 = vpow2.f32 %v5802_v10 }
0x1476   :  { %7470 = vpow2.f32 %v5803_v35 }
0x1481   :  { %v4208_v55 = vpop.f32.mrf.mxu1  ;;  %v4278_v47 = vpop.f32.mrf.mxu0 }
0x1482   :  { %v7469_v48 = vpop.eup %7468  ;;  %v4209_v63 = vadd.f32 %v10003_v57, %v4208_v55  ;;  %v4279_v50 = vadd.f32 %v9071_v42, %v4278_v47 }
0x1483   :  { %v7471_v36 = vpop.eup %7470  ;;  %v4285_v59 = vadd.f32 1.0, %v7469_v48  ;;  %v7024_v46 = vpop.f32.mrf.mxu1 }
0x1484   :  { %v7043_v29 = vpop.f32.mrf.mxu0  ;;  %v4291_v49 = vadd.f32 1.0, %v7471_v36  ;;  %7472 = vtanh.f32 %v4209_v63  ;;  %v5804_v27 = vmul.f32 -1.442695, %v4279_v50  ;;  %v9597_v36 = vld [vmem:[%s9955_s1] sm:$0xff] }
0x1485   :  { %7474 = vrcp.f32 %v4285_v59  ;;  %vm4973_vm9 = vcmp.gt.s32.totalorder %v9597_v36, 6  ;;  %vm5640_vm11 = vcmp.gt.s32.totalorder %v9597_v36, 7 }
0x1486   :  { %7476 = vrcp.f32 %v4291_v49  ;;  %v4974_v59 = vsel %vm4973_vm9, 1, %v9988_v11 }
0x1487   :  { %7478 = vpow2.f32 %v5804_v27 }
0x148b   :  { %v4391_v30 = vpop.f32.mrf.mxu1  ;;  %v4462_v0 = vpop.f32.mrf.mxu0 }
0x148d   :  { %v7054_v62 = vpop.f32.mrf.mxu1  ;;  %v7065_v56 = vpop.f32.mrf.mxu0 }
0x148e   :  { %v10005_v56 = vld [vmem:[#allocation9_spill] sm:$0xff] }
0x1491   :  { %v7473_v1 = vpop.eup %7472 }
0x1492   :  { %v7475_v21 = vpop.eup %7474 }
0x1493   :  { %v7477_v9 = vpop.eup %7476  ;;  %v4302_v57 = vmul.f32 %v7475_v21, %v7473_v1 }
0x1494   :  { %v7479_v8 = vpop.eup %7478  ;;  %v4301_v42 = vmul.f32 %v7477_v9, %v9315_v61  ;;  %v4395_v9 = vadd.f32 %v4391_v30, %v10005_v56  ;;  %v9623_v30 = vsel %vm4311_vm8, %v9345_v17, %v9342_v39 }
0x1495   :  { %v4298_v10 = vadd.f32 1.0, %v7479_v8  ;;  %v4537_v35 = vpop.f32.mrf.mxu1  ;;  %v4612_v55 = vpop.f32.mrf.mxu0 }
0x1496   :  { %v4303_v47 = vadd.f32 %v4302_v57, %v4301_v42  ;;  %4542 = vrot.lane.b32.xlu1 %v4537_v35, %s7657_s26 }
0x1497   :  { %7480 = vrcp.f32 %v4298_v10  ;;  %v7076_v48 = vpop.f32.mrf.mxu1  ;;  %v7087_v63 = vpop.f32.mrf.mxu0 }
0x1498   :  { %7482 = vtanh.f32 %v4303_v47  ;;  %v9591_v50 = vsel %vm4311_vm8, %v4303_v47, %v9315_v61 }
0x149a   :  { %4467 = vrot.lane.b32.xlu1 %v4462_v0, %s7658_s27 }
0x149e   :  { %4617 = vrot.lane.b32.xlu1 %v4612_v55, %s7659_s10 }
0x14a2   :  { %4976 = vperm.xlu1 %7291, %v4974_v59  }
0x14a4   :  { %v7481_v46 = vpop.eup %7480 }
0x14a5   :  { %v7483_v29 = vpop.eup %7482 }
0x14a6   :  { %v4305_v49 = vmul.f32 %v7483_v29, %v7481_v46 }
0x14a8   :  { %v9605_v61 = vsel %vm4311_vm8, %v4305_v49, %v9324_v45  ;;  %v4316_v27 = vsel %vm4311_vm8, %v4305_v49, 0.0  ;;  %v5809_v45 = vmul.f32 -1.442695, %v4395_v9 }
0x14a9   :  { %4662 = vrot.lane.b32.xlu1 %v9605_v61, %s7658_s27  ;;  %v9612_v0 = vadd.f32 %v4316_v27, %v9329_v44 }
0x1508   :  { %v4543_v62 = vpop.permute.xlu1 %4542 }
0x1509   :  { %v4545_v1 = vadd.f32 %v4543_v62, %v10005_v56 }
0x150b   :  { %7484 = vtanh.f32 %v4545_v1 }
0x150c   :  { %7486 = vpow2.f32 %v5809_v45  ;;  %v4468_v44 = vpop.permute.xlu1 %4467 }
0x150d   :  { %v4470_v55 = vadd.f32 %v4468_v44, %v10005_v56  ;;  %v9659_v44 = vld [vmem:[%s9956_s5 + $0xb0] sm:$0xff] }
0x150f   :  { %v5810_v47 = vmul.f32 -1.442695, %v4470_v55  ;;  %v9665_v55 = vld [vmem:[%s9956_s5 + $0xf0] sm:$0xff] }
0x1510   :  { %v4618_v62 = vpop.permute.xlu1 %4617 }
0x1511   :  { %v4620_v1 = vadd.f32 %v4618_v62, %v10005_v56  ;;  %v9721_v62 = vld [vmem:[%s9956_s5 + $0xd0] sm:$0xff] }
0x1518   :  { %v7485_v21 = vpop.eup %7484 }
0x1519   :  { %4642 = vrot.lane.b32.xlu0 %v7485_v21, %s7657_s26  ;;  %v7487_v57 = vpop.eup %7486  ;;  %v5811_v21 = vmul.f32 -1.442695, %v4620_v1  ;;  %v9729_v1 = vld [vmem:[%s9956_s5 + $0x88] sm:$0xff] }
0x151a   :  { %v4624_v8 = vadd.f32 1.0, %v7487_v57 }
0x151c   :  { %7488 = vrcp.f32 %v4624_v8 }
0x151d   :  { %7490 = vpow2.f32 %v5810_v47  ;;  %v9631_v57 = vpop.permute.xlu1 %4976  ;;  %v9673_v47 = vld [vmem:[%s9956_s5 + $0xa8] sm:$0xff] }
0x151e   :  { %vm4978_vm10 = vcmp.eq.s32.totalorder %v9631_v57, 1  ;;  %v5641_v57 = vsel %vm5640_vm11, 1, %v9988_v11  ;;  %v14_v11 = vstv %s9958_s8 }
0x151f   :  { %15 = vst [vmem:[#allocation3] sm:$0x1] %v14_v11 }
0x1521   :  { %v4663_v56 = vpop.permute.xlu1 %4662 }
0x1529   :  { %v7489_v42 = vpop.eup %7488 }
0x152a   :  { %v7491_v48 = vpop.eup %7490 }
0x152b   :  { %v4630_v63 = vadd.f32 1.0, %v7491_v48  ;;  %v9679_v48 = vld [vmem:[%s9956_s5 + $0xe8] sm:$0xff] }
0x152d   :  { %7492 = vrcp.f32 %v4630_v63  ;;  %v9687_v63 = vld [vmem:[%s9956_s5 + $0xa0] sm:$0xff] }
0x153a   :  { %v7493_v59 = vpop.eup %7492 }
0x153b   :  { %v4640_v46 = vmul.f32 %v7493_v59, %v9623_v30  ;;  %v9693_v59 = vld [vmem:[%s9956_s5 + $0xe0] sm:$0xff] }
0x158b   :  { %v4643_v10 = vpop.permute.xlu0 %4642 }
0x158c   :  { %v4645_v35 = vmul.f32 %v7489_v42, %v4643_v10 }
0x158e   :  { %4647 = vrot.lane.b32.xlu0 %v4645_v35, %s7658_s27  ;;  %v9645_v35 = vld [vmem:[%s9956_s5 + $0xb8] sm:$0xff] }
0x1600   :  { %v4648_v29 = vpop.permute.xlu0 %4647 }
0x1601   :  { %v9626_v49 = vadd.f32 %v4648_v29, %v4640_v46  ;;  %v9701_v46 = vld [vmem:[%s9956_s5 + $0x98] sm:$0xff] }
0x1602   :  { %v9707_v29 = vld [vmem:[%s9956_s5 + $0xd8] sm:$0xff] }
0x1603   :  { %7494 = vtanh.f32 %v9626_v49 }
0x1604   :  { %7496 = vpow2.f32 %v5811_v21  ;;  %v9735_v21 = vld [vmem:[%s9956_s5 + $0xc8] sm:$0xff] }
0x1610   :  { %v7495_v27 = vpop.eup %7494 }
0x1611   :  { %4653 = vrot.lane.b32.xlu0 %v7495_v27, %s7657_s26  ;;  %v7497_v9 = vpop.eup %7496  ;;  %v9715_v27 = vld [vmem:[%s9956_s5 + $0x90] sm:$0xff] }
0x1612   :  { %v4637_v45 = vadd.f32 1.0, %v7497_v9  ;;  %v9743_v9 = vld [vmem:[%s9956_s5 + $0x80] sm:$0xff] }
0x1614   :  { %7498 = vrcp.f32 %v4637_v45  ;;  %v9751_v45 = vld [vmem:[%s9956_s5 + $0xc0] sm:$0xff] }
0x1621   :  { %v7499_v39 = vpop.eup %7498 }
0x1683   :  { %v4654_v17 = vpop.permute.xlu0 %4653 }
0x1684   :  { %v4656_v52 = vmul.f32 %v7499_v39, %v4654_v17 }
0x1686   :  { %4658 = vrot.lane.b32.xlu0 %v4656_v52, %s7658_s27  ;;  %v4979_v8 = vsel %vm4978_vm10, %v4656_v52, %v9357_v28  ;;  %v9651_v28 = vld [vmem:[%s9956_s5 + $0xf8] sm:$0xff] }
0x168a   :  { %4988 = vrot.lane.b32.xlu0 %v4979_v8, %s7658_s27 }
0x16f8   :  { %v4659_v42 = vpop.permute.xlu0 %4658 }
0x16f9   :  { %v4665_v10 = vsel %vm273_vm12, %v4659_v42, %v4663_v56 }
0x16fa   :  { %7105 = vmatmul.mubr.msk.f32.vlgmr.msra.gmra.mxu1 %vm637_vm13, %v4665_v10  ;;  %7124 = vmatmul.mubr.msk.f32.vlgmr.msra.gmra.mxu0 %vm637_vm13, %v4665_v10 }
0x16fb   :  { %7127 = vmatpush3.msra.mxu1 %v9645_v35  ;;  %7146 = vmatpush3.msra.mxu0 %v9651_v28 }
0x16fc   :  { %7128 = vmatprep.subr.mxu1 %v9989_v22  ;;  %7147 = vmatprep.subr.mxu0 %v9989_v22 }
0x16fd   :  { %7129 = vmatpush3.msra.mxu1 %v9659_v44  ;;  %7148 = vmatpush3.msra.mxu0 %v9665_v55 }
0x16fe   :  { %7130 = vmatprep.subr.mxu1 %v9989_v22  ;;  %7149 = vmatprep.subr.mxu0 %v9989_v22 }
0x16ff   :  { %7131 = vmatpush3.msra.mxu1 %v9673_v47  ;;  %7150 = vmatpush3.msra.mxu0 %v9679_v48 }
0x1700   :  { %7132 = vmatprep.subr.mxu1 %v9989_v22  ;;  %7151 = vmatprep.subr.mxu0 %v9989_v22 }
0x1701   :  { %7133 = vmatpush3.msra.mxu1 %v9687_v63  ;;  %7152 = vmatpush3.msra.mxu0 %v9693_v59 }
0x1702   :  { %7134 = vmatprep.subr.mxu1 %v9989_v22  ;;  %7153 = vmatprep.subr.mxu0 %v9989_v22 }
0x1703   :  { %7135 = vmatpush3.msra.mxu1 %v9701_v46  ;;  %7154 = vmatpush3.msra.mxu0 %v9707_v29 }
0x1704   :  { %7136 = vmatprep.subr.mxu1 %v9989_v22  ;;  %7155 = vmatprep.subr.mxu0 %v9989_v22 }
0x1705   :  { %7137 = vmatpush3.msra.mxu1 %v9715_v27  ;;  %7156 = vmatpush3.msra.mxu0 %v9721_v62 }
0x1706   :  { %7138 = vmatprep.subr.mxu1 %v9989_v22  ;;  %7157 = vmatprep.subr.mxu0 %v9989_v22 }
0x1707   :  { %7139 = vmatpush3.msra.mxu1 %v9729_v1  ;;  %7158 = vmatpush3.msra.mxu0 %v9735_v21 }
0x1708   :  { %7140 = vmatprep.subr.mxu1 %v9989_v22  ;;  %7159 = vmatprep.subr.mxu0 %v9989_v22 }
0x1709   :  { %7141 = vmatpush3.msra.mxu1 %v9743_v9  ;;  %7142 = vmatprep.mubr.msk.f32.mxu1 %vm7656_vm0, %v9989_v22 }
0x170a   :  { %7160 = vmatpush3.msra.mxu0 %v9751_v45  ;;  %7161 = vmatprep.mubr.msk.f32.mxu0 %vm7656_vm0, %v9989_v22 }
0x170b   :  { %7143 = vmatmul.mubr.msk.f32.vlgmr.msra.gmra.mxu1 %vm637_vm13, %v4665_v10  ;;  %7162 = vmatmul.mubr.msk.f32.vlgmr.msra.gmra.mxu0 %vm637_vm13, %v4665_v10 }
0x170c   :  { %7164 = vmatprep.subr.mxu1 %v9989_v22  ;;  %7175 = vmatprep.subr.mxu0 %v9989_v22 }
0x170d   :  { %7165 = vmatpush3.msra.mxu1 %v9169_v7  ;;  %7176 = vmatpush3.msra.mxu0 %v9175_v58  ;;  %v4989_v7 = vpop.permute.xlu0 %4988 }
0x170e   :  { %7166 = vmatprep.subr.mxu1 %v9989_v22  ;;  %7177 = vmatprep.subr.mxu0 %v9989_v22 }
0x170f   :  { %7167 = vmatpush3.msra.mxu1 %v9183_v60  ;;  %7178 = vmatpush3.msra.mxu0 %v9189_v15  ;;  %v9843_v15 = vld [vmem:[%s9957_s6] ss:$0 sm:$0xff] }
0x1710   :  { %7168 = vmatprep.subr.mxu1 %v9989_v22  ;;  %7179 = vmatprep.subr.mxu0 %v9989_v22 }
0x1711   :  { %7169 = vmatpush3.msra.mxu1 %v9197_v23  ;;  %7180 = vmatpush3.msra.mxu0 %v9203_v54  ;;  %v9849_v54 = vld [vmem:[%s9957_s6 + $0x1] ss:$0 sm:$0xff] }
0x1712   :  { %7170 = vmatprep.subr.mxu1 %v9989_v22  ;;  %7181 = vmatprep.subr.mxu0 %v9989_v22 }
0x1713   :  { %7171 = vmatpush3.msra.mxu1 %v9211_v2  ;;  %7172 = vmatprep.mubr.msk.f32.mxu1 %vm7656_vm0, %v9989_v22 }
0x1714   :  { %7182 = vmatpush3.msra.mxu0 %v9219_v5  ;;  %7183 = vmatprep.mubr.msk.f32.mxu0 %vm7656_vm0, %v9989_v22 }
0x1715   :  { %7173 = vmatmul.mubr.msk.f32.vlgmr.msra.gmra.mxu1 %vm273_vm12, %v4989_v7  ;;  %7184 = vmatmul.mubr.msk.f32.vlgmr.msra.gmra.mxu0 %vm273_vm12, %v4989_v7 }
0x1716   :  { %7186 = vmatprep.subr.mxu1 %v9989_v22  ;;  %7197 = vmatprep.subr.mxu0 %v9989_v22 }
0x1717   :  { %7187 = vmatpush3.msra.mxu1 %v9231_v32  ;;  %7198 = vmatpush3.msra.mxu0 %v9428_v53 }
0x1718   :  { %7188 = vmatprep.subr.mxu1 %v9989_v22  ;;  %7199 = vmatprep.subr.mxu0 %v9989_v22 }
0x1719   :  { %7189 = vmatpush3.msra.mxu1 %v9240_v19  ;;  %7200 = vmatpush3.msra.mxu0 %v9437_v20 }
0x171a   :  { %7190 = vmatprep.subr.mxu1 %v9989_v22  ;;  %7201 = vmatprep.subr.mxu0 %v9989_v22 }
0x171b   :  { %7191 = vmatpush3.msra.mxu1 %v9249_v40  ;;  %7202 = vmatpush3.msra.mxu0 %v9446_v12  ;;  %v9855_v12 = vld [vmem:[%s9957_s6 + $0x2] ss:$0 sm:$0xff] }
0x171c   :  { %7192 = vmatprep.subr.mxu1 %v9989_v22  ;;  %7203 = vmatprep.subr.mxu0 %v9989_v22 }
0x171d   :  { %7193 = vmatpush3.msra.mxu1 %v9258_v43  ;;  %7194 = vmatprep.mubr.msk.f32.mxu1 %vm7656_vm0, %v9989_v22 }
0x171e   :  { %7204 = vmatpush3.msra.mxu0 %v9457_v51  ;;  %7205 = vmatprep.mubr.msk.f32.mxu0 %vm7656_vm0, %v9989_v22 }
0x171f   :  { %7195 = vmatmul.mubr.msk.f32.vlgmr.msra.gmra.mxu1 %vm273_vm12, %v4989_v7  ;;  %7206 = vmatmul.mubr.msk.f32.vlgmr.msra.gmra.mxu0 %vm273_vm12, %v4989_v7 }
0x1720   :  { %7208 = vmatprep.subr.mxu1 %v9989_v22  ;;  %7227 = vmatprep.subr.mxu0 %v9989_v22 }
0x1721   :  { %7209 = vmatpush3.msra.mxu1 %v9469_v38  ;;  %7228 = vmatpush3.msra.mxu0 %v9475_v4  ;;  %v9861_v38 = vld [vmem:[%s9957_s6 + $0x3] ss:$0 sm:$0xff] }
0x1722   :  { %7210 = vmatprep.subr.mxu1 %v9989_v22  ;;  %7229 = vmatprep.subr.mxu0 %v9989_v22 }
0x1723   :  { %7211 = vmatpush3.msra.mxu1 %v9483_v14  ;;  %7230 = vmatpush3.msra.mxu0 %v9489_v6 }
0x1724   :  { %7212 = vmatprep.subr.mxu1 %v9989_v22  ;;  %7231 = vmatprep.subr.mxu0 %v9989_v22 }
0x1725   :  { %7213 = vmatpush3.msra.mxu1 %v9497_v13  ;;  %7232 = vmatpush3.msra.mxu0 %v9503_v18 }
0x1726   :  { %7214 = vmatprep.subr.mxu1 %v9989_v22  ;;  %7233 = vmatprep.subr.mxu0 %v9989_v22 }
0x1727   :  { %7215 = vmatpush3.msra.mxu1 %v9511_v16  ;;  %7234 = vmatpush3.msra.mxu0 %v9517_v24 }
0x1728   :  { %7216 = vmatprep.subr.mxu1 %v9989_v22  ;;  %7235 = vmatprep.subr.mxu0 %v9989_v22 }
0x1729   :  { %7217 = vmatpush3.msra.mxu1 %v9525_v25  ;;  %7236 = vmatpush3.msra.mxu0 %v9531_v26 }
0x172a   :  { %7218 = vmatprep.subr.mxu1 %v9989_v22  ;;  %7237 = vmatprep.subr.mxu0 %v9989_v22 }
0x172b   :  { %7219 = vmatpush3.msra.mxu1 %v9539_v41  ;;  %7238 = vmatpush3.msra.mxu0 %v9545_v37 }
0x172c   :  { %7220 = vmatprep.subr.mxu1 %v9989_v22  ;;  %7239 = vmatprep.subr.mxu0 %v9989_v22 }
0x172d   :  { %7221 = vmatpush3.msra.mxu1 %v9553_v3  ;;  %7240 = vmatpush3.msra.mxu0 %v9559_v31 }
0x172e   :  { %7222 = vmatprep.subr.mxu1 %v9989_v22  ;;  %7241 = vmatprep.subr.mxu0 %v9989_v22 }
0x172f   :  { %7223 = vmatpush3.msra.mxu1 %v9567_v33  ;;  %7242 = vmatpush3.msra.mxu0 %v9573_v34 }
0x1730   :  { %7224 = vmatprep.mubr.msk.f32.mxu1 %vm7656_vm0, %v9989_v22  ;;  %7243 = vmatprep.mubr.msk.f32.mxu0 %vm7656_vm0, %v9989_v22 }
0x1731   :  { %7246 = vmatprep.subr.mxu1 %v9989_v22  ;;  %7265 = vmatprep.subr.mxu0 %v9989_v22 }
0x17ba   :  { %v4735_v58 = vpop.f32.mrf.mxu1  ;;  %v4805_v60 = vpop.f32.mrf.mxu0 }
0x17bb   :  { %v4736_v23 = vadd.f32 %v9843_v15, %v4735_v58  ;;  %v4806_v2 = vadd.f32 %v9849_v54, %v4805_v60 }
0x17bc   :  { %v7106_v5 = vpop.f32.mrf.mxu1  ;;  %v7125_v32 = vpop.f32.mrf.mxu0 }
0x17bd   :  { %v5816_v19 = vmul.f32 -1.442695, %v4736_v23  ;;  %v5817_v40 = vmul.f32 -1.442695, %v4806_v2 }
0x17bf   :  { %7500 = vpow2.f32 %v5816_v19 }
0x17c0   :  { %7502 = vpow2.f32 %v5817_v40  ;;  %v10006_v40 = vld [vmem:[#allocation8_spill] sm:$0xff] }
0x17cb   :  { %v4875_v43 = vpop.f32.mrf.mxu1  ;;  %v4945_v53 = vpop.f32.mrf.mxu0 }
0x17cc   :  { %v7501_v20 = vpop.eup %7500  ;;  %v4876_v51 = vadd.f32 %v9855_v12, %v4875_v43  ;;  %v4946_v4 = vadd.f32 %v9861_v38, %v4945_v53 }
0x17cd   :  { %v7503_v14 = vpop.eup %7502  ;;  %v4952_v6 = vadd.f32 1.0, %v7501_v20  ;;  %v7144_v13 = vpop.f32.mrf.mxu1 }
0x17ce   :  { %v7163_v18 = vpop.f32.mrf.mxu0  ;;  %v4958_v16 = vadd.f32 1.0, %v7503_v14  ;;  %7504 = vtanh.f32 %v4876_v51  ;;  %v5818_v24 = vmul.f32 -1.442695, %v4946_v4 }
0x17cf   :  { %7506 = vrcp.f32 %v4952_v6 }
0x17d0   :  { %7508 = vrcp.f32 %v4958_v16 }
0x17d1   :  { %7510 = vpow2.f32 %v5818_v24 }
0x17d5   :  { %v5058_v25 = vpop.f32.mrf.mxu1  ;;  %v5129_v26 = vpop.f32.mrf.mxu0 }
0x17d7   :  { %v7174_v41 = vpop.f32.mrf.mxu1  ;;  %v7185_v37 = vpop.f32.mrf.mxu0 }
0x17db   :  { %v7505_v3 = vpop.eup %7504 }
0x17dc   :  { %v7507_v31 = vpop.eup %7506 }
0x17dd   :  { %v7509_v33 = vpop.eup %7508  ;;  %v4969_v34 = vmul.f32 %v7507_v31, %v7505_v3 }
0x17de   :  { %v7511_v39 = vpop.eup %7510  ;;  %v4968_v17 = vmul.f32 %v7509_v33, %v9591_v50 }
0x17df   :  { %v4965_v52 = vadd.f32 1.0, %v7511_v39  ;;  %v5204_v8 = vpop.f32.mrf.mxu1  ;;  %v5279_v56 = vpop.f32.mrf.mxu0 }
0x17e0   :  { %v4970_v42 = vadd.f32 %v4969_v34, %v4968_v17  ;;  %5209 = vrot.lane.b32.xlu1 %v5204_v8, %s7657_s26 }
0x17e1   :  { %7512 = vrcp.f32 %v4965_v52  ;;  %v7196_v10 = vpop.f32.mrf.mxu1  ;;  %v7207_v7 = vpop.f32.mrf.mxu0 }
0x17e2   :  { %7514 = vtanh.f32 %v4970_v42  ;;  %v9869_v58 = vsel %vm4978_vm10, %v4970_v42, %v9591_v50  ;;  %v5062_v50 = vadd.f32 %v5058_v25, %v10006_v40  ;;  %v4980_v25 = vsel %vm4978_vm10, %v9626_v49, %v9623_v30 }
0x17e4   :  { %5134 = vrot.lane.b32.xlu1 %v5129_v26, %s7658_s27  ;;  %v5823_v20 = vmul.f32 -1.442695, %v5062_v50 }
0x17e8   :  { %5284 = vrot.lane.b32.xlu1 %v5279_v56, %s7659_s10 }
0x17ee   :  { %v7513_v60 = vpop.eup %7512 }
0x17ef   :  { %v7515_v23 = vpop.eup %7514 }
0x17f0   :  { %v4972_v2 = vmul.f32 %v7515_v23, %v7513_v60 }
0x17f2   :  { %v4983_v5 = vsel %vm4978_vm10, %v4972_v2, 0.0  ;;  %v4981_v34 = vsel %vm4978_vm10, %v4972_v2, %v9605_v61 }
0x17f3   :  { %v9876_v32 = vadd.f32 %v4983_v5, %v9612_v0 }
0x1852   :  { %v5210_v19 = vpop.permute.xlu1 %5209 }
0x1853   :  { %v5212_v43 = vadd.f32 %v5210_v19, %v10006_v40 }
0x1855   :  { %7516 = vtanh.f32 %v5212_v43 }
0x1856   :  { %7518 = vpow2.f32 %v5823_v20  ;;  %v5135_v0 = vpop.permute.xlu1 %5134 }
0x1857   :  { %v5137_v18 = vadd.f32 %v5135_v0, %v10006_v40 }
0x1859   :  { %v5824_v16 = vmul.f32 -1.442695, %v5137_v18 }
0x185a   :  { %v5285_v39 = vpop.permute.xlu1 %5284 }
0x185b   :  { %v5287_v17 = vadd.f32 %v5285_v39, %v10006_v40 }
0x185d   :  { %v5825_v52 = vmul.f32 -1.442695, %v5287_v17 }
0x1862   :  { %v7517_v53 = vpop.eup %7516 }
0x1863   :  { %5309 = vrot.lane.b32.xlu0 %v7517_v53, %s7657_s26  ;;  %v7519_v51 = vpop.eup %7518 }
0x1864   :  { %v5291_v4 = vadd.f32 1.0, %v7519_v51  ;;  %v5833_v51 = vld [vmem:[%s9959_s7] ss:$0 sm:$0xff] }
0x1866   :  { %7520 = vrcp.f32 %v5291_v4 }
0x1867   :  { %7522 = vpow2.f32 %v5824_v16 }
0x1873   :  { %v7521_v14 = vpop.eup %7520 }
0x1874   :  { %v7523_v24 = vpop.eup %7522 }
0x1875   :  { %v5297_v26 = vadd.f32 1.0, %v7523_v24 }
0x1877   :  { %7524 = vrcp.f32 %v5297_v26 }
0x1884   :  { %v7525_v41 = vpop.eup %7524 }
0x1885   :  { %v5307_v37 = vmul.f32 %v7525_v41, %v4980_v25 }
0x18d5   :  { %v5310_v6 = vpop.permute.xlu0 %5309 }
0x18d6   :  { %v5312_v13 = vmul.f32 %v7521_v14, %v5310_v6 }
0x18d8   :  { %5314 = vrot.lane.b32.xlu0 %v5312_v13, %s7658_s27 }
0x194a   :  { %v5315_v3 = vpop.permute.xlu0 %5314 }
0x194b   :  { %v5317_v31 = vadd.f32 %v5315_v3, %v5307_v37 }
0x194d   :  { %7526 = vtanh.f32 %v5317_v31 }
0x194e   :  { %7528 = vpow2.f32 %v5825_v52 }
0x195a   :  { %v7527_v33 = vpop.eup %7526 }
0x195b   :  { %5320 = vrot.lane.b32.xlu0 %v7527_v33, %s7657_s26  ;;  %v7529_v8 = vpop.eup %7528 }
0x195c   :  { %v5304_v30 = vadd.f32 1.0, %v7529_v8 }
0x195e   :  { %7530 = vrcp.f32 %v5304_v30 }
0x195f   :  { %5329 = vrot.lane.b32.xlu0 %v4981_v34, %s7658_s27 }
0x196b   :  { %v7531_v49 = vpop.eup %7530 }
0x19cd   :  { %v5321_v56 = vpop.permute.xlu0 %5320 }
0x19ce   :  { %v5323_v42 = vmul.f32 %v7531_v49, %v5321_v56 }
0x19d0   :  { %5325 = vrot.lane.b32.xlu1 %v5323_v42, %s7658_s27 }
0x19d1   :  { %v5330_v61 = vpop.permute.xlu0 %5329 }
0x19d4   :  { %5643 = vperm.xlu1 %7291, %v5641_v57  }
0x1a42   :  { %v5326_v10 = vpop.permute.xlu1 %5325 }
0x1a43   :  { %v5332_v7 = vsel %vm273_vm12, %v5326_v10, %v5330_v61 }
0x1a44   :  { %7225 = vmatmul.mubr.msk.f32.vlgmr.msra.gmra.mxu1 %vm637_vm13, %v5332_v7  ;;  %7244 = vmatmul.mubr.msk.f32.vlgmr.msra.gmra.mxu0 %vm637_vm13, %v5332_v7 }
0x1a45   :  { %7247 = vmatpush3.msra.mxu1 %v9645_v35  ;;  %7266 = vmatpush3.msra.mxu0 %v9651_v28 }
0x1a46   :  { %7248 = vmatprep.subr.mxu1 %v9989_v22  ;;  %7267 = vmatprep.subr.mxu0 %v9989_v22 }
0x1a47   :  { %7249 = vmatpush3.msra.mxu1 %v9659_v44  ;;  %7268 = vmatpush3.msra.mxu0 %v9665_v55 }
0x1a48   :  { %7250 = vmatprep.subr.mxu1 %v9989_v22  ;;  %7269 = vmatprep.subr.mxu0 %v9989_v22 }
0x1a49   :  { %7251 = vmatpush3.msra.mxu1 %v9673_v47  ;;  %7270 = vmatpush3.msra.mxu0 %v9679_v48 }
0x1a4a   :  { %7252 = vmatprep.subr.mxu1 %v9989_v22  ;;  %7271 = vmatprep.subr.mxu0 %v9989_v22 }
0x1a4b   :  { %7253 = vmatpush3.msra.mxu1 %v9687_v63  ;;  %7272 = vmatpush3.msra.mxu0 %v9693_v59 }
0x1a4c   :  { %7254 = vmatprep.subr.mxu1 %v9989_v22  ;;  %7273 = vmatprep.subr.mxu0 %v9989_v22 }
0x1a4d   :  { %7255 = vmatpush3.msra.mxu1 %v9701_v46  ;;  %7274 = vmatpush3.msra.mxu0 %v9707_v29 }
0x1a4e   :  { %7256 = vmatprep.subr.mxu1 %v9989_v22  ;;  %7275 = vmatprep.subr.mxu0 %v9989_v22 }
0x1a4f   :  { %7257 = vmatpush3.msra.mxu1 %v9715_v27  ;;  %7276 = vmatpush3.msra.mxu0 %v9721_v62  ;;  %v5644_v43 = vpop.permute.xlu1 %5643 }
0x1a50   :  { %7258 = vmatprep.subr.mxu1 %v9989_v22  ;;  %7277 = vmatprep.subr.mxu0 %v9989_v22 }
0x1a51   :  { %7259 = vmatpush3.msra.mxu1 %v9729_v1  ;;  %7278 = vmatpush3.msra.mxu0 %v9735_v21 }
0x1a52   :  { %7260 = vmatprep.subr.mxu1 %v9989_v22  ;;  %7279 = vmatprep.subr.mxu0 %v9989_v22 }
0x1a53   :  { %7261 = vmatpush3.msra.mxu1 %v9743_v9  ;;  %7262 = vmatprep.mubr.msk.f32.mxu1 %vm7656_vm0, %v9989_v22 }
0x1a54   :  { %7280 = vmatpush3.msra.mxu0 %v9751_v45  ;;  %7281 = vmatprep.mubr.msk.f32.mxu0 %vm7656_vm0, %v9989_v22  ;;  %vm5645_vm0 = vcmp.eq.s32.totalorder %v5644_v43, 1 }
0x1a55   :  { %7263 = vmatmul.mubr.msk.f32.vlgmr.msra.gmra.mxu1 %vm637_vm13, %v5332_v7  ;;  %7282 = vmatmul.mubr.msk.f32.vlgmr.msra.gmra.mxu0 %vm637_vm13, %v5332_v7  ;;  %vm5667_vm13 = vcmask 7168  }
0x1b04   :  { %v5402_v36 = vpop.f32.mrf.mxu1  ;;  %v5472_v35 = vpop.f32.mrf.mxu0 }
0x1b05   :  { %v5403_v28 = vadd.f32 %v9843_v15, %v5402_v36  ;;  %v5473_v44 = vadd.f32 %v9849_v54, %v5472_v35 }
0x1b06   :  { %v7226_v55 = vpop.f32.mrf.mxu1  ;;  %v7245_v47 = vpop.f32.mrf.mxu0 }
0x1b07   :  { %v5830_v48 = vmul.f32 -1.442695, %v5403_v28  ;;  %v5831_v63 = vmul.f32 -1.442695, %v5473_v44 }
0x1b09   :  { %7532 = vpow2.f32 %v5830_v48 }
0x1b0a   :  { %7534 = vpow2.f32 %v5831_v63 }
0x1b15   :  { %v5542_v22 = vpop.f32.mrf.mxu1  ;;  %v5612_v59 = vpop.f32.mrf.mxu0 }
0x1b16   :  { %v7533_v46 = vpop.eup %7532  ;;  %v5543_v29 = vadd.f32 %v9855_v12, %v5542_v22  ;;  %v5613_v27 = vadd.f32 %v9861_v38, %v5612_v59 }
0x1b17   :  { %v7535_v62 = vpop.eup %7534  ;;  %v5619_v1 = vadd.f32 1.0, %v7533_v46  ;;  %v7264_v21 = vpop.f32.mrf.mxu1 }
0x1b18   :  { %v7283_v9 = vpop.f32.mrf.mxu0  ;;  %v5625_v45 = vadd.f32 1.0, %v7535_v62  ;;  %7536 = vtanh.f32 %v5543_v29  ;;  %v5832_v15 = vmul.f32 -1.442695, %v5613_v27 }
0x1b19   :  { %7538 = vrcp.f32 %v5619_v1 }
0x1b1a   :  { %7540 = vrcp.f32 %v5625_v45 }
0x1b1b   :  { %7542 = vpow2.f32 %v5832_v15 }
0x1b25   :  { %v7537_v54 = vpop.eup %7536 }
0x1b26   :  { %v7539_v60 = vpop.eup %7538 }
0x1b27   :  { %v7541_v23 = vpop.eup %7540  ;;  %v5636_v2 = vmul.f32 %v7539_v60, %v7537_v54 }
0x1b28   :  { %v7543_v5 = vpop.eup %7542  ;;  %v5635_v19 = vmul.f32 %v7541_v23, %v9869_v58  ;;  %v5834_v58 = vld [vmem:[#allocation3] ss:$0 sm:$0xff] }
0x1b29   :  { %v5632_v12 = vadd.f32 1.0, %v7543_v5 }
0x1b2a   :  { %v5637_v40 = vadd.f32 %v5636_v2, %v5635_v19 }
0x1b2b   :  { %7544 = vrcp.f32 %v5632_v12 }
0x1b2c   :  { %7546 = vtanh.f32 %v5637_v40 }
0x1b38   :  { %v7545_v38 = vpop.eup %7544 }
0x1b39   :  { %v7547_v53 = vpop.eup %7546 }
0x1b3a   :  { %v5639_v50 = vmul.f32 %v7547_v53, %v7545_v38 }
0x1b3c   :  { %v5646_v20 = vsel %vm5645_vm0, %v5639_v50, 0.0 }
0x1b3d   :  { %v5647_v4 = vadd.f32 %v5646_v20, %v9876_v32 }
0x1b3f   :  { %v5655_v14 = vmul.f32 %v5833_v51, %v5647_v4 }
0x1b41   :  { %v5656_v6 = vsel %vm273_vm12, %v5655_v14, 0.0 }
0x1b42   :  { %5657 = vadd.xlane.f32.xlu0 %v5656_v6 }
0x1bcb   :  { %v5658_v13 = vpop.xlane.xlu0 %5657 }
0x1bcc   :  { %v5666_v0 = vadd.f32 %v5834_v58, %v5658_v13 }
0x1bce   :  { %5668 = vst.msk [vmem:[%s9960_s9] sm:$0xff] %vm5667_vm13, %v5666_v0 }

</bundles_post_ra>
